<compile_context>
chip_gen: v6e
topology: v6e:2x2x1
jax: 0.10.0
libtpu: 0.0.40
codegen_flags: <defaults>
</compile_context>

<pallas_src>
import functools

import jax
import jax.numpy as jnp
from jax import lax
from jax.experimental import pallas as pl
from jax.experimental.pallas import tpu as pltpu


def conv_out_size(n, k, s):
    return (n - k) // s + 1


# ---------------------------------------------------------------------------
# Fully fused forward kernel
# ---------------------------------------------------------------------------
def _fused_kernel(p1_ref, w1_ref, b1_ref, w2_ref, b2_ref, w3_ref, b3_ref,
                  wf1_ref, bf1_ref, bf2_ref, bh_ref, wf2_hbm, wh_hbm,
                  out_ref,
                  h1_ref, p2_ref, h2_ref, p3_ref, wf2_buf, wh_buf, dma_sem,
                  *, wo1, ho2, wo2, ho3, wo3, n_actions):
    # --- kick off the tail-weight DMAs so they overlap the conv stack --------
    cp_wf2 = pltpu.make_async_copy(wf2_hbm, wf2_buf, dma_sem.at[0])
    cp_wh = pltpu.make_async_copy(wh_hbm, wh_buf, dma_sem.at[1])
    cp_wf2.start()
    cp_wh.start()

    # --- conv1: ONE im2col matmul (patches built in the wrapper) -------------
    # w1 has its 32 output channels replicated 4x along lanes so that one
    # 128-lane block of h1 already holds the (kw-offset, cin) layout that
    # conv2's patch groups need.
    h1 = jnp.dot(p1_ref[...], w1_ref[...], preferred_element_type=jnp.float32)
    h1_ref[...] = jnp.maximum(h1 + b1_ref[...], 0.0)            # (Ho1*Wo1, 128)

    # --- conv2 (k=4, s=2): fill im2col scratch, ONE (P2,512)@(512,128) -------
    def read_h1(start):
        if wo2 == 1:
            return h1_ref[pl.ds(start, 1), :]
        return h1_ref[pl.ds(start, wo2, stride=2), :]

    lane2 = lax.broadcasted_iota(jnp.int32, (wo2, 128), 1)
    m32, m64, m96 = lane2 < 32, lane2 < 64, lane2 < 96            # hoisted masks
    for i in range(ho2):
        for di in range(4):
            base = (2 * i + di) * wo1
            a0, a1, a2, a3 = (read_h1(base + dj) for dj in range(4))
            g = jnp.where(m32, a0, jnp.where(m64, a1, jnp.where(m96, a2, a3)))
            p2_ref[pl.ds(i * wo2, wo2), pl.ds(128 * di, 128)] = g
    h2 = jnp.dot(p2_ref[...], w2_ref[...], preferred_element_type=jnp.float32)
    h2_ref[...] = jnp.maximum(h2 + b2_ref[...], 0.0)             # (Ho2*Wo2, 128)

    # --- conv3 (k=3, s=1): same trick, ONE (P3,640)@(640,64) matmul ----------
    half3 = lax.broadcasted_iota(jnp.int32, (wo3, 128), 1) < 64
    for i in range(ho3):
        for g in range(4):                       # kernel-offset pairs (2g, 2g+1)
            di0, dj0 = divmod(2 * g, 3)
            di1, dj1 = divmod(2 * g + 1, 3)
            a0 = h2_ref[pl.ds((i + di0) * wo2 + dj0, wo3), :]
            a1 = h2_ref[pl.ds((i + di1) * wo2 + dj1, wo3), :]
            p3_ref[pl.ds(i * wo3, wo3), pl.ds(128 * g, 128)] = jnp.where(half3, a0, a1)
        # 9th offset (di=2, dj=2): full 128-lane group, upper half zero-weighted
        p3_ref[pl.ds(i * wo3, wo3), pl.ds(512, 128)] = (
            h2_ref[pl.ds((i + 2) * wo2 + 2, wo3), :])
    h3 = jnp.dot(p3_ref[...], w3_ref[...], preferred_element_type=jnp.float32)
    h3 = jnp.maximum(h3 + b3_ref[...], 0.0)                      # (Ho3*Wo3, 64)

    # --- fc1 (+ReLU): single contraction over (pos, cin) ---------------------
    p3n = ho3 * wo3
    h3_flat = h3 if p3n == 1 else h3.reshape(1, p3n * 64)
    hf1 = jnp.maximum(
        jnp.dot(h3_flat, wf1_ref[...], preferred_element_type=jnp.float32)
        + bf1_ref[...], 0.0)                                     # (1, 256)

    # --- fc2 (no ReLU, matches the module); weight arrives by manual DMA -----
    cp_wf2.wait()
    hf2 = jnp.dot(hf1, wf2_buf[...],
                  preferred_element_type=jnp.float32) + bf2_ref[...]   # (1, 512)

    # --- fused actor/critic heads + lane-masked softmax ----------------------
    cp_wh.wait()
    y = jnp.dot(hf2, wh_buf[...],
                preferred_element_type=jnp.float32) + bh_ref[...]      # (1, 128)
    lane = lax.broadcasted_iota(jnp.int32, y.shape, 1)
    is_logit = lane < n_actions
    z = jnp.where(is_logit, y, jnp.float32(-1e30))
    m = jnp.max(z, axis=-1, keepdims=True)
    e = jnp.where(is_logit, jnp.exp(z - m), jnp.float32(0.0))
    probs = e / jnp.sum(e, axis=-1, keepdims=True)
    # lanes [0, A): softmax probs; lane A: raw state value; rest: zeros
    out_ref[...] = jnp.where(is_logit, probs, y)


# ---------------------------------------------------------------------------
# Wrapper
# ---------------------------------------------------------------------------
def _full_spec(shape):
    zeros = (0,) * len(shape)
    return pl.BlockSpec(shape, lambda i, _z=zeros: _z)


def _conv1_patches(x_chw, ho1, wo1):
    """im2col for conv1 (k=8, s=4) with pure reshape/slice/concat arithmetic.

    Returns (Ho1*Wo1, C*64) with columns ordered (c, kh, kw) -- the OIHW
    flatten order of w_conv1 -- so conv1 is a single matmul in the kernel.
    """
    C = x_chw.shape[0]
    x = x_chw[:, :4 * (ho1 + 1), :4 * (wo1 + 1)]
    xg = x.reshape(C, ho1 + 1, 4, wo1 + 1, 4)
    rows = jnp.concatenate([xg[:, :-1], xg[:, 1:]], axis=2)       # (C, Ho1, 8, Wo1+1, 4)
    pat = jnp.concatenate([rows[:, :, :, :-1], rows[:, :, :, 1:]],
                          axis=4)                                 # (C, Ho1, 8, Wo1, 8)
    return pat.transpose(1, 3, 0, 2, 4).reshape(ho1 * wo1, C * 64)


def forward(packed, x_chw, *, n_actions):
    """Mirrors ConvolutionalActorCriticNetwork.forward (x unsqueezed to batch 1)."""
    C, H, W = x_chw.shape
    Ho1, Wo1 = conv_out_size(H, 8, 4), conv_out_size(W, 8, 4)
    Ho2, Wo2 = conv_out_size(Ho1, 4, 2), conv_out_size(Wo1, 4, 2)
    Ho3, Wo3 = conv_out_size(Ho2, 3, 1), conv_out_size(Wo2, 3, 1)
    NH = packed["wh"].shape[1]

    p1 = _conv1_patches(x_chw, Ho1, Wo1)                          # (Ho1*Wo1, C*64)

    kernel = functools.partial(
        _fused_kernel, wo1=Wo1, ho2=Ho2, wo2=Wo2, ho3=Ho3, wo3=Wo3,
        n_actions=n_actions)

    blocked = (p1, packed["w1"], packed["b1"], packed["w2"], packed["b2"],
               packed["w3"], packed["b3"], packed["wf1"], packed["bf1"],
               packed["bf2"], packed["bh"])
    hbm = (packed["wf2"], packed["wh"])

    out = pl.pallas_call(
        kernel,
        out_shape=jax.ShapeDtypeStruct((1, NH), jnp.float32),
        grid=(1,),
        in_specs=[_full_spec(a.shape) for a in blocked]
                 + [pl.BlockSpec(memory_space=pl.ANY),
                    pl.BlockSpec(memory_space=pl.ANY)],
        out_specs=_full_spec((1, NH)),
        scratch_shapes=[
            pltpu.VMEM((Ho1 * Wo1, 128), jnp.float32),   # conv1 act (32ch x4 copies)
            pltpu.VMEM((Ho2 * Wo2, 512), jnp.float32),   # conv2 im2col patches
            pltpu.VMEM((Ho2 * Wo2, 128), jnp.float32),   # conv2 act (64ch x2 copies)
            pltpu.VMEM((Ho3 * Wo3, 640), jnp.float32),   # conv3 im2col patches
            pltpu.VMEM((256, 512), jnp.float32),         # fc2 weight (manual DMA)
            pltpu.VMEM((512, NH), jnp.float32),          # fused head weight (manual DMA)
            pltpu.SemaphoreType.DMA((2,)),
        ],
        compiler_params=pltpu.CompilerParams(
            dimension_semantics=("arbitrary",)),
    )(*blocked, *hbm)

    return out[:, :n_actions], out[:, n_actions:n_actions + 1]


# ---------------------------------------------------------------------------
# Parameters (PyTorch layout) + one-time repacking into the kernel's layouts
# ---------------------------------------------------------------------------
def init_params(key, input_dims, output_dims):
    C, H, W = input_dims
    hx = conv_out_size(conv_out_size(conv_out_size(H, 8, 4), 4, 2), 3, 1)
    wx = conv_out_size(conv_out_size(conv_out_size(W, 8, 4), 4, 2), 3, 1)
    fc_in = hx * wx * 64

    def uni(k_, shape, fan_in):
        bound = 1.0 / float(fan_in) ** 0.5
        return jax.random.uniform(k_, shape, jnp.float32, -bound, bound)

    ks = jax.random.split(key, 14)
    return {
        "w_conv1": uni(ks[0], (32, C, 8, 8), C * 8 * 8),
        "b_conv1": uni(ks[1], (32,), C * 8 * 8),
        "w_conv2": uni(ks[2], (64, 32, 4, 4), 32 * 4 * 4),
        "b_conv2": uni(ks[3], (64,), 32 * 4 * 4),
        "w_conv3": uni(ks[4], (64, 64, 3, 3), 64 * 3 * 3),
        "b_conv3": uni(ks[5], (64,), 64 * 3 * 3),
        "w_fc1": uni(ks[6], (fc_in, 256), fc_in),
        "b_fc1": uni(ks[7], (1, 256), fc_in),
        "w_fc2": uni(ks[8], (256, 512), 256),
        "b_fc2": uni(ks[9], (1, 512), 256),
        "w_value": uni(ks[10], (512, 1), 512),
        "b_value": uni(ks[11], (1, 1), 512),
        "w_prob": uni(ks[12], (512, output_dims), 512),
        "b_prob": uni(ks[13], (1, output_dims), 512),
    }


def pack_params(params, input_dims, output_dims):
    C, H, W = input_dims
    Ho1, Wo1 = conv_out_size(H, 8, 4), conv_out_size(W, 8, 4)
    Ho2, Wo2 = conv_out_size(Ho1, 4, 2), conv_out_size(Wo1, 4, 2)
    Ho3, Wo3 = conv_out_size(Ho2, 3, 1), conv_out_size(Wo2, 3, 1)
    P3 = Ho3 * Wo3
    A = output_dims
    NH = ((A + 1 + 127) // 128) * 128

    # conv1 as an im2col matmul, columns (c, kh, kw); 32 output channels
    # replicated x4 along lanes so conv2's (kw-offset, cin) patch groups are
    # assembled with lane-aligned selects only.
    w1 = params["w_conv1"].reshape(32, C * 64).T                  # (C*64, 32)
    # conv2 weight rows in (kh, kw, cin) order; 64 output channels replicated
    # x2 along lanes for conv3's patch groups.
    w2 = params["w_conv2"].transpose(2, 3, 1, 0).reshape(512, 64)
    # conv3 weight rows in (kh, kw, cin) order; pad 64 zero rows because the
    # 9th kernel offset occupies a full 128-lane patch group whose upper half
    # is an (ignored) replicated channel copy.
    w3 = params["w_conv3"].transpose(2, 3, 1, 0).reshape(576, 64)
    w3 = jnp.concatenate([w3, jnp.zeros((64, 64), jnp.float32)], axis=0)

    wh = jnp.concatenate([params["w_prob"], params["w_value"]], axis=1)  # (512, A+1)
    bh = jnp.concatenate([params["b_prob"], params["b_value"]], axis=1)  # (1, A+1)

    return {
        "w1": jnp.tile(w1, (1, 4)),                                      # (C*64, 128)
        "b1": jnp.tile(params["b_conv1"].reshape(1, 32), (1, 4)),        # (1, 128)
        "w2": jnp.tile(w2, (1, 2)),                                      # (512, 128)
        "b2": jnp.tile(params["b_conv2"].reshape(1, 64), (1, 2)),        # (1, 128)
        "w3": w3,                                                        # (640, 64)
        "b3": params["b_conv3"].reshape(1, 64),
        # PyTorch flatten of (1, 64, Ho3, Wo3) is (c, i, j); regroup rows to
        # (pos, c) so fc1 contracts against the kernel's (pos, cout) conv3 act.
        "wf1": params["w_fc1"].reshape(64, P3, 256)
                              .transpose(1, 0, 2).reshape(P3 * 64, 256),
        "bf1": params["b_fc1"],
        "wf2": params["w_fc2"],
        "bf2": params["b_fc2"],
        # fused heads, zero-padded to a full 128-lane block:
        # lanes [0, A) actor logits, lane A critic value, rest zero.
        "wh": jnp.pad(wh, ((0, 0), (0, NH - (A + 1)))),                  # (512, NH)
        "bh": jnp.pad(bh, ((0, 0), (0, NH - (A + 1)))),                  # (1, NH)
    }


# ---------------------------------------------------------------------------
# Pure-JAX reference (independent conv path via lax.conv_general_dilated)
# ---------------------------------------------------------------------------
def reference_forward(params, x_chw):
    x = x_chw[None]

    def conv(x_, w, b, s):
        y = lax.conv_general_dilated(
            x_, w, (s, s), "VALID", dimension_numbers=("NCHW", "OIHW", "NCHW"))
        return jnp.maximum(y + b[None, :, None, None], 0.0)

    h = conv(x, params["w_conv1"], params["b_conv1"], 4)
    h = conv(h, params["w_conv2"], params["b_conv2"], 2)
    h = conv(h, params["w_conv3"], params["b_conv3"], 1)
    feat = h.reshape(1, -1)
    h1 = jnp.maximum(feat @ params["w_fc1"] + params["b_fc1"], 0.0)
    h2 = h1 @ params["w_fc2"] + params["b_fc2"]
    probs = jax.nn.softmax(h2 @ params["w_prob"] + params["b_prob"], axis=-1)
    value = h2 @ params["w_value"] + params["b_value"]
    return probs, value


if __name__ == "__main__":
    input_dims = (4, 36, 36)   # stacked-frame obs -> 8x8 -> 3x3 -> 1x1 spatial
    output_dims = 6

    key = jax.random.PRNGKey(0)
    k_params, k_x = jax.random.split(key)
    params = init_params(k_params, input_dims, output_dims)
    x = jax.random.uniform(k_x, input_dims, jnp.float32)

    packed = pack_params(params, input_dims, output_dims)
    fwd = jax.jit(functools.partial(forward, n_actions=output_dims))
    probs, value = fwd(packed, x)
    probs, value = jax.block_until_ready((probs, value))

    ref_probs, ref_value = reference_forward(params, x)
    assert probs.shape == (1, output_dims) and value.shape == (1, 1)
    assert jnp.allclose(probs, ref_probs, rtol=1e-4, atol=1e-4)
    assert jnp.allclose(value, ref_value, rtol=1e-4, atol=1e-4)
    assert jnp.allclose(jnp.sum(probs), 1.0, atol=1e-5)

    print("KERNEL_OK")
</pallas_src>

<mosaic_0001>
module attributes {stable_mosaic.version = 11 : i64} {
  func.func @_fused_kernel(%arg0: i32, %arg1: memref<64x256xf32, #tpu.memory_space<vmem>>, %arg2: memref<256x128xf32, #tpu.memory_space<vmem>>, %arg3: memref<1x128xf32, #tpu.memory_space<vmem>>, %arg4: memref<512x128xf32, #tpu.memory_space<vmem>>, %arg5: memref<1x128xf32, #tpu.memory_space<vmem>>, %arg6: memref<640x64xf32, #tpu.memory_space<vmem>>, %arg7: memref<1x64xf32, #tpu.memory_space<vmem>>, %arg8: memref<64x256xf32, #tpu.memory_space<vmem>>, %arg9: memref<1x256xf32, #tpu.memory_space<vmem>>, %arg10: memref<1x512xf32, #tpu.memory_space<vmem>>, %arg11: memref<1x128xf32, #tpu.memory_space<vmem>>, %arg12: memref<256x512xf32, #tpu.memory_space<any>>, %arg13: memref<512x128xf32, #tpu.memory_space<any>>, %arg14: memref<1x128xf32, #tpu.memory_space<vmem>>, %arg15: memref<64x128xf32, #tpu.memory_space<vmem>>, %arg16: memref<9x512xf32, #tpu.memory_space<vmem>>, %arg17: memref<9x128xf32, #tpu.memory_space<vmem>>, %arg18: memref<1x640xf32, #tpu.memory_space<vmem>>, %arg19: memref<256x512xf32, #tpu.memory_space<vmem>>, %arg20: memref<512x128xf32, #tpu.memory_space<vmem>>, %arg21: memref<2x!tpu.dma_semaphore, #tpu.memory_space<semaphore_mem>>) attributes {dimension_semantics = [#tpu.dimension_semantics<arbitrary>], iteration_bounds = array<i64: 1>, scalar_prefetch = 0 : i64, scratch_operands = 7 : i64, tpu.core_type = #tpu.core_type<tc>, window_params = [{pipeline_mode = #tpu.pipeline_mode<synchronous>, transform_indices = @transform_0, window_bounds = array<i64: 64, 256>}, {pipeline_mode = #tpu.pipeline_mode<synchronous>, transform_indices = @transform_1, window_bounds = array<i64: 256, 128>}, {pipeline_mode = #tpu.pipeline_mode<synchronous>, transform_indices = @transform_2, window_bounds = array<i64: 1, 128>}, {pipeline_mode = #tpu.pipeline_mode<synchronous>, transform_indices = @transform_3, window_bounds = array<i64: 512, 128>}, {pipeline_mode = #tpu.pipeline_mode<synchronous>, transform_indices = @transform_4, window_bounds = array<i64: 1, 128>}, {pipeline_mode = #tpu.pipeline_mode<synchronous>, transform_indices = @transform_5, window_bounds = array<i64: 640, 64>}, {pipeline_mode = #tpu.pipeline_mode<synchronous>, transform_indices = @transform_6, window_bounds = array<i64: 1, 64>}, {pipeline_mode = #tpu.pipeline_mode<synchronous>, transform_indices = @transform_7, window_bounds = array<i64: 64, 256>}, {pipeline_mode = #tpu.pipeline_mode<synchronous>, transform_indices = @transform_8, window_bounds = array<i64: 1, 256>}, {pipeline_mode = #tpu.pipeline_mode<synchronous>, transform_indices = @transform_9, window_bounds = array<i64: 1, 512>}, {pipeline_mode = #tpu.pipeline_mode<synchronous>, transform_indices = @transform_10, window_bounds = array<i64: 1, 128>}, {}, {}, {pipeline_mode = #tpu.pipeline_mode<synchronous>, transform_indices = @transform_13, window_bounds = array<i64: 1, 128>}]} {
    %c0_i32 = arith.constant 0 : i32
    %0 = tpu.memref_slice %arg21[%c0_i32] : memref<2x!tpu.dma_semaphore, #tpu.memory_space<semaphore_mem>> -> memref<1x!tpu.dma_semaphore, #tpu.memory_space<semaphore_mem>>
    %1 = tpu.memref_squeeze %0 : memref<1x!tpu.dma_semaphore, #tpu.memory_space<semaphore_mem>> -> memref<!tpu.dma_semaphore, #tpu.memory_space<semaphore_mem>>
    tpu.enqueue_dma source(%arg12 : memref<256x512xf32, #tpu.memory_space<any>>) target(%arg19 : memref<256x512xf32, #tpu.memory_space<vmem>>) target_semaphore(%1 : memref<!tpu.dma_semaphore, #tpu.memory_space<semaphore_mem>>)
    %c1_i32 = arith.constant 1 : i32
    %2 = tpu.memref_slice %arg21[%c1_i32] : memref<2x!tpu.dma_semaphore, #tpu.memory_space<semaphore_mem>> -> memref<1x!tpu.dma_semaphore, #tpu.memory_space<semaphore_mem>>
    %3 = tpu.memref_squeeze %2 : memref<1x!tpu.dma_semaphore, #tpu.memory_space<semaphore_mem>> -> memref<!tpu.dma_semaphore, #tpu.memory_space<semaphore_mem>>
    tpu.enqueue_dma source(%arg13 : memref<512x128xf32, #tpu.memory_space<any>>) target(%arg20 : memref<512x128xf32, #tpu.memory_space<vmem>>) target_semaphore(%3 : memref<!tpu.dma_semaphore, #tpu.memory_space<semaphore_mem>>)
    %c0 = arith.constant 0 : index
    %c0_0 = arith.constant 0 : index
    %4 = vector.load %arg1[%c0, %c0_0] : memref<64x256xf32, #tpu.memory_space<vmem>>, vector<64x256xf32>
    %c0_1 = arith.constant 0 : index
    %c0_2 = arith.constant 0 : index
    %5 = vector.load %arg2[%c0_1, %c0_2] : memref<256x128xf32, #tpu.memory_space<vmem>>, vector<256x128xf32>
    %cst = arith.constant dense<0.000000e+00> : vector<64x128xf32>
    %6 = tpu.matmul %4, %5, %cst {dimension_numbers = #tpu.dot_dimension_numbers<[1], [0], [0], [1], [0, 0, 1, 1], [], []>} : vector<64x256xf32>, vector<256x128xf32>, vector<64x128xf32> -> vector<64x128xf32>
    %c0_3 = arith.constant 0 : index
    %c0_4 = arith.constant 0 : index
    %7 = vector.load %arg3[%c0_3, %c0_4] : memref<1x128xf32, #tpu.memory_space<vmem>>, vector<1x128xf32>
    %8 = vector.broadcast %7 : vector<1x128xf32> to vector<64x128xf32>
    %9 = arith.addf %6, %8 : vector<64x128xf32>
    %cst_5 = arith.constant 0.000000e+00 : f32
    %10 = vector.broadcast %cst_5 : f32 to vector<64x128xf32>
    %11 = arith.maximumf %9, %10 : vector<64x128xf32>
    %c0_6 = arith.constant 0 : index
    %c0_7 = arith.constant 0 : index
    %12 = vector.load %arg15[%c0_6, %c0_7] : memref<64x128xf32, #tpu.memory_space<vmem>>, vector<64x128xf32>
    tpu.vector_store %arg15[%c0_6, %c0_7], %11 {strides = array<i32>} : memref<64x128xf32, #tpu.memory_space<vmem>>, vector<64x128xf32>,
    %13 = tpu.iota {dimensions = array<i32: 1>} : vector<3x128xi32>
    %c32_i32 = arith.constant 32 : i32
    %14 = vector.broadcast %c32_i32 : i32 to vector<3x128xi32>
    %15 = arith.cmpi slt, %13, %14 : vector<3x128xi32>
    %c64_i32 = arith.constant 64 : i32
    %16 = vector.broadcast %c64_i32 : i32 to vector<3x128xi32>
    %17 = arith.cmpi slt, %13, %16 : vector<3x128xi32>
    %c96_i32 = arith.constant 96 : i32
    %18 = vector.broadcast %c96_i32 : i32 to vector<3x128xi32>
    %19 = arith.cmpi slt, %13, %18 : vector<3x128xi32>
    %c0_8 = arith.constant 0 : index
    %c0_9 = arith.constant 0 : index
    %20 = tpu.strided_load %arg15[%c0_8, %c0_9] {strides = array<i32: 2, 1>} : memref<64x128xf32, #tpu.memory_space<vmem>>, vector<3x128xf32>
    %c1 = arith.constant 1 : index
    %c0_10 = arith.constant 0 : index
    %21 = tpu.strided_load %arg15[%c1, %c0_10] {strides = array<i32: 2, 1>} : memref<64x128xf32, #tpu.memory_space<vmem>>, vector<3x128xf32>
    %c2 = arith.constant 2 : index
    %c0_11 = arith.constant 0 : index
    %22 = tpu.strided_load %arg15[%c2, %c0_11] {strides = array<i32: 2, 1>} : memref<64x128xf32, #tpu.memory_space<vmem>>, vector<3x128xf32>
    %c3 = arith.constant 3 : index
    %c0_12 = arith.constant 0 : index
    %23 = tpu.strided_load %arg15[%c3, %c0_12] {strides = array<i32: 2, 1>} : memref<64x128xf32, #tpu.memory_space<vmem>>, vector<3x128xf32>
    %24 = arith.select %19, %22, %23 : vector<3x128xi1>, vector<3x128xf32>
    %25 = arith.select %17, %21, %24 : vector<3x128xi1>, vector<3x128xf32>
    %26 = arith.select %15, %20, %25 : vector<3x128xi1>, vector<3x128xf32>
    %c0_13 = arith.constant 0 : index
    %c0_14 = arith.constant 0 : index
    %27 = vector.load %arg16[%c0_13, %c0_14] : memref<9x512xf32, #tpu.memory_space<vmem>>, vector<3x128xf32>
    tpu.vector_store %arg16[%c0_13, %c0_14], %26 {strides = array<i32>} : memref<9x512xf32, #tpu.memory_space<vmem>>, vector<3x128xf32>,
    %c8 = arith.constant 8 : index
    %c0_15 = arith.constant 0 : index
    %28 = tpu.strided_load %arg15[%c8, %c0_15] {strides = array<i32: 2, 1>} : memref<64x128xf32, #tpu.memory_space<vmem>>, vector<3x128xf32>
    %c9 = arith.constant 9 : index
    %c0_16 = arith.constant 0 : index
    %29 = tpu.strided_load %arg15[%c9, %c0_16] {strides = array<i32: 2, 1>} : memref<64x128xf32, #tpu.memory_space<vmem>>, vector<3x128xf32>
    %c10 = arith.constant 10 : index
    %c0_17 = arith.constant 0 : index
    %30 = tpu.strided_load %arg15[%c10, %c0_17] {strides = array<i32: 2, 1>} : memref<64x128xf32, #tpu.memory_space<vmem>>, vector<3x128xf32>
    %c11 = arith.constant 11 : index
    %c0_18 = arith.constant 0 : index
    %31 = tpu.strided_load %arg15[%c11, %c0_18] {strides = array<i32: 2, 1>} : memref<64x128xf32, #tpu.memory_space<vmem>>, vector<3x128xf32>
    %32 = arith.select %19, %30, %31 : vector<3x128xi1>, vector<3x128xf32>
    %33 = arith.select %17, %29, %32 : vector<3x128xi1>, vector<3x128xf32>
    %34 = arith.select %15, %28, %33 : vector<3x128xi1>, vector<3x128xf32>
    %c0_19 = arith.constant 0 : index
    %c128 = arith.constant 128 : index
    %35 = vector.load %arg16[%c0_19, %c128] : memref<9x512xf32, #tpu.memory_space<vmem>>, vector<3x128xf32>
    tpu.vector_store %arg16[%c0_19, %c128], %34 {strides = array<i32>} : memref<9x512xf32, #tpu.memory_space<vmem>>, vector<3x128xf32>,
    %c16 = arith.constant 16 : index
    %c0_20 = arith.constant 0 : index
    %36 = tpu.strided_load %arg15[%c16, %c0_20] {strides = array<i32: 2, 1>} : memref<64x128xf32, #tpu.memory_space<vmem>>, vector<3x128xf32>
    %c17 = arith.constant 17 : index
    %c0_21 = arith.constant 0 : index
    %37 = tpu.strided_load %arg15[%c17, %c0_21] {strides = array<i32: 2, 1>} : memref<64x128xf32, #tpu.memory_space<vmem>>, vector<3x128xf32>
    %c18 = arith.constant 18 : index
    %c0_22 = arith.constant 0 : index
    %38 = tpu.strided_load %arg15[%c18, %c0_22] {strides = array<i32: 2, 1>} : memref<64x128xf32, #tpu.memory_space<vmem>>, vector<3x128xf32>
    %c19 = arith.constant 19 : index
    %c0_23 = arith.constant 0 : index
    %39 = tpu.strided_load %arg15[%c19, %c0_23] {strides = array<i32: 2, 1>} : memref<64x128xf32, #tpu.memory_space<vmem>>, vector<3x128xf32>
    %40 = arith.select %19, %38, %39 : vector<3x128xi1>, vector<3x128xf32>
    %41 = arith.select %17, %37, %40 : vector<3x128xi1>, vector<3x128xf32>
    %42 = arith.select %15, %36, %41 : vector<3x128xi1>, vector<3x128xf32>
    %c0_24 = arith.constant 0 : index
    %c256 = arith.constant 256 : index
    %43 = vector.load %arg16[%c0_24, %c256] : memref<9x512xf32, #tpu.memory_space<vmem>>, vector<3x128xf32>
    tpu.vector_store %arg16[%c0_24, %c256], %42 {strides = array<i32>} : memref<9x512xf32, #tpu.memory_space<vmem>>, vector<3x128xf32>,
    %c24 = arith.constant 24 : index
    %c0_25 = arith.constant 0 : index
    %44 = tpu.strided_load %arg15[%c24, %c0_25] {strides = array<i32: 2, 1>} : memref<64x128xf32, #tpu.memory_space<vmem>>, vector<3x128xf32>
    %c25 = arith.constant 25 : index
    %c0_26 = arith.constant 0 : index
    %45 = tpu.strided_load %arg15[%c25, %c0_26] {strides = array<i32: 2, 1>} : memref<64x128xf32, #tpu.memory_space<vmem>>, vector<3x128xf32>
    %c26 = arith.constant 26 : index
    %c0_27 = arith.constant 0 : index
    %46 = tpu.strided_load %arg15[%c26, %c0_27] {strides = array<i32: 2, 1>} : memref<64x128xf32, #tpu.memory_space<vmem>>, vector<3x128xf32>
    %c27 = arith.constant 27 : index
    %c0_28 = arith.constant 0 : index
    %47 = tpu.strided_load %arg15[%c27, %c0_28] {strides = array<i32: 2, 1>} : memref<64x128xf32, #tpu.memory_space<vmem>>, vector<3x128xf32>
    %48 = arith.select %19, %46, %47 : vector<3x128xi1>, vector<3x128xf32>
    %49 = arith.select %17, %45, %48 : vector<3x128xi1>, vector<3x128xf32>
    %50 = arith.select %15, %44, %49 : vector<3x128xi1>, vector<3x128xf32>
    %c0_29 = arith.constant 0 : index
    %c384 = arith.constant 384 : index
    %51 = vector.load %arg16[%c0_29, %c384] : memref<9x512xf32, #tpu.memory_space<vmem>>, vector<3x128xf32>
    tpu.vector_store %arg16[%c0_29, %c384], %50 {strides = array<i32>} : memref<9x512xf32, #tpu.memory_space<vmem>>, vector<3x128xf32>,
    %c16_30 = arith.constant 16 : index
    %c0_31 = arith.constant 0 : index
    %52 = tpu.strided_load %arg15[%c16_30, %c0_31] {strides = array<i32: 2, 1>} : memref<64x128xf32, #tpu.memory_space<vmem>>, vector<3x128xf32>
    %c17_32 = arith.constant 17 : index
    %c0_33 = arith.constant 0 : index
    %53 = tpu.strided_load %arg15[%c17_32, %c0_33] {strides = array<i32: 2, 1>} : memref<64x128xf32, #tpu.memory_space<vmem>>, vector<3x128xf32>
    %c18_34 = arith.constant 18 : index
    %c0_35 = arith.constant 0 : index
    %54 = tpu.strided_load %arg15[%c18_34, %c0_35] {strides = array<i32: 2, 1>} : memref<64x128xf32, #tpu.memory_space<vmem>>, vector<3x128xf32>
    %c19_36 = arith.constant 19 : index
    %c0_37 = arith.constant 0 : index
    %55 = tpu.strided_load %arg15[%c19_36, %c0_37] {strides = array<i32: 2, 1>} : memref<64x128xf32, #tpu.memory_space<vmem>>, vector<3x128xf32>
    %56 = arith.select %19, %54, %55 : vector<3x128xi1>, vector<3x128xf32>
    %57 = arith.select %17, %53, %56 : vector<3x128xi1>, vector<3x128xf32>
    %58 = arith.select %15, %52, %57 : vector<3x128xi1>, vector<3x128xf32>
    %c3_38 = arith.constant 3 : index
    %c0_39 = arith.constant 0 : index
    %59 = vector.load %arg16[%c3_38, %c0_39] : memref<9x512xf32, #tpu.memory_space<vmem>>, vector<3x128xf32>
    tpu.vector_store %arg16[%c3_38, %c0_39], %58 {strides = array<i32>} : memref<9x512xf32, #tpu.memory_space<vmem>>, vector<3x128xf32>,
    %c24_40 = arith.constant 24 : index
    %c0_41 = arith.constant 0 : index
    %60 = tpu.strided_load %arg15[%c24_40, %c0_41] {strides = array<i32: 2, 1>} : memref<64x128xf32, #tpu.memory_space<vmem>>, vector<3x128xf32>
    %c25_42 = arith.constant 25 : index
    %c0_43 = arith.constant 0 : index
    %61 = tpu.strided_load %arg15[%c25_42, %c0_43] {strides = array<i32: 2, 1>} : memref<64x128xf32, #tpu.memory_space<vmem>>, vector<3x128xf32>
    %c26_44 = arith.constant 26 : index
    %c0_45 = arith.constant 0 : index
    %62 = tpu.strided_load %arg15[%c26_44, %c0_45] {strides = array<i32: 2, 1>} : memref<64x128xf32, #tpu.memory_space<vmem>>, vector<3x128xf32>
    %c27_46 = arith.constant 27 : index
    %c0_47 = arith.constant 0 : index
    %63 = tpu.strided_load %arg15[%c27_46, %c0_47] {strides = array<i32: 2, 1>} : memref<64x128xf32, #tpu.memory_space<vmem>>, vector<3x128xf32>
    %64 = arith.select %19, %62, %63 : vector<3x128xi1>, vector<3x128xf32>
    %65 = arith.select %17, %61, %64 : vector<3x128xi1>, vector<3x128xf32>
    %66 = arith.select %15, %60, %65 : vector<3x128xi1>, vector<3x128xf32>
    %c3_48 = arith.constant 3 : index
    %c128_49 = arith.constant 128 : index
    %67 = vector.load %arg16[%c3_48, %c128_49] : memref<9x512xf32, #tpu.memory_space<vmem>>, vector<3x128xf32>
    tpu.vector_store %arg16[%c3_48, %c128_49], %66 {strides = array<i32>} : memref<9x512xf32, #tpu.memory_space<vmem>>, vector<3x128xf32>,
    %c32 = arith.constant 32 : index
    %c0_50 = arith.constant 0 : index
    %68 = tpu.strided_load %arg15[%c32, %c0_50] {strides = array<i32: 2, 1>} : memref<64x128xf32, #tpu.memory_space<vmem>>, vector<3x128xf32>
    %c33 = arith.constant 33 : index
    %c0_51 = arith.constant 0 : index
    %69 = tpu.strided_load %arg15[%c33, %c0_51] {strides = array<i32: 2, 1>} : memref<64x128xf32, #tpu.memory_space<vmem>>, vector<3x128xf32>
    %c34 = arith.constant 34 : index
    %c0_52 = arith.constant 0 : index
    %70 = tpu.strided_load %arg15[%c34, %c0_52] {strides = array<i32: 2, 1>} : memref<64x128xf32, #tpu.memory_space<vmem>>, vector<3x128xf32>
    %c35 = arith.constant 35 : index
    %c0_53 = arith.constant 0 : index
    %71 = tpu.strided_load %arg15[%c35, %c0_53] {strides = array<i32: 2, 1>} : memref<64x128xf32, #tpu.memory_space<vmem>>, vector<3x128xf32>
    %72 = arith.select %19, %70, %71 : vector<3x128xi1>, vector<3x128xf32>
    %73 = arith.select %17, %69, %72 : vector<3x128xi1>, vector<3x128xf32>
    %74 = arith.select %15, %68, %73 : vector<3x128xi1>, vector<3x128xf32>
    %c3_54 = arith.constant 3 : index
    %c256_55 = arith.constant 256 : index
    %75 = vector.load %arg16[%c3_54, %c256_55] : memref<9x512xf32, #tpu.memory_space<vmem>>, vector<3x128xf32>
    tpu.vector_store %arg16[%c3_54, %c256_55], %74 {strides = array<i32>} : memref<9x512xf32, #tpu.memory_space<vmem>>, vector<3x128xf32>,
    %c40 = arith.constant 40 : index
    %c0_56 = arith.constant 0 : index
    %76 = tpu.strided_load %arg15[%c40, %c0_56] {strides = array<i32: 2, 1>} : memref<64x128xf32, #tpu.memory_space<vmem>>, vector<3x128xf32>
    %c41 = arith.constant 41 : index
    %c0_57 = arith.constant 0 : index
    %77 = tpu.strided_load %arg15[%c41, %c0_57] {strides = array<i32: 2, 1>} : memref<64x128xf32, #tpu.memory_space<vmem>>, vector<3x128xf32>
    %c42 = arith.constant 42 : index
    %c0_58 = arith.constant 0 : index
    %78 = tpu.strided_load %arg15[%c42, %c0_58] {strides = array<i32: 2, 1>} : memref<64x128xf32, #tpu.memory_space<vmem>>, vector<3x128xf32>
    %c43 = arith.constant 43 : index
    %c0_59 = arith.constant 0 : index
    %79 = tpu.strided_load %arg15[%c43, %c0_59] {strides = array<i32: 2, 1>} : memref<64x128xf32, #tpu.memory_space<vmem>>, vector<3x128xf32>
    %80 = arith.select %19, %78, %79 : vector<3x128xi1>, vector<3x128xf32>
    %81 = arith.select %17, %77, %80 : vector<3x128xi1>, vector<3x128xf32>
    %82 = arith.select %15, %76, %81 : vector<3x128xi1>, vector<3x128xf32>
    %c3_60 = arith.constant 3 : index
    %c384_61 = arith.constant 384 : index
    %83 = vector.load %arg16[%c3_60, %c384_61] : memref<9x512xf32, #tpu.memory_space<vmem>>, vector<3x128xf32>
    tpu.vector_store %arg16[%c3_60, %c384_61], %82 {strides = array<i32>} : memref<9x512xf32, #tpu.memory_space<vmem>>, vector<3x128xf32>,
    %c32_62 = arith.constant 32 : index
    %c0_63 = arith.constant 0 : index
    %84 = tpu.strided_load %arg15[%c32_62, %c0_63] {strides = array<i32: 2, 1>} : memref<64x128xf32, #tpu.memory_space<vmem>>, vector<3x128xf32>
    %c33_64 = arith.constant 33 : index
    %c0_65 = arith.constant 0 : index
    %85 = tpu.strided_load %arg15[%c33_64, %c0_65] {strides = array<i32: 2, 1>} : memref<64x128xf32, #tpu.memory_space<vmem>>, vector<3x128xf32>
    %c34_66 = arith.constant 34 : index
    %c0_67 = arith.constant 0 : index
    %86 = tpu.strided_load %arg15[%c34_66, %c0_67] {strides = array<i32: 2, 1>} : memref<64x128xf32, #tpu.memory_space<vmem>>, vector<3x128xf32>
    %c35_68 = arith.constant 35 : index
    %c0_69 = arith.constant 0 : index
    %87 = tpu.strided_load %arg15[%c35_68, %c0_69] {strides = array<i32: 2, 1>} : memref<64x128xf32, #tpu.memory_space<vmem>>, vector<3x128xf32>
    %88 = arith.select %19, %86, %87 : vector<3x128xi1>, vector<3x128xf32>
    %89 = arith.select %17, %85, %88 : vector<3x128xi1>, vector<3x128xf32>
    %90 = arith.select %15, %84, %89 : vector<3x128xi1>, vector<3x128xf32>
    %c6 = arith.constant 6 : index
    %c0_70 = arith.constant 0 : index
    %91 = vector.load %arg16[%c6, %c0_70] : memref<9x512xf32, #tpu.memory_space<vmem>>, vector<3x128xf32>
    tpu.vector_store %arg16[%c6, %c0_70], %90 {strides = array<i32>} : memref<9x512xf32, #tpu.memory_space<vmem>>, vector<3x128xf32>,
    %c40_71 = arith.constant 40 : index
    %c0_72 = arith.constant 0 : index
    %92 = tpu.strided_load %arg15[%c40_71, %c0_72] {strides = array<i32: 2, 1>} : memref<64x128xf32, #tpu.memory_space<vmem>>, vector<3x128xf32>
    %c41_73 = arith.constant 41 : index
    %c0_74 = arith.constant 0 : index
    %93 = tpu.strided_load %arg15[%c41_73, %c0_74] {strides = array<i32: 2, 1>} : memref<64x128xf32, #tpu.memory_space<vmem>>, vector<3x128xf32>
    %c42_75 = arith.constant 42 : index
    %c0_76 = arith.constant 0 : index
    %94 = tpu.strided_load %arg15[%c42_75, %c0_76] {strides = array<i32: 2, 1>} : memref<64x128xf32, #tpu.memory_space<vmem>>, vector<3x128xf32>
    %c43_77 = arith.constant 43 : index
    %c0_78 = arith.constant 0 : index
    %95 = tpu.strided_load %arg15[%c43_77, %c0_78] {strides = array<i32: 2, 1>} : memref<64x128xf32, #tpu.memory_space<vmem>>, vector<3x128xf32>
    %96 = arith.select %19, %94, %95 : vector<3x128xi1>, vector<3x128xf32>
    %97 = arith.select %17, %93, %96 : vector<3x128xi1>, vector<3x128xf32>
    %98 = arith.select %15, %92, %97 : vector<3x128xi1>, vector<3x128xf32>
    %c6_79 = arith.constant 6 : index
    %c128_80 = arith.constant 128 : index
    %99 = vector.load %arg16[%c6_79, %c128_80] : memref<9x512xf32, #tpu.memory_space<vmem>>, vector<3x128xf32>
    tpu.vector_store %arg16[%c6_79, %c128_80], %98 {strides = array<i32>} : memref<9x512xf32, #tpu.memory_space<vmem>>, vector<3x128xf32>,
    %c48 = arith.constant 48 : index
    %c0_81 = arith.constant 0 : index
    %100 = tpu.strided_load %arg15[%c48, %c0_81] {strides = array<i32: 2, 1>} : memref<64x128xf32, #tpu.memory_space<vmem>>, vector<3x128xf32>
    %c49 = arith.constant 49 : index
    %c0_82 = arith.constant 0 : index
    %101 = tpu.strided_load %arg15[%c49, %c0_82] {strides = array<i32: 2, 1>} : memref<64x128xf32, #tpu.memory_space<vmem>>, vector<3x128xf32>
    %c50 = arith.constant 50 : index
    %c0_83 = arith.constant 0 : index
    %102 = tpu.strided_load %arg15[%c50, %c0_83] {strides = array<i32: 2, 1>} : memref<64x128xf32, #tpu.memory_space<vmem>>, vector<3x128xf32>
    %c51 = arith.constant 51 : index
    %c0_84 = arith.constant 0 : index
    %103 = tpu.strided_load %arg15[%c51, %c0_84] {strides = array<i32: 2, 1>} : memref<64x128xf32, #tpu.memory_space<vmem>>, vector<3x128xf32>
    %104 = arith.select %19, %102, %103 : vector<3x128xi1>, vector<3x128xf32>
    %105 = arith.select %17, %101, %104 : vector<3x128xi1>, vector<3x128xf32>
    %106 = arith.select %15, %100, %105 : vector<3x128xi1>, vector<3x128xf32>
    %c6_85 = arith.constant 6 : index
    %c256_86 = arith.constant 256 : index
    %107 = vector.load %arg16[%c6_85, %c256_86] : memref<9x512xf32, #tpu.memory_space<vmem>>, vector<3x128xf32>
    tpu.vector_store %arg16[%c6_85, %c256_86], %106 {strides = array<i32>} : memref<9x512xf32, #tpu.memory_space<vmem>>, vector<3x128xf32>,
    %c56 = arith.constant 56 : index
    %c0_87 = arith.constant 0 : index
    %108 = tpu.strided_load %arg15[%c56, %c0_87] {strides = array<i32: 2, 1>} : memref<64x128xf32, #tpu.memory_space<vmem>>, vector<3x128xf32>
    %c57 = arith.constant 57 : index
    %c0_88 = arith.constant 0 : index
    %109 = tpu.strided_load %arg15[%c57, %c0_88] {strides = array<i32: 2, 1>} : memref<64x128xf32, #tpu.memory_space<vmem>>, vector<3x128xf32>
    %c58 = arith.constant 58 : index
    %c0_89 = arith.constant 0 : index
    %110 = tpu.strided_load %arg15[%c58, %c0_89] {strides = array<i32: 2, 1>} : memref<64x128xf32, #tpu.memory_space<vmem>>, vector<3x128xf32>
    %c59 = arith.constant 59 : index
    %c0_90 = arith.constant 0 : index
    %111 = tpu.strided_load %arg15[%c59, %c0_90] {strides = array<i32: 2, 1>} : memref<64x128xf32, #tpu.memory_space<vmem>>, vector<3x128xf32>
    %112 = arith.select %19, %110, %111 : vector<3x128xi1>, vector<3x128xf32>
    %113 = arith.select %17, %109, %112 : vector<3x128xi1>, vector<3x128xf32>
    %114 = arith.select %15, %108, %113 : vector<3x128xi1>, vector<3x128xf32>
    %c6_91 = arith.constant 6 : index
    %c384_92 = arith.constant 384 : index
    %115 = vector.load %arg16[%c6_91, %c384_92] : memref<9x512xf32, #tpu.memory_space<vmem>>, vector<3x128xf32>
    tpu.vector_store %arg16[%c6_91, %c384_92], %114 {strides = array<i32>} : memref<9x512xf32, #tpu.memory_space<vmem>>, vector<3x128xf32>,
    %c0_93 = arith.constant 0 : index
    %c0_94 = arith.constant 0 : index
    %116 = vector.load %arg16[%c0_93, %c0_94] : memref<9x512xf32, #tpu.memory_space<vmem>>, vector<9x512xf32>
    %c0_95 = arith.constant 0 : index
    %c0_96 = arith.constant 0 : index
    %117 = vector.load %arg4[%c0_95, %c0_96] : memref<512x128xf32, #tpu.memory_space<vmem>>, vector<512x128xf32>
    %cst_97 = arith.constant dense<0.000000e+00> : vector<9x128xf32>
    %118 = tpu.matmul %116, %117, %cst_97 {dimension_numbers = #tpu.dot_dimension_numbers<[1], [0], [0], [1], [0, 0, 1, 1], [], []>} : vector<9x512xf32>, vector<512x128xf32>, vector<9x128xf32> -> vector<9x128xf32>
    %c0_98 = arith.constant 0 : index
    %c0_99 = arith.constant 0 : index
    %119 = vector.load %arg5[%c0_98, %c0_99] : memref<1x128xf32, #tpu.memory_space<vmem>>, vector<1x128xf32>
    %120 = vector.broadcast %119 : vector<1x128xf32> to vector<9x128xf32>
    %121 = arith.addf %118, %120 : vector<9x128xf32>
    %cst_100 = arith.constant 0.000000e+00 : f32
    %122 = vector.broadcast %cst_100 : f32 to vector<9x128xf32>
    %123 = arith.maximumf %121, %122 : vector<9x128xf32>
    %c0_101 = arith.constant 0 : index
    %c0_102 = arith.constant 0 : index
    %124 = vector.load %arg17[%c0_101, %c0_102] : memref<9x128xf32, #tpu.memory_space<vmem>>, vector<9x128xf32>
    tpu.vector_store %arg17[%c0_101, %c0_102], %123 {strides = array<i32>} : memref<9x128xf32, #tpu.memory_space<vmem>>, vector<9x128xf32>,
    %125 = tpu.iota {dimensions = array<i32: 1>} : vector<1x128xi32>
    %c64_i32_103 = arith.constant 64 : i32
    %126 = vector.broadcast %c64_i32_103 : i32 to vector<1x128xi32>
    %127 = arith.cmpi slt, %125, %126 : vector<1x128xi32>
    %c0_104 = arith.constant 0 : index
    %c0_105 = arith.constant 0 : index
    %128 = vector.load %arg17[%c0_104, %c0_105] : memref<9x128xf32, #tpu.memory_space<vmem>>, vector<1x128xf32>
    %c1_106 = arith.constant 1 : index
    %c0_107 = arith.constant 0 : index
    %129 = vector.load %arg17[%c1_106, %c0_107] : memref<9x128xf32, #tpu.memory_space<vmem>>, vector<1x128xf32>
    %130 = arith.select %127, %128, %129 : vector<1x128xi1>, vector<1x128xf32>
    %c0_108 = arith.constant 0 : index
    %c0_109 = arith.constant 0 : index
    %131 = vector.load %arg18[%c0_108, %c0_109] : memref<1x640xf32, #tpu.memory_space<vmem>>, vector<1x128xf32>
    tpu.vector_store %arg18[%c0_108, %c0_109], %130 {strides = array<i32>} : memref<1x640xf32, #tpu.memory_space<vmem>>, vector<1x128xf32>,
    %c2_110 = arith.constant 2 : index
    %c0_111 = arith.constant 0 : index
    %132 = vector.load %arg17[%c2_110, %c0_111] : memref<9x128xf32, #tpu.memory_space<vmem>>, vector<1x128xf32>
    %c3_112 = arith.constant 3 : index
    %c0_113 = arith.constant 0 : index
    %133 = vector.load %arg17[%c3_112, %c0_113] : memref<9x128xf32, #tpu.memory_space<vmem>>, vector<1x128xf32>
    %134 = arith.select %127, %132, %133 : vector<1x128xi1>, vector<1x128xf32>
    %c0_114 = arith.constant 0 : index
    %c128_115 = arith.constant 128 : index
    %135 = vector.load %arg18[%c0_114, %c128_115] : memref<1x640xf32, #tpu.memory_space<vmem>>, vector<1x128xf32>
    tpu.vector_store %arg18[%c0_114, %c128_115], %134 {strides = array<i32>} : memref<1x640xf32, #tpu.memory_space<vmem>>, vector<1x128xf32>,
    %c4 = arith.constant 4 : index
    %c0_116 = arith.constant 0 : index
    %136 = vector.load %arg17[%c4, %c0_116] : memref<9x128xf32, #tpu.memory_space<vmem>>, vector<1x128xf32>
    %c5 = arith.constant 5 : index
    %c0_117 = arith.constant 0 : index
    %137 = vector.load %arg17[%c5, %c0_117] : memref<9x128xf32, #tpu.memory_space<vmem>>, vector<1x128xf32>
    %138 = arith.select %127, %136, %137 : vector<1x128xi1>, vector<1x128xf32>
    %c0_118 = arith.constant 0 : index
    %c256_119 = arith.constant 256 : index
    %139 = vector.load %arg18[%c0_118, %c256_119] : memref<1x640xf32, #tpu.memory_space<vmem>>, vector<1x128xf32>
    tpu.vector_store %arg18[%c0_118, %c256_119], %138 {strides = array<i32>} : memref<1x640xf32, #tpu.memory_space<vmem>>, vector<1x128xf32>,
    %c6_120 = arith.constant 6 : index
    %c0_121 = arith.constant 0 : index
    %140 = vector.load %arg17[%c6_120, %c0_121] : memref<9x128xf32, #tpu.memory_space<vmem>>, vector<1x128xf32>
    %c7 = arith.constant 7 : index
    %c0_122 = arith.constant 0 : index
    %141 = vector.load %arg17[%c7, %c0_122] : memref<9x128xf32, #tpu.memory_space<vmem>>, vector<1x128xf32>
    %142 = arith.select %127, %140, %141 : vector<1x128xi1>, vector<1x128xf32>
    %c0_123 = arith.constant 0 : index
    %c384_124 = arith.constant 384 : index
    %143 = vector.load %arg18[%c0_123, %c384_124] : memref<1x640xf32, #tpu.memory_space<vmem>>, vector<1x128xf32>
    tpu.vector_store %arg18[%c0_123, %c384_124], %142 {strides = array<i32>} : memref<1x640xf32, #tpu.memory_space<vmem>>, vector<1x128xf32>,
    %c8_125 = arith.constant 8 : index
    %c0_126 = arith.constant 0 : index
    %144 = vector.load %arg17[%c8_125, %c0_126] : memref<9x128xf32, #tpu.memory_space<vmem>>, vector<1x128xf32>
    %c0_127 = arith.constant 0 : index
    %c512 = arith.constant 512 : index
    %145 = vector.load %arg18[%c0_127, %c512] : memref<1x640xf32, #tpu.memory_space<vmem>>, vector<1x128xf32>
    tpu.vector_store %arg18[%c0_127, %c512], %144 {strides = array<i32>} : memref<1x640xf32, #tpu.memory_space<vmem>>, vector<1x128xf32>,
    %c0_128 = arith.constant 0 : index
    %c0_129 = arith.constant 0 : index
    %146 = vector.load %arg18[%c0_128, %c0_129] : memref<1x640xf32, #tpu.memory_space<vmem>>, vector<1x640xf32>
    %c0_130 = arith.constant 0 : index
    %c0_131 = arith.constant 0 : index
    %147 = vector.load %arg6[%c0_130, %c0_131] : memref<640x64xf32, #tpu.memory_space<vmem>>, vector<640x64xf32>
    %cst_132 = arith.constant dense<0.000000e+00> : vector<1x64xf32>
    %148 = tpu.matmul %146, %147, %cst_132 {dimension_numbers = #tpu.dot_dimension_numbers<[1], [0], [0], [1], [0, 0, 1, 1], [], []>} : vector<1x640xf32>, vector<640x64xf32>, vector<1x64xf32> -> vector<1x64xf32>
    %c0_133 = arith.constant 0 : index
    %c0_134 = arith.constant 0 : index
    %149 = vector.load %arg7[%c0_133, %c0_134] : memref<1x64xf32, #tpu.memory_space<vmem>>, vector<1x64xf32>
    %150 = arith.addf %148, %149 : vector<1x64xf32>
    %cst_135 = arith.constant 0.000000e+00 : f32
    %151 = vector.broadcast %cst_135 : f32 to vector<1x64xf32>
    %152 = arith.maximumf %150, %151 : vector<1x64xf32>
    %c0_136 = arith.constant 0 : index
    %c0_137 = arith.constant 0 : index
    %153 = vector.load %arg8[%c0_136, %c0_137] : memref<64x256xf32, #tpu.memory_space<vmem>>, vector<64x256xf32>
    %cst_138 = arith.constant dense<0.000000e+00> : vector<1x256xf32>
    %154 = tpu.matmul %152, %153, %cst_138 {dimension_numbers = #tpu.dot_dimension_numbers<[1], [0], [0], [1], [0, 0, 1, 1], [], []>} : vector<1x64xf32>, vector<64x256xf32>, vector<1x256xf32> -> vector<1x256xf32>
    %c0_139 = arith.constant 0 : index
    %c0_140 = arith.constant 0 : index
    %155 = vector.load %arg9[%c0_139, %c0_140] : memref<1x256xf32, #tpu.memory_space<vmem>>, vector<1x256xf32>
    %156 = arith.addf %154, %155 : vector<1x256xf32>
    %cst_141 = arith.constant 0.000000e+00 : f32
    %157 = vector.broadcast %cst_141 : f32 to vector<1x256xf32>
    %158 = arith.maximumf %156, %157 : vector<1x256xf32>
    %c0_i32_142 = arith.constant 0 : i32
    %159 = tpu.memref_slice %arg21[%c0_i32_142] : memref<2x!tpu.dma_semaphore, #tpu.memory_space<semaphore_mem>> -> memref<1x!tpu.dma_semaphore, #tpu.memory_space<semaphore_mem>>
    %160 = tpu.memref_squeeze %159 : memref<1x!tpu.dma_semaphore, #tpu.memory_space<semaphore_mem>> -> memref<!tpu.dma_semaphore, #tpu.memory_space<semaphore_mem>>
    tpu.wait_dma2 semaphore(%160 : memref<!tpu.dma_semaphore, #tpu.memory_space<semaphore_mem>>) src(%arg12 : memref<256x512xf32, #tpu.memory_space<any>>) dst(%arg19 : memref<256x512xf32, #tpu.memory_space<vmem>>)
    %c0_143 = arith.constant 0 : index
    %c0_144 = arith.constant 0 : index
    %161 = vector.load %arg19[%c0_143, %c0_144] : memref<256x512xf32, #tpu.memory_space<vmem>>, vector<256x512xf32>
    %cst_145 = arith.constant dense<0.000000e+00> : vector<1x512xf32>
    %162 = tpu.matmul %158, %161, %cst_145 {dimension_numbers = #tpu.dot_dimension_numbers<[1], [0], [0], [1], [0, 0, 1, 1], [], []>} : vector<1x256xf32>, vector<256x512xf32>, vector<1x512xf32> -> vector<1x512xf32>
    %c0_146 = arith.constant 0 : index
    %c0_147 = arith.constant 0 : index
    %163 = vector.load %arg10[%c0_146, %c0_147] : memref<1x512xf32, #tpu.memory_space<vmem>>, vector<1x512xf32>
    %164 = arith.addf %162, %163 : vector<1x512xf32>
    %c1_i32_148 = arith.constant 1 : i32
    %165 = tpu.memref_slice %arg21[%c1_i32_148] : memref<2x!tpu.dma_semaphore, #tpu.memory_space<semaphore_mem>> -> memref<1x!tpu.dma_semaphore, #tpu.memory_space<semaphore_mem>>
    %166 = tpu.memref_squeeze %165 : memref<1x!tpu.dma_semaphore, #tpu.memory_space<semaphore_mem>> -> memref<!tpu.dma_semaphore, #tpu.memory_space<semaphore_mem>>
    tpu.wait_dma2 semaphore(%166 : memref<!tpu.dma_semaphore, #tpu.memory_space<semaphore_mem>>) src(%arg13 : memref<512x128xf32, #tpu.memory_space<any>>) dst(%arg20 : memref<512x128xf32, #tpu.memory_space<vmem>>)
    %c0_149 = arith.constant 0 : index
    %c0_150 = arith.constant 0 : index
    %167 = vector.load %arg20[%c0_149, %c0_150] : memref<512x128xf32, #tpu.memory_space<vmem>>, vector<512x128xf32>
    %cst_151 = arith.constant dense<0.000000e+00> : vector<1x128xf32>
    %168 = tpu.matmul %164, %167, %cst_151 {dimension_numbers = #tpu.dot_dimension_numbers<[1], [0], [0], [1], [0, 0, 1, 1], [], []>} : vector<1x512xf32>, vector<512x128xf32>, vector<1x128xf32> -> vector<1x128xf32>
    %c0_152 = arith.constant 0 : index
    %c0_153 = arith.constant 0 : index
    %169 = vector.load %arg11[%c0_152, %c0_153] : memref<1x128xf32, #tpu.memory_space<vmem>>, vector<1x128xf32>
    %170 = arith.addf %168, %169 : vector<1x128xf32>
    %171 = tpu.iota {dimensions = array<i32: 1>} : vector<1x128xi32>
    %c6_i32 = arith.constant 6 : i32
    %172 = vector.broadcast %c6_i32 : i32 to vector<1x128xi32>
    %173 = arith.cmpi slt, %171, %172 : vector<1x128xi32>
    %cst_154 = arith.constant -1.000000e+30 : f32
    %174 = vector.broadcast %cst_154 : f32 to vector<1x128xf32>
    %175 = arith.select %173, %170, %174 : vector<1x128xi1>, vector<1x128xf32>
    %cst_155 = arith.constant dense<0xFF800000> : vector<1xf32>
    %176 = vector.multi_reduction <maximumf>, %175, %cst_155 [1] : vector<1x128xf32> to vector<1xf32>
    %177 = vector.shape_cast %176 : vector<1xf32> to vector<1x1xf32>
    %178 = vector.broadcast %177 : vector<1x1xf32> to vector<1x128xf32>
    %179 = arith.subf %175, %178 : vector<1x128xf32>
    %180 = math.exp %179 : vector<1x128xf32>
    %cst_156 = arith.constant 0.000000e+00 : f32
    %181 = vector.broadcast %cst_156 : f32 to vector<1x128xf32>
    %182 = arith.select %173, %180, %181 : vector<1x128xi1>, vector<1x128xf32>
    %cst_157 = arith.constant dense<0.000000e+00> : vector<1xf32>
    %183 = vector.multi_reduction <add>, %182, %cst_157 [1] : vector<1x128xf32> to vector<1xf32>
    %184 = vector.shape_cast %183 : vector<1xf32> to vector<1x1xf32>
    %185 = vector.broadcast %184 : vector<1x1xf32> to vector<1x128xf32>
    %186 = arith.divf %182, %185 : vector<1x128xf32>
    %187 = arith.select %173, %186, %170 : vector<1x128xi1>, vector<1x128xf32>
    %c0_158 = arith.constant 0 : index
    %c0_159 = arith.constant 0 : index
    %188 = vector.load %arg14[%c0_158, %c0_159] : memref<1x128xf32, #tpu.memory_space<vmem>>, vector<1x128xf32>
    tpu.vector_store %arg14[%c0_158, %c0_159], %187 {strides = array<i32>} : memref<1x128xf32, #tpu.memory_space<vmem>>, vector<1x128xf32>,
    return
  }
  func.func @transform_0(%arg0: i32) -> (i32, i32) {
    %c0_i32 = arith.constant 0 : i32
    %c0_i32_0 = arith.constant 0 : i32
    %c0_i32_1 = arith.constant 0 : i32
    return %c0_i32, %c0_i32_0 : i32, i32
  }
  func.func @transform_1(%arg0: i32) -> (i32, i32) {
    %c0_i32 = arith.constant 0 : i32
    %c0_i32_0 = arith.constant 0 : i32
    %c0_i32_1 = arith.constant 0 : i32
    return %c0_i32, %c0_i32_0 : i32, i32
  }
  func.func @transform_2(%arg0: i32) -> (i32, i32) {
    %c0_i32 = arith.constant 0 : i32
    %c0_i32_0 = arith.constant 0 : i32
    %c0_i32_1 = arith.constant 0 : i32
    return %c0_i32, %c0_i32_0 : i32, i32
  }
  func.func @transform_3(%arg0: i32) -> (i32, i32) {
    %c0_i32 = arith.constant 0 : i32
    %c0_i32_0 = arith.constant 0 : i32
    %c0_i32_1 = arith.constant 0 : i32
    return %c0_i32, %c0_i32_0 : i32, i32
  }
  func.func @transform_4(%arg0: i32) -> (i32, i32) {
    %c0_i32 = arith.constant 0 : i32
    %c0_i32_0 = arith.constant 0 : i32
    %c0_i32_1 = arith.constant 0 : i32
    return %c0_i32, %c0_i32_0 : i32, i32
  }
  func.func @transform_5(%arg0: i32) -> (i32, i32) {
    %c0_i32 = arith.constant 0 : i32
    %c0_i32_0 = arith.constant 0 : i32
    %c0_i32_1 = arith.constant 0 : i32
    return %c0_i32, %c0_i32_0 : i32, i32
  }
  func.func @transform_6(%arg0: i32) -> (i32, i32) {
    %c0_i32 = arith.constant 0 : i32
    %c0_i32_0 = arith.constant 0 : i32
    %c0_i32_1 = arith.constant 0 : i32
    return %c0_i32, %c0_i32_0 : i32, i32
  }
  func.func @transform_7(%arg0: i32) -> (i32, i32) {
    %c0_i32 = arith.constant 0 : i32
    %c0_i32_0 = arith.constant 0 : i32
    %c0_i32_1 = arith.constant 0 : i32
    return %c0_i32, %c0_i32_0 : i32, i32
  }
  func.func @transform_8(%arg0: i32) -> (i32, i32) {
    %c0_i32 = arith.constant 0 : i32
    %c0_i32_0 = arith.constant 0 : i32
    %c0_i32_1 = arith.constant 0 : i32
    return %c0_i32, %c0_i32_0 : i32, i32
  }
  func.func @transform_9(%arg0: i32) -> (i32, i32) {
    %c0_i32 = arith.constant 0 : i32
    %c0_i32_0 = arith.constant 0 : i32
    %c0_i32_1 = arith.constant 0 : i32
    return %c0_i32, %c0_i32_0 : i32, i32
  }
  func.func @transform_10(%arg0: i32) -> (i32, i32) {
    %c0_i32 = arith.constant 0 : i32
    %c0_i32_0 = arith.constant 0 : i32
    %c0_i32_1 = arith.constant 0 : i32
    return %c0_i32, %c0_i32_0 : i32, i32
  }
  func.func @transform_13(%arg0: i32) -> (i32, i32) {
    %c0_i32 = arith.constant 0 : i32
    %c0_i32_0 = arith.constant 0 : i32
    %c0_i32_1 = arith.constant 0 : i32
    return %c0_i32, %c0_i32_0 : i32, i32
  }
}

</mosaic_0001>

<bundles_post_ra>
// kernel: forward.1
= control target key start
LH: loop header
LB: loop body
LE: loop exit
PB: predicated region body
PF: predicated region fallthrough
CT: control target
= control target key end

     0   :  { %s4472_s0 = inlined_call_operand.vmem [shape: f32[64,256], index: 0, kind: input, shape index: {}]   ;;  %s4473_s1 = inlined_call_operand.vmem [shape: f32[256,128], index: 1, kind: input, shape index: {}]   ;;  %s4474_s2 = inlined_call_operand.vmem [shape: f32[1,128], index: 2, kind: input, shape index: {}]   ;;  %s4475_s3 = inlined_call_operand.vmem [shape: f32[512,128], index: 3, kind: input, shape index: {}]   ;;  %s4476_s4 = inlined_call_operand.vmem [shape: f32[1,128], index: 4, kind: input, shape index: {}]   ;;  %s4477_s5 = inlined_call_operand.vmem [shape: f32[640,64], index: 5, kind: input, shape index: {}]   ;;  %s4478_s6 = inlined_call_operand.vmem [shape: f32[1,64], index: 6, kind: input, shape index: {}]   ;;  %s4479_s7 = inlined_call_operand.vmem [shape: f32[64,256], index: 7, kind: input, shape index: {}]   ;;  %s4480_s8 = inlined_call_operand.vmem [shape: f32[1,256], index: 8, kind: input, shape index: {}]   ;;  %s4481_s9 = inlined_call_operand.vmem [shape: f32[1,512], index: 9, kind: input, shape index: {}]   ;;  %s4482_s10 = inlined_call_operand.vmem [shape: f32[1,128], index: 10, kind: input, shape index: {}]   ;;  %s4483_s11 = inlined_call_operand.vmem [shape: f32[256,512], index: 11, kind: input, shape index: {}]   ;;  %s4484_s12 = inlined_call_operand.vmem [shape: f32[512,128], index: 12, kind: input, shape index: {}]   ;;  %s4485_s13 = inlined_call_operand.vmem [shape: f32[1,128], index: 13, kind: output, shape index: {}]  }
   0x1   :  { %v2490_v0 = vld [vmem:[%s4483_s11] sm:$0xff]  ;;  %v2495_v1 = vld [vmem:[%s4483_s11 + $0x8] sm:$0xff]  ;;  %v2500_v2 = vld [vmem:[%s4483_s11 + $0x10] sm:$0xff] }
   0x2   :  { %4488 = vst [vmem:[#allocation13_spill] sm:$0xff] %v2490_v0  ;;  %4489 = vst [vmem:[#allocation14_spill] sm:$0xff] %v2495_v1  ;;  %v2505_v3 = vld [vmem:[%s4483_s11 + $0x18] sm:$0xff]  ;;  %v2510_v4 = vld [vmem:[%s4483_s11 + $0x20] sm:$0xff] }
   0x3   :  { %4490 = vst [vmem:[#allocation15_spill] sm:$0xff] %v2500_v2  ;;  %4491 = vst [vmem:[#allocation16_spill] sm:$0xff] %v2505_v3  ;;  %v2515_v5 = vld [vmem:[%s4483_s11 + $0x28] sm:$0xff]  ;;  %v2520_v6 = vld [vmem:[%s4483_s11 + $0x30] sm:$0xff] }
   0x4   :  { %4492 = vst [vmem:[#allocation17_spill] sm:$0xff] %v2510_v4  ;;  %4493 = vst [vmem:[#allocation18_spill] sm:$0xff] %v2515_v5  ;;  %v2525_v7 = vld [vmem:[%s4483_s11 + $0x38] sm:$0xff]  ;;  %v2530_v8 = vld [vmem:[%s4483_s11 + $0x40] sm:$0xff] }
   0x5   :  { %4494 = vst [vmem:[#allocation19_spill] sm:$0xff] %v2520_v6  ;;  %4495 = vst [vmem:[#allocation20_spill] sm:$0xff] %v2525_v7  ;;  %v2535_v9 = vld [vmem:[%s4483_s11 + $0x48] sm:$0xff]  ;;  %v2540_v10 = vld [vmem:[%s4483_s11 + $0x50] sm:$0xff] }
   0x6   :  { %4496 = vst [vmem:[#allocation21_spill] sm:$0xff] %v2530_v8  ;;  %4497 = vst [vmem:[#allocation22_spill] sm:$0xff] %v2535_v9  ;;  %v2545_v11 = vld [vmem:[%s4483_s11 + $0x58] sm:$0xff]  ;;  %v2550_v12 = vld [vmem:[%s4483_s11 + $0x60] sm:$0xff] }
   0x7   :  { %4498 = vst [vmem:[#allocation23_spill] sm:$0xff] %v2540_v10  ;;  %4499 = vst [vmem:[#allocation24_spill] sm:$0xff] %v2545_v11  ;;  %v2555_v13 = vld [vmem:[%s4483_s11 + $0x68] sm:$0xff]  ;;  %v2560_v14 = vld [vmem:[%s4483_s11 + $0x70] sm:$0xff] }
   0x8   :  { %4500 = vst [vmem:[#allocation25_spill] sm:$0xff] %v2550_v12  ;;  %4501 = vst [vmem:[#allocation26_spill] sm:$0xff] %v2555_v13  ;;  %v2565_v15 = vld [vmem:[%s4483_s11 + $0x78] sm:$0xff]  ;;  %v2570_v16 = vld [vmem:[%s4483_s11 + $0x80] sm:$0xff] }
   0x9   :  { %4502 = vst [vmem:[#allocation27_spill] sm:$0xff] %v2560_v14  ;;  %4503 = vst [vmem:[#allocation28_spill] sm:$0xff] %v2565_v15  ;;  %v2575_v17 = vld [vmem:[%s4483_s11 + $0x88] sm:$0xff]  ;;  %v2580_v18 = vld [vmem:[%s4483_s11 + $0x90] sm:$0xff] }
   0xa   :  { %4504 = vst [vmem:[#allocation29_spill] sm:$0xff] %v2570_v16  ;;  %4505 = vst [vmem:[#allocation30_spill] sm:$0xff] %v2575_v17  ;;  %v2585_v19 = vld [vmem:[%s4483_s11 + $0x98] sm:$0xff]  ;;  %v2590_v20 = vld [vmem:[%s4483_s11 + $0xa0] sm:$0xff] }
   0xb   :  { %4506 = vst [vmem:[#allocation31_spill] sm:$0xff] %v2580_v18  ;;  %4507 = vst [vmem:[#allocation32_spill] sm:$0xff] %v2585_v19  ;;  %v2595_v21 = vld [vmem:[%s4483_s11 + $0xa8] sm:$0xff]  ;;  %v2600_v22 = vld [vmem:[%s4483_s11 + $0xb0] sm:$0xff] }
   0xc   :  { %4508 = vst [vmem:[#allocation33_spill] sm:$0xff] %v2590_v20  ;;  %4509 = vst [vmem:[#allocation34_spill] sm:$0xff] %v2595_v21  ;;  %v2605_v23 = vld [vmem:[%s4483_s11 + $0xb8] sm:$0xff]  ;;  %v2610_v24 = vld [vmem:[%s4483_s11 + $0xc0] sm:$0xff] }
   0xd   :  { %4510 = vst [vmem:[#allocation35_spill] sm:$0xff] %v2600_v22  ;;  %4511 = vst [vmem:[#allocation36_spill] sm:$0xff] %v2605_v23  ;;  %v2615_v25 = vld [vmem:[%s4483_s11 + $0xc8] sm:$0xff]  ;;  %v2620_v26 = vld [vmem:[%s4483_s11 + $0xd0] sm:$0xff] }
   0xe   :  { %4512 = vst [vmem:[#allocation37_spill] sm:$0xff] %v2620_v26  ;;  %v2625_v27 = vld [vmem:[%s4483_s11 + $0xd8] sm:$0xff]  ;;  %v2630_v28 = vld [vmem:[%s4483_s11 + $0xe0] sm:$0xff]  ;;  %v2635_v29 = vld [vmem:[%s4483_s11 + $0xe8] sm:$0xff] }
   0xf   :  { %v2640_v30 = vld [vmem:[%s4483_s11 + $0xf0] sm:$0xff]  ;;  %v2645_v31 = vld [vmem:[%s4483_s11 + $0xf8] sm:$0xff]  ;;  %v2650_v32 = vld [vmem:[%s4483_s11 + $0x100] sm:$0xff] }
  0x10   :  { %v2655_v33 = vld [vmem:[%s4483_s11 + $0x108] sm:$0xff]  ;;  %v2660_v34 = vld [vmem:[%s4483_s11 + $0x110] sm:$0xff]  ;;  %v2665_v35 = vld [vmem:[%s4483_s11 + $0x118] sm:$0xff] }
  0x11   :  { %v2670_v36 = vld [vmem:[%s4483_s11 + $0x120] sm:$0xff]  ;;  %v2675_v37 = vld [vmem:[%s4483_s11 + $0x128] sm:$0xff]  ;;  %v2680_v38 = vld [vmem:[%s4483_s11 + $0x130] sm:$0xff] }
  0x12   :  { %v2685_v39 = vld [vmem:[%s4483_s11 + $0x138] sm:$0xff]  ;;  %v2690_v40 = vld [vmem:[%s4483_s11 + $0x140] sm:$0xff]  ;;  %v2695_v41 = vld [vmem:[%s4483_s11 + $0x148] sm:$0xff] }
  0x13   :  { %v2700_v42 = vld [vmem:[%s4483_s11 + $0x150] sm:$0xff]  ;;  %v2705_v43 = vld [vmem:[%s4483_s11 + $0x158] sm:$0xff]  ;;  %v2710_v44 = vld [vmem:[%s4483_s11 + $0x160] sm:$0xff] }
  0x14   :  { %v2715_v45 = vld [vmem:[%s4483_s11 + $0x168] sm:$0xff]  ;;  %v2720_v46 = vld [vmem:[%s4483_s11 + $0x170] sm:$0xff]  ;;  %v2725_v47 = vld [vmem:[%s4483_s11 + $0x178] sm:$0xff] }
  0x15   :  { %v2730_v48 = vld [vmem:[%s4483_s11 + $0x180] sm:$0xff]  ;;  %v2735_v49 = vld [vmem:[%s4483_s11 + $0x188] sm:$0xff]  ;;  %v2740_v50 = vld [vmem:[%s4483_s11 + $0x190] sm:$0xff] }
  0x16   :  { %v2745_v51 = vld [vmem:[%s4483_s11 + $0x198] sm:$0xff]  ;;  %v2750_v52 = vld [vmem:[%s4483_s11 + $0x1a0] sm:$0xff]  ;;  %v2755_v53 = vld [vmem:[%s4483_s11 + $0x1a8] sm:$0xff] }
  0x17   :  { %v2760_v54 = vld [vmem:[%s4483_s11 + $0x1b0] sm:$0xff]  ;;  %v2765_v55 = vld [vmem:[%s4483_s11 + $0x1b8] sm:$0xff]  ;;  %v2770_v56 = vld [vmem:[%s4483_s11 + $0x1c0] sm:$0xff] }
  0x18   :  { %v2775_v57 = vld [vmem:[%s4483_s11 + $0x1c8] sm:$0xff]  ;;  %v2780_v58 = vld [vmem:[%s4483_s11 + $0x1d0] sm:$0xff]  ;;  %v2785_v59 = vld [vmem:[%s4483_s11 + $0x1d8] sm:$0xff] }
  0x19   :  { %v2790_v60 = vld [vmem:[%s4483_s11 + $0x1e0] sm:$0xff]  ;;  %v2795_v61 = vld [vmem:[%s4483_s11 + $0x1e8] sm:$0xff]  ;;  %v2800_v62 = vld [vmem:[%s4483_s11 + $0x1f0] sm:$0xff] }
  0x1a   :  { %v2805_v63 = vld [vmem:[%s4483_s11 + $0x1f8] sm:$0xff]  ;;  %v2810_v2 = vld [vmem:[%s4483_s11 + $0x200] sm:$0xff]  ;;  %v2815_v0 = vld [vmem:[%s4483_s11 + $0x208] sm:$0xff] }
  0x1b   :  { %4513 = vst [vmem:[#allocation38_spill] sm:$0xff] %v2810_v2  ;;  %4514 = vst [vmem:[#allocation39_spill] sm:$0xff] %v2815_v0  ;;  %v2820_v3 = vld [vmem:[%s4483_s11 + $0x210] sm:$0xff]  ;;  %v2825_v1 = vld [vmem:[%s4483_s11 + $0x218] sm:$0xff] }
  0x1c   :  { %4515 = vst [vmem:[#allocation40_spill] sm:$0xff] %v2820_v3  ;;  %4516 = vst [vmem:[#allocation41_spill] sm:$0xff] %v2825_v1  ;;  %v2830_v6 = vld [vmem:[%s4483_s11 + $0x220] sm:$0xff]  ;;  %v2835_v2 = vld [vmem:[%s4483_s11 + $0x228] sm:$0xff] }
  0x1d   :  { %4517 = vst [vmem:[#allocation42_spill] sm:$0xff] %v2830_v6  ;;  %4518 = vst [vmem:[#allocation43_spill] sm:$0xff] %v2835_v2  ;;  %v2840_v0 = vld [vmem:[%s4483_s11 + $0x230] sm:$0xff]  ;;  %v2845_v3 = vld [vmem:[%s4483_s11 + $0x238] sm:$0xff] }
  0x1e   :  { %4519 = vst [vmem:[#allocation44_spill] sm:$0xff] %v2840_v0  ;;  %4520 = vst [vmem:[#allocation45_spill] sm:$0xff] %v2845_v3  ;;  %v2850_v1 = vld [vmem:[%s4483_s11 + $0x240] sm:$0xff]  ;;  %v2855_v6 = vld [vmem:[%s4483_s11 + $0x248] sm:$0xff] }
  0x1f   :  { %4521 = vst [vmem:[#allocation46_spill] sm:$0xff] %v2850_v1  ;;  %4522 = vst [vmem:[#allocation47_spill] sm:$0xff] %v2855_v6  ;;  %v2860_v2 = vld [vmem:[%s4483_s11 + $0x250] sm:$0xff]  ;;  %v2865_v0 = vld [vmem:[%s4483_s11 + $0x258] sm:$0xff] }
  0x20   :  { %4523 = vst [vmem:[#allocation48_spill] sm:$0xff] %v2860_v2  ;;  %4524 = vst [vmem:[#allocation49_spill] sm:$0xff] %v2865_v0  ;;  %v2870_v3 = vld [vmem:[%s4483_s11 + $0x260] sm:$0xff]  ;;  %v2875_v1 = vld [vmem:[%s4483_s11 + $0x268] sm:$0xff] }
  0x21   :  { %4525 = vst [vmem:[#allocation50_spill] sm:$0xff] %v2870_v3  ;;  %4526 = vst [vmem:[#allocation51_spill] sm:$0xff] %v2875_v1  ;;  %v2880_v6 = vld [vmem:[%s4483_s11 + $0x270] sm:$0xff]  ;;  %v2885_v2 = vld [vmem:[%s4483_s11 + $0x278] sm:$0xff] }
  0x22   :  { %4527 = vst [vmem:[#allocation52_spill] sm:$0xff] %v2880_v6  ;;  %4528 = vst [vmem:[#allocation53_spill] sm:$0xff] %v2885_v2  ;;  %v2890_v0 = vld [vmem:[%s4483_s11 + $0x280] sm:$0xff]  ;;  %v2895_v3 = vld [vmem:[%s4483_s11 + $0x288] sm:$0xff] }
  0x23   :  { %4529 = vst [vmem:[#allocation54_spill] sm:$0xff] %v2890_v0  ;;  %4530 = vst [vmem:[#allocation55_spill] sm:$0xff] %v2895_v3  ;;  %v2900_v1 = vld [vmem:[%s4483_s11 + $0x290] sm:$0xff]  ;;  %v2905_v6 = vld [vmem:[%s4483_s11 + $0x298] sm:$0xff] }
  0x24   :  { %4531 = vst [vmem:[#allocation56_spill] sm:$0xff] %v2900_v1  ;;  %4532 = vst [vmem:[#allocation57_spill] sm:$0xff] %v2905_v6  ;;  %v2910_v2 = vld [vmem:[%s4483_s11 + $0x2a0] sm:$0xff]  ;;  %v2915_v0 = vld [vmem:[%s4483_s11 + $0x2a8] sm:$0xff] }
  0x25   :  { %4533 = vst [vmem:[#allocation58_spill] sm:$0xff] %v2910_v2  ;;  %4534 = vst [vmem:[#allocation59_spill] sm:$0xff] %v2915_v0  ;;  %v2920_v3 = vld [vmem:[%s4483_s11 + $0x2b0] sm:$0xff]  ;;  %v2925_v1 = vld [vmem:[%s4483_s11 + $0x2b8] sm:$0xff] }
  0x26   :  { %4535 = vst [vmem:[#allocation60_spill] sm:$0xff] %v2920_v3  ;;  %4536 = vst [vmem:[#allocation61_spill] sm:$0xff] %v2925_v1  ;;  %v2930_v6 = vld [vmem:[%s4483_s11 + $0x2c0] sm:$0xff]  ;;  %v2935_v2 = vld [vmem:[%s4483_s11 + $0x2c8] sm:$0xff] }
  0x27   :  { %4537 = vst [vmem:[#allocation62_spill] sm:$0xff] %v2930_v6  ;;  %4538 = vst [vmem:[#allocation63_spill] sm:$0xff] %v2935_v2  ;;  %v2940_v0 = vld [vmem:[%s4483_s11 + $0x2d0] sm:$0xff]  ;;  %v2945_v3 = vld [vmem:[%s4483_s11 + $0x2d8] sm:$0xff] }
  0x28   :  { %4539 = vst [vmem:[#allocation64_spill] sm:$0xff] %v2940_v0  ;;  %4540 = vst [vmem:[#allocation65_spill] sm:$0xff] %v2945_v3  ;;  %v2950_v1 = vld [vmem:[%s4483_s11 + $0x2e0] sm:$0xff]  ;;  %v2955_v6 = vld [vmem:[%s4483_s11 + $0x2e8] sm:$0xff] }
  0x29   :  { %4541 = vst [vmem:[#allocation66_spill] sm:$0xff] %v2950_v1  ;;  %4542 = vst [vmem:[#allocation67_spill] sm:$0xff] %v2955_v6  ;;  %v2960_v2 = vld [vmem:[%s4483_s11 + $0x2f0] sm:$0xff]  ;;  %v2965_v0 = vld [vmem:[%s4483_s11 + $0x2f8] sm:$0xff] }
  0x2a   :  { %4543 = vst [vmem:[#allocation68_spill] sm:$0xff] %v2960_v2  ;;  %4544 = vst [vmem:[#allocation69_spill] sm:$0xff] %v2965_v0  ;;  %v2970_v3 = vld [vmem:[%s4483_s11 + $0x300] sm:$0xff]  ;;  %v2975_v1 = vld [vmem:[%s4483_s11 + $0x308] sm:$0xff] }
  0x2b   :  { %4545 = vst [vmem:[#allocation70_spill] sm:$0xff] %v2970_v3  ;;  %4546 = vst [vmem:[#allocation71_spill] sm:$0xff] %v2975_v1  ;;  %v2980_v6 = vld [vmem:[%s4483_s11 + $0x310] sm:$0xff]  ;;  %v2985_v2 = vld [vmem:[%s4483_s11 + $0x318] sm:$0xff] }
  0x2c   :  { %4547 = vst [vmem:[#allocation72_spill] sm:$0xff] %v2980_v6  ;;  %4548 = vst [vmem:[#allocation73_spill] sm:$0xff] %v2985_v2  ;;  %v2990_v0 = vld [vmem:[%s4483_s11 + $0x320] sm:$0xff]  ;;  %v2995_v3 = vld [vmem:[%s4483_s11 + $0x328] sm:$0xff] }
  0x2d   :  { %4549 = vst [vmem:[#allocation74_spill] sm:$0xff] %v2990_v0  ;;  %4550 = vst [vmem:[#allocation75_spill] sm:$0xff] %v2995_v3  ;;  %v3000_v1 = vld [vmem:[%s4483_s11 + $0x330] sm:$0xff]  ;;  %v3005_v6 = vld [vmem:[%s4483_s11 + $0x338] sm:$0xff] }
  0x2e   :  { %4551 = vst [vmem:[#allocation76_spill] sm:$0xff] %v3000_v1  ;;  %4552 = vst [vmem:[#allocation77_spill] sm:$0xff] %v3005_v6  ;;  %v3010_v2 = vld [vmem:[%s4483_s11 + $0x340] sm:$0xff]  ;;  %v3015_v0 = vld [vmem:[%s4483_s11 + $0x348] sm:$0xff] }
  0x2f   :  { %4553 = vst [vmem:[#allocation78_spill] sm:$0xff] %v3010_v2  ;;  %4554 = vst [vmem:[#allocation79_spill] sm:$0xff] %v3015_v0  ;;  %v3020_v3 = vld [vmem:[%s4483_s11 + $0x350] sm:$0xff]  ;;  %v3025_v1 = vld [vmem:[%s4483_s11 + $0x358] sm:$0xff] }
  0x30   :  { %4555 = vst [vmem:[#allocation80_spill] sm:$0xff] %v3020_v3  ;;  %4556 = vst [vmem:[#allocation81_spill] sm:$0xff] %v3025_v1  ;;  %v3030_v6 = vld [vmem:[%s4483_s11 + $0x360] sm:$0xff]  ;;  %v3035_v2 = vld [vmem:[%s4483_s11 + $0x368] sm:$0xff] }
  0x31   :  { %4557 = vst [vmem:[#allocation82_spill] sm:$0xff] %v3030_v6  ;;  %4558 = vst [vmem:[#allocation83_spill] sm:$0xff] %v3035_v2  ;;  %v3040_v0 = vld [vmem:[%s4483_s11 + $0x370] sm:$0xff]  ;;  %v3045_v3 = vld [vmem:[%s4483_s11 + $0x378] sm:$0xff] }
  0x32   :  { %4559 = vst [vmem:[#allocation84_spill] sm:$0xff] %v3040_v0  ;;  %4560 = vst [vmem:[#allocation85_spill] sm:$0xff] %v3045_v3  ;;  %v3050_v1 = vld [vmem:[%s4483_s11 + $0x380] sm:$0xff]  ;;  %v3055_v6 = vld [vmem:[%s4483_s11 + $0x388] sm:$0xff] }
  0x33   :  { %4561 = vst [vmem:[#allocation86_spill] sm:$0xff] %v3050_v1  ;;  %4562 = vst [vmem:[#allocation87_spill] sm:$0xff] %v3055_v6  ;;  %v3060_v2 = vld [vmem:[%s4483_s11 + $0x390] sm:$0xff]  ;;  %v3065_v0 = vld [vmem:[%s4483_s11 + $0x398] sm:$0xff] }
  0x34   :  { %4563 = vst [vmem:[#allocation88_spill] sm:$0xff] %v3060_v2  ;;  %4564 = vst [vmem:[#allocation89_spill] sm:$0xff] %v3065_v0  ;;  %v3070_v3 = vld [vmem:[%s4483_s11 + $0x3a0] sm:$0xff]  ;;  %v3075_v1 = vld [vmem:[%s4483_s11 + $0x3a8] sm:$0xff] }
  0x35   :  { %4565 = vst [vmem:[#allocation90_spill] sm:$0xff] %v3070_v3  ;;  %4566 = vst [vmem:[#allocation91_spill] sm:$0xff] %v3075_v1  ;;  %v3080_v6 = vld [vmem:[%s4483_s11 + $0x3b0] sm:$0xff]  ;;  %v3085_v2 = vld [vmem:[%s4483_s11 + $0x3b8] sm:$0xff] }
  0x36   :  { %4567 = vst [vmem:[#allocation92_spill] sm:$0xff] %v3080_v6  ;;  %4568 = vst [vmem:[#allocation93_spill] sm:$0xff] %v3085_v2  ;;  %v3090_v0 = vld [vmem:[%s4483_s11 + $0x3c0] sm:$0xff]  ;;  %v3095_v3 = vld [vmem:[%s4483_s11 + $0x3c8] sm:$0xff] }
  0x37   :  { %4569 = vst [vmem:[#allocation94_spill] sm:$0xff] %v3090_v0  ;;  %4570 = vst [vmem:[#allocation95_spill] sm:$0xff] %v3095_v3  ;;  %v3100_v1 = vld [vmem:[%s4483_s11 + $0x3d0] sm:$0xff]  ;;  %v3105_v6 = vld [vmem:[%s4483_s11 + $0x3d8] sm:$0xff] }
  0x38   :  { %4571 = vst [vmem:[#allocation96_spill] sm:$0xff] %v3100_v1  ;;  %4572 = vst [vmem:[#allocation97_spill] sm:$0xff] %v3105_v6  ;;  %v3110_v2 = vld [vmem:[%s4483_s11 + $0x3e0] sm:$0xff]  ;;  %v3115_v0 = vld [vmem:[%s4483_s11 + $0x3e8] sm:$0xff] }
  0x39   :  { %4573 = vst [vmem:[#allocation98_spill] sm:$0xff] %v3110_v2  ;;  %4574 = vst [vmem:[#allocation99_spill] sm:$0xff] %v3115_v0  ;;  %v3120_v3 = vld [vmem:[%s4483_s11 + $0x3f0] sm:$0xff]  ;;  %v3125_v1 = vld [vmem:[%s4483_s11 + $0x3f8] sm:$0xff] }
  0x3a   :  { %4575 = vst [vmem:[#allocation100_spill] sm:$0xff] %v3120_v3  ;;  %4576 = vst [vmem:[#allocation101_spill] sm:$0xff] %v3125_v1 }
  0x3b   :  { %336 = vsyncadd [#allocation8], 16384  ;;  %v3130_v6 = vld [vmem:[%s4484_s12] sm:$0xff]  ;;  %v3135_v2 = vld [vmem:[%s4484_s12 + $0x8] sm:$0xff] }
  0x3c   :  { %4577 = vst [vmem:[#allocation102_spill] sm:$0xff] %v3130_v6  ;;  %4578 = vst [vmem:[#allocation103_spill] sm:$0xff] %v3135_v2  ;;  %v3140_v3 = vld [vmem:[%s4484_s12 + $0x10] sm:$0xff]  ;;  %v3145_v1 = vld [vmem:[%s4484_s12 + $0x18] sm:$0xff] }
  0x3d   :  { %4579 = vst [vmem:[#allocation104_spill] sm:$0xff] %v3140_v3  ;;  %4580 = vst [vmem:[#allocation105_spill] sm:$0xff] %v3145_v1  ;;  %v3150_v0 = vld [vmem:[%s4484_s12 + $0x20] sm:$0xff]  ;;  %v3155_v6 = vld [vmem:[%s4484_s12 + $0x28] sm:$0xff] }
  0x3e   :  { %4581 = vst [vmem:[#allocation106_spill] sm:$0xff] %v3150_v0  ;;  %4582 = vst [vmem:[#allocation107_spill] sm:$0xff] %v3155_v6  ;;  %v3160_v2 = vld [vmem:[%s4484_s12 + $0x30] sm:$0xff]  ;;  %v3165_v3 = vld [vmem:[%s4484_s12 + $0x38] sm:$0xff] }
  0x3f   :  { %4583 = vst [vmem:[#allocation108_spill] sm:$0xff] %v3160_v2  ;;  %4584 = vst [vmem:[#allocation109_spill] sm:$0xff] %v3165_v3  ;;  %v3170_v1 = vld [vmem:[%s4484_s12 + $0x40] sm:$0xff]  ;;  %v3175_v0 = vld [vmem:[%s4484_s12 + $0x48] sm:$0xff] }
  0x40   :  { %4585 = vst [vmem:[#allocation110_spill] sm:$0xff] %v3170_v1  ;;  %4586 = vst [vmem:[#allocation111_spill] sm:$0xff] %v3175_v0  ;;  %v3180_v6 = vld [vmem:[%s4484_s12 + $0x50] sm:$0xff]  ;;  %v3185_v2 = vld [vmem:[%s4484_s12 + $0x58] sm:$0xff] }
  0x41   :  { %4587 = vst [vmem:[#allocation112_spill] sm:$0xff] %v3180_v6  ;;  %4588 = vst [vmem:[#allocation113_spill] sm:$0xff] %v3185_v2  ;;  %v3190_v3 = vld [vmem:[%s4484_s12 + $0x60] sm:$0xff]  ;;  %v3195_v1 = vld [vmem:[%s4484_s12 + $0x68] sm:$0xff] }
  0x42   :  { %4589 = vst [vmem:[#allocation114_spill] sm:$0xff] %v3190_v3  ;;  %4590 = vst [vmem:[#allocation115_spill] sm:$0xff] %v3195_v1  ;;  %v3200_v0 = vld [vmem:[%s4484_s12 + $0x70] sm:$0xff]  ;;  %v3205_v6 = vld [vmem:[%s4484_s12 + $0x78] sm:$0xff] }
  0x43   :  { %4591 = vst [vmem:[#allocation116_spill] sm:$0xff] %v3200_v0  ;;  %4592 = vst [vmem:[#allocation117_spill] sm:$0xff] %v3205_v6  ;;  %v3210_v2 = vld [vmem:[%s4484_s12 + $0x80] sm:$0xff]  ;;  %v3215_v3 = vld [vmem:[%s4484_s12 + $0x88] sm:$0xff] }
  0x44   :  { %4593 = vst [vmem:[#allocation118_spill] sm:$0xff] %v3210_v2  ;;  %4594 = vst [vmem:[#allocation119_spill] sm:$0xff] %v3215_v3  ;;  %v3220_v1 = vld [vmem:[%s4484_s12 + $0x90] sm:$0xff]  ;;  %v3225_v0 = vld [vmem:[%s4484_s12 + $0x98] sm:$0xff] }
  0x45   :  { %4595 = vst [vmem:[#allocation120_spill] sm:$0xff] %v3220_v1  ;;  %4596 = vst [vmem:[#allocation121_spill] sm:$0xff] %v3225_v0  ;;  %v3230_v6 = vld [vmem:[%s4484_s12 + $0xa0] sm:$0xff]  ;;  %v3235_v2 = vld [vmem:[%s4484_s12 + $0xa8] sm:$0xff] }
  0x46   :  { %4597 = vst [vmem:[#allocation122_spill] sm:$0xff] %v3230_v6  ;;  %4598 = vst [vmem:[#allocation123_spill] sm:$0xff] %v3235_v2  ;;  %v3240_v3 = vld [vmem:[%s4484_s12 + $0xb0] sm:$0xff]  ;;  %v3245_v1 = vld [vmem:[%s4484_s12 + $0xb8] sm:$0xff] }
  0x47   :  { %4599 = vst [vmem:[#allocation124_spill] sm:$0xff] %v3240_v3  ;;  %4600 = vst [vmem:[#allocation125_spill] sm:$0xff] %v3245_v1  ;;  %v3250_v0 = vld [vmem:[%s4484_s12 + $0xc0] sm:$0xff]  ;;  %v3255_v6 = vld [vmem:[%s4484_s12 + $0xc8] sm:$0xff] }
  0x48   :  { %4601 = vst [vmem:[#allocation126_spill] sm:$0xff] %v3250_v0  ;;  %4602 = vst [vmem:[#allocation127_spill] sm:$0xff] %v3255_v6  ;;  %v3260_v2 = vld [vmem:[%s4484_s12 + $0xd0] sm:$0xff]  ;;  %v3265_v3 = vld [vmem:[%s4484_s12 + $0xd8] sm:$0xff] }
  0x49   :  { %4603 = vst [vmem:[#allocation128_spill] sm:$0xff] %v3260_v2  ;;  %4604 = vst [vmem:[#allocation129_spill] sm:$0xff] %v3265_v3  ;;  %v3270_v1 = vld [vmem:[%s4484_s12 + $0xe0] sm:$0xff]  ;;  %v3275_v0 = vld [vmem:[%s4484_s12 + $0xe8] sm:$0xff] }
  0x4a   :  { %4605 = vst [vmem:[#allocation130_spill] sm:$0xff] %v3270_v1  ;;  %4606 = vst [vmem:[#allocation131_spill] sm:$0xff] %v3275_v0  ;;  %v3280_v6 = vld [vmem:[%s4484_s12 + $0xf0] sm:$0xff]  ;;  %v3285_v2 = vld [vmem:[%s4484_s12 + $0xf8] sm:$0xff] }
  0x4b   :  { %4607 = vst [vmem:[#allocation132_spill] sm:$0xff] %v3280_v6  ;;  %4608 = vst [vmem:[#allocation133_spill] sm:$0xff] %v3285_v2  ;;  %v3290_v3 = vld [vmem:[%s4484_s12 + $0x100] sm:$0xff]  ;;  %v3295_v1 = vld [vmem:[%s4484_s12 + $0x108] sm:$0xff] }
  0x4c   :  { %4609 = vst [vmem:[#allocation134_spill] sm:$0xff] %v3290_v3  ;;  %4610 = vst [vmem:[#allocation135_spill] sm:$0xff] %v3295_v1  ;;  %v3300_v0 = vld [vmem:[%s4484_s12 + $0x110] sm:$0xff]  ;;  %v3305_v6 = vld [vmem:[%s4484_s12 + $0x118] sm:$0xff] }
  0x4d   :  { %4611 = vst [vmem:[#allocation136_spill] sm:$0xff] %v3300_v0  ;;  %4612 = vst [vmem:[#allocation137_spill] sm:$0xff] %v3305_v6  ;;  %v3310_v2 = vld [vmem:[%s4484_s12 + $0x120] sm:$0xff]  ;;  %v3315_v3 = vld [vmem:[%s4484_s12 + $0x128] sm:$0xff] }
  0x4e   :  { %4613 = vst [vmem:[#allocation138_spill] sm:$0xff] %v3310_v2  ;;  %4614 = vst [vmem:[#allocation139_spill] sm:$0xff] %v3315_v3  ;;  %v3320_v1 = vld [vmem:[%s4484_s12 + $0x130] sm:$0xff]  ;;  %v3325_v0 = vld [vmem:[%s4484_s12 + $0x138] sm:$0xff] }
  0x4f   :  { %4615 = vst [vmem:[#allocation140_spill] sm:$0xff] %v3320_v1  ;;  %4616 = vst [vmem:[#allocation141_spill] sm:$0xff] %v3325_v0  ;;  %v3330_v6 = vld [vmem:[%s4484_s12 + $0x140] sm:$0xff]  ;;  %v3335_v2 = vld [vmem:[%s4484_s12 + $0x148] sm:$0xff] }
  0x50   :  { %4617 = vst [vmem:[#allocation142_spill] sm:$0xff] %v3330_v6  ;;  %4618 = vst [vmem:[#allocation143_spill] sm:$0xff] %v3335_v2  ;;  %v3340_v3 = vld [vmem:[%s4484_s12 + $0x150] sm:$0xff]  ;;  %v3345_v1 = vld [vmem:[%s4484_s12 + $0x158] sm:$0xff] }
  0x51   :  { %4619 = vst [vmem:[#allocation144_spill] sm:$0xff] %v3340_v3  ;;  %4620 = vst [vmem:[#allocation145_spill] sm:$0xff] %v3345_v1  ;;  %v3350_v0 = vld [vmem:[%s4484_s12 + $0x160] sm:$0xff]  ;;  %v3355_v6 = vld [vmem:[%s4484_s12 + $0x168] sm:$0xff] }
  0x52   :  { %4621 = vst [vmem:[#allocation146_spill] sm:$0xff] %v3350_v0  ;;  %4622 = vst [vmem:[#allocation147_spill] sm:$0xff] %v3355_v6  ;;  %v3360_v2 = vld [vmem:[%s4484_s12 + $0x170] sm:$0xff]  ;;  %v3365_v3 = vld [vmem:[%s4484_s12 + $0x178] sm:$0xff] }
  0x53   :  { %4623 = vst [vmem:[#allocation148_spill] sm:$0xff] %v3360_v2  ;;  %4624 = vst [vmem:[#allocation149_spill] sm:$0xff] %v3365_v3  ;;  %v3370_v1 = vld [vmem:[%s4484_s12 + $0x180] sm:$0xff]  ;;  %v3375_v0 = vld [vmem:[%s4484_s12 + $0x188] sm:$0xff] }
  0x54   :  { %4625 = vst [vmem:[#allocation150_spill] sm:$0xff] %v3370_v1  ;;  %4626 = vst [vmem:[#allocation151_spill] sm:$0xff] %v3375_v0  ;;  %v3380_v6 = vld [vmem:[%s4484_s12 + $0x190] sm:$0xff]  ;;  %v3385_v2 = vld [vmem:[%s4484_s12 + $0x198] sm:$0xff] }
  0x55   :  { %4627 = vst [vmem:[#allocation152_spill] sm:$0xff] %v3380_v6  ;;  %4628 = vst [vmem:[#allocation153_spill] sm:$0xff] %v3385_v2  ;;  %v3390_v3 = vld [vmem:[%s4484_s12 + $0x1a0] sm:$0xff]  ;;  %v3395_v1 = vld [vmem:[%s4484_s12 + $0x1a8] sm:$0xff] }
  0x56   :  { %4629 = vst [vmem:[#allocation154_spill] sm:$0xff] %v3390_v3  ;;  %4630 = vst [vmem:[#allocation155_spill] sm:$0xff] %v3395_v1  ;;  %v3400_v0 = vld [vmem:[%s4484_s12 + $0x1b0] sm:$0xff]  ;;  %v3405_v6 = vld [vmem:[%s4484_s12 + $0x1b8] sm:$0xff] }
  0x57   :  { %4631 = vst [vmem:[#allocation156_spill] sm:$0xff] %v3400_v0  ;;  %4632 = vst [vmem:[#allocation157_spill] sm:$0xff] %v3405_v6  ;;  %v3410_v2 = vld [vmem:[%s4484_s12 + $0x1c0] sm:$0xff]  ;;  %v3415_v3 = vld [vmem:[%s4484_s12 + $0x1c8] sm:$0xff] }
  0x58   :  { %4633 = vst [vmem:[#allocation158_spill] sm:$0xff] %v3410_v2  ;;  %4634 = vst [vmem:[#allocation159_spill] sm:$0xff] %v3415_v3  ;;  %v3420_v1 = vld [vmem:[%s4484_s12 + $0x1d0] sm:$0xff]  ;;  %v3425_v0 = vld [vmem:[%s4484_s12 + $0x1d8] sm:$0xff] }
  0x59   :  { %4635 = vst [vmem:[#allocation160_spill] sm:$0xff] %v3420_v1  ;;  %4636 = vst [vmem:[#allocation161_spill] sm:$0xff] %v3425_v0  ;;  %v3430_v6 = vld [vmem:[%s4484_s12 + $0x1e0] sm:$0xff]  ;;  %v3435_v2 = vld [vmem:[%s4484_s12 + $0x1e8] sm:$0xff] }
  0x5a   :  { %4637 = vst [vmem:[#allocation162_spill] sm:$0xff] %v3430_v6  ;;  %4638 = vst [vmem:[#allocation163_spill] sm:$0xff] %v3435_v2  ;;  %v3440_v3 = vld [vmem:[%s4484_s12 + $0x1f0] sm:$0xff]  ;;  %v3445_v1 = vld [vmem:[%s4484_s12 + $0x1f8] sm:$0xff] }
  0x5b   :  { %4639 = vst [vmem:[#allocation164_spill] sm:$0xff] %v3440_v3  ;;  %4640 = vst [vmem:[#allocation165_spill] sm:$0xff] %v3445_v1 }
  0x5c   :  { %506 = vsyncadd [#allocation8 + $0x1], 8192  ;;  %v554_v0 = vld [vmem:[%s4473_s1 + $0xf8] sm:$0xff]  ;;  %v553_v2 = vld [vmem:[%s4473_s1 + $0xf0] sm:$0xff]  ;;  %v4486_v9 = vlaneseq  ;;  %vm2416_vm4 = vmmov 0   ;;  %vm1445_vm5 = vcmask 523264  }
  0x5d   :  { %v538_v6 = vld [vmem:[%s4473_s1 + $0x78] sm:$0xff]  ;;  %2081 = vmatprep.subr.mxu0 %v554_v0  ;;  %v537_v3 = vld [vmem:[%s4473_s1 + $0x70] sm:$0xff]  ;;  %v552_v1 = vld [vmem:[%s4473_s1 + $0xe8] sm:$0xff] }
  0x5e   :  { %2082 = vmatpush3.msra.mxu0 %v538_v6  ;;  %v536_v4 = vld [vmem:[%s4473_s1 + $0x68] sm:$0xff]  ;;  %v551_v0 = vld [vmem:[%s4473_s1 + $0xe0] sm:$0xff]  ;;  %v550_v6 = vld [vmem:[%s4473_s1 + $0xd8] sm:$0xff] }
  0x5f   :  { %2083 = vmatprep.subr.mxu0 %v553_v2  ;;  %v535_v7 = vld [vmem:[%s4473_s1 + $0x60] sm:$0xff]  ;;  %v534_v2 = vld [vmem:[%s4473_s1 + $0x58] sm:$0xff]  ;;  %v901_v10 = vld [vmem:[%s4475_s3 + $0x190] sm:$0xff] }
  0x60   :  { %2084 = vmatpush3.msra.mxu0 %v537_v3  ;;  %v549_v3 = vld [vmem:[%s4473_s1 + $0xd0] sm:$0xff]  ;;  %v867_v5 = vld [vmem:[%s4475_s3 + $0x80] sm:$0xff] }
  0x61   :  { %2085 = vmatprep.subr.mxu0 %v552_v1  ;;  %v533_v1 = vld [vmem:[%s4473_s1 + $0x50] sm:$0xff] }
  0x62   :  { %2086 = vmatpush3.msra.mxu0 %v536_v4  ;;  %v548_v4 = vld [vmem:[%s4473_s1 + $0xc8] sm:$0xff] }
  0x63   :  { %2087 = vmatprep.subr.mxu0 %v551_v0  ;;  %v532_v0 = vld [vmem:[%s4473_s1 + $0x48] sm:$0xff] }
  0x64   :  { %2088 = vmatpush3.msra.mxu0 %v535_v7  ;;  %v508_v7 = vld [vmem:[%s4472_s0 + $0x8] sm:$0xff] }
  0x65   :  { %2089 = vmatprep.subr.mxu0 %v550_v6  ;;  %v547_v6 = vld [vmem:[%s4473_s1 + $0xc0] sm:$0xff]  ;;  %626 = vmatprep.mubr.f32.mxu0 %v508_v7  ;;  %v545_v7 = vld [vmem:[%s4473_s1 + $0xb0] sm:$0xff] }
  0x66   :  { %2090 = vmatpush3.msra.mxu0 %v534_v2  ;;  %v531_v2 = vld [vmem:[%s4473_s1 + $0x40] sm:$0xff] }
  0x67   :  { %2091 = vmatprep.subr.mxu0 %v549_v3  ;;  %v546_v3 = vld [vmem:[%s4473_s1 + $0xb8] sm:$0xff] }
  0x68   :  { %2092 = vmatpush3.msra.mxu0 %v533_v1  ;;  %v530_v1 = vld [vmem:[%s4473_s1 + $0x38] sm:$0xff] }
  0x69   :  { %2093 = vmatprep.subr.mxu0 %v548_v4  ;;  %v529_v4 = vld [vmem:[%s4473_s1 + $0x30] sm:$0xff] }
  0x6a   :  { %2094 = vmatpush3.msra.mxu0 %v532_v0  ;;  %v544_v0 = vld [vmem:[%s4473_s1 + $0xa8] sm:$0xff] }
  0x6b   :  { %2095 = vmatprep.subr.mxu0 %v547_v6  ;;  %v528_v6 = vld [vmem:[%s4473_s1 + $0x28] sm:$0xff] }
  0x6c   :  { %2096 = vmatpush3.msra.mxu0 %v531_v2  ;;  %v543_v2 = vld [vmem:[%s4473_s1 + $0xa0] sm:$0xff] }
  0x6d   :  { %2097 = vmatprep.subr.mxu0 %v546_v3  ;;  %v527_v3 = vld [vmem:[%s4473_s1 + $0x20] sm:$0xff] }
  0x6e   :  { %2098 = vmatpush3.msra.mxu0 %v530_v1  ;;  %v542_v1 = vld [vmem:[%s4473_s1 + $0x98] sm:$0xff] }
  0x6f   :  { %2099 = vmatprep.subr.mxu0 %v545_v7  ;;  %v526_v7 = vld [vmem:[%s4473_s1 + $0x18] sm:$0xff] }
  0x70   :  { %2100 = vmatpush3.msra.mxu0 %v529_v4  ;;  %v541_v4 = vld [vmem:[%s4473_s1 + $0x90] sm:$0xff] }
  0x71   :  { %2101 = vmatprep.subr.mxu0 %v544_v0  ;;  %v525_v0 = vld [vmem:[%s4473_s1 + $0x10] sm:$0xff] }
  0x72   :  { %2102 = vmatpush3.msra.mxu0 %v528_v6  ;;  %v540_v6 = vld [vmem:[%s4473_s1 + $0x88] sm:$0xff] }
  0x73   :  { %2103 = vmatprep.subr.mxu0 %v543_v2  ;;  %v524_v2 = vld [vmem:[%s4473_s1 + $0x8] sm:$0xff] }
  0x74   :  { %2104 = vmatpush3.msra.mxu0 %v527_v3  ;;  %v539_v3 = vld [vmem:[%s4473_s1 + $0x80] sm:$0xff] }
  0x75   :  { %2105 = vmatprep.subr.mxu0 %v542_v1  ;;  %v523_v1 = vld [vmem:[%s4473_s1] sm:$0xff] }
  0x76   :  { %2106 = vmatpush3.msra.mxu0 %v526_v7  ;;  %v507_v7 = vld [vmem:[%s4472_s0] sm:$0xff] }
  0x77   :  { %2107 = vmatprep.subr.mxu0 %v541_v4  ;;  %v510_v4 = vld [vmem:[%s4472_s0 + $0x18] sm:$0xff] }
  0x78   :  { %2108 = vmatpush3.msra.mxu0 %v525_v0  ;;  %v509_v0 = vld [vmem:[%s4472_s0 + $0x10] sm:$0xff] }
  0x79   :  { %2109 = vmatprep.subr.mxu0 %v540_v6  ;;  %v512_v6 = vld [vmem:[%s4472_s0 + $0x28] sm:$0xff] }
  0x7a   :  { %2110 = vmatpush3.msra.mxu0 %v524_v2  ;;  %v511_v2 = vld [vmem:[%s4472_s0 + $0x20] sm:$0xff] }
  0x7b   :  { %2111 = vmatprep.subr.mxu0 %v539_v3  ;;  %v514_v3 = vld [vmem:[%s4472_s0 + $0x38] sm:$0xff] }
  0x7c   :  { %2112 = vmatpush3.msra.mxu0 %v523_v1  ;;  %v513_v1 = vld [vmem:[%s4472_s0 + $0x30] sm:$0xff] }
  0x7d   :  { %627 = vmatmul.mubr.f32.vlgmr.msra.gmra.mxu0 %v507_v7  ;;  %v516_v7 = vld [vmem:[%s4472_s0 + $0x48] sm:$0xff] }
  0x7e   :  { %631 = vmatprep.mubr.f32.mxu0 %v510_v4  ;;  %v515_v4 = vld [vmem:[%s4472_s0 + $0x40] sm:$0xff] }
  0x81   :  { %632 = vmatmul.mubr.f32.gmra.mxu0 %v509_v0  ;;  %v518_v0 = vld [vmem:[%s4472_s0 + $0x58] sm:$0xff] }
  0x82   :  { %636 = vmatprep.mubr.f32.mxu0 %v512_v6  ;;  %v517_v6 = vld [vmem:[%s4472_s0 + $0x50] sm:$0xff] }
  0x85   :  { %637 = vmatmul.mubr.f32.gmra.mxu0 %v511_v2  ;;  %v520_v2 = vld [vmem:[%s4472_s0 + $0x68] sm:$0xff] }
  0x86   :  { %641 = vmatprep.mubr.f32.mxu0 %v514_v3  ;;  %v519_v3 = vld [vmem:[%s4472_s0 + $0x60] sm:$0xff] }
  0x89   :  { %642 = vmatmul.mubr.f32.gmra.mxu0 %v513_v1  ;;  %v522_v1 = vld [vmem:[%s4472_s0 + $0x78] sm:$0xff] }
  0x8a   :  { %646 = vmatprep.mubr.f32.mxu0 %v516_v7  ;;  %v521_v7 = vld [vmem:[%s4472_s0 + $0x70] sm:$0xff] }
  0x8d   :  { %647 = vmatmul.mubr.f32.gmra.mxu0 %v515_v4  ;;  %v882_v4 = vld [vmem:[%s4475_s3 + $0xf8] sm:$0xff] }
  0x8e   :  { %651 = vmatprep.mubr.f32.mxu0 %v518_v0  ;;  %2137 = vmatprep.subr.mxu1 %v882_v4  ;;  %v866_v0 = vld [vmem:[%s4475_s3 + $0x78] sm:$0xff]  ;;  %v863_v4 = vld [vmem:[%s4475_s3 + $0x60] sm:$0xff] }
  0x8f   :  { %2138 = vmatpush3.msra.mxu1 %v866_v0  ;;  %v914_v0 = vld [vmem:[%s4475_s3 + $0x1f8] sm:$0xff] }
  0x90   :  { %2175 = vmatprep.subr.mxu0 %v914_v0  ;;  %v861_v0 = vld [vmem:[%s4475_s3 + $0x50] sm:$0xff] }
  0x91   :  { %652 = vmatmul.mubr.f32.gmra.mxu0 %v517_v6  ;;  %v881_v6 = vld [vmem:[%s4475_s3 + $0xf0] sm:$0xff] }
  0x92   :  { %656 = vmatprep.mubr.f32.mxu0 %v520_v2  ;;  %2139 = vmatprep.subr.mxu1 %v881_v6  ;;  %v865_v2 = vld [vmem:[%s4475_s3 + $0x70] sm:$0xff]  ;;  %v878_v6 = vld [vmem:[%s4475_s3 + $0xd8] sm:$0xff] }
  0x93   :  { %2140 = vmatpush3.msra.mxu1 %v865_v2  ;;  %v898_v2 = vld [vmem:[%s4475_s3 + $0x178] sm:$0xff] }
  0x94   :  { %2176 = vmatpush3.msra.mxu0 %v898_v2  ;;  %v876_v2 = vld [vmem:[%s4475_s3 + $0xc8] sm:$0xff] }
  0x95   :  { %657 = vmatmul.mubr.f32.gmra.mxu0 %v519_v3  ;;  %v880_v3 = vld [vmem:[%s4475_s3 + $0xe8] sm:$0xff] }
  0x96   :  { %661 = vmatprep.mubr.f32.mxu0 %v522_v1  ;;  %2141 = vmatprep.subr.mxu1 %v880_v3  ;;  %v864_v1 = vld [vmem:[%s4475_s3 + $0x68] sm:$0xff]  ;;  %v862_v3 = vld [vmem:[%s4475_s3 + $0x58] sm:$0xff] }
  0x97   :  { %2142 = vmatpush3.msra.mxu1 %v864_v1  ;;  %v913_v1 = vld [vmem:[%s4475_s3 + $0x1f0] sm:$0xff] }
  0x98   :  { %2177 = vmatprep.subr.mxu0 %v913_v1  ;;  %v860_v1 = vld [vmem:[%s4475_s3 + $0x48] sm:$0xff] }
  0x99   :  { %662 = vmatmul.mubr.f32.gmra.mxu0 %v521_v7  ;;  %v879_v7 = vld [vmem:[%s4475_s3 + $0xe0] sm:$0xff] }
  0x9a   :  { %2143 = vmatprep.subr.mxu1 %v879_v7  ;;  %v877_v7 = vld [vmem:[%s4475_s3 + $0xd0] sm:$0xff] }
  0x9b   :  { %2144 = vmatpush3.msra.mxu1 %v863_v4  ;;  %v897_v4 = vld [vmem:[%s4475_s3 + $0x170] sm:$0xff] }
  0x9c   :  { %2145 = vmatprep.subr.mxu1 %v878_v6  ;;  %2178 = vmatpush3.msra.mxu0 %v897_v4  ;;  %v912_v6 = vld [vmem:[%s4475_s3 + $0x1e8] sm:$0xff]  ;;  %v875_v4 = vld [vmem:[%s4475_s3 + $0xc0] sm:$0xff] }
  0x9d   :  { %2146 = vmatpush3.msra.mxu1 %v862_v3  ;;  %2179 = vmatprep.subr.mxu0 %v912_v6  ;;  %v896_v3 = vld [vmem:[%s4475_s3 + $0x168] sm:$0xff]  ;;  %v859_v6 = vld [vmem:[%s4475_s3 + $0x40] sm:$0xff] }
  0x9e   :  { %2147 = vmatprep.subr.mxu1 %v877_v7  ;;  %2180 = vmatpush3.msra.mxu0 %v896_v3  ;;  %v911_v7 = vld [vmem:[%s4475_s3 + $0x1e0] sm:$0xff]  ;;  %v874_v3 = vld [vmem:[%s4475_s3 + $0xb8] sm:$0xff] }
  0x9f   :  { %2148 = vmatpush3.msra.mxu1 %v861_v0  ;;  %2181 = vmatprep.subr.mxu0 %v911_v7  ;;  %v895_v0 = vld [vmem:[%s4475_s3 + $0x160] sm:$0xff]  ;;  %v858_v7 = vld [vmem:[%s4475_s3 + $0x38] sm:$0xff] }
  0xa0   :  { %2149 = vmatprep.subr.mxu1 %v876_v2  ;;  %2182 = vmatpush3.msra.mxu0 %v895_v0  ;;  %v910_v2 = vld [vmem:[%s4475_s3 + $0x1d8] sm:$0xff]  ;;  %v873_v0 = vld [vmem:[%s4475_s3 + $0xb0] sm:$0xff] }
  0xa1   :  { %2150 = vmatpush3.msra.mxu1 %v860_v1  ;;  %2183 = vmatprep.subr.mxu0 %v910_v2  ;;  %v894_v1 = vld [vmem:[%s4475_s3 + $0x158] sm:$0xff]  ;;  %v857_v2 = vld [vmem:[%s4475_s3 + $0x30] sm:$0xff] }
  0xa2   :  { %2151 = vmatprep.subr.mxu1 %v875_v4  ;;  %2184 = vmatpush3.msra.mxu0 %v894_v1  ;;  %v909_v4 = vld [vmem:[%s4475_s3 + $0x1d0] sm:$0xff]  ;;  %v872_v1 = vld [vmem:[%s4475_s3 + $0xa8] sm:$0xff] }
  0xa3   :  { %2152 = vmatpush3.msra.mxu1 %v859_v6  ;;  %2185 = vmatprep.subr.mxu0 %v909_v4  ;;  %v893_v6 = vld [vmem:[%s4475_s3 + $0x150] sm:$0xff]  ;;  %v856_v4 = vld [vmem:[%s4475_s3 + $0x28] sm:$0xff] }
  0xa4   :  { %2153 = vmatprep.subr.mxu1 %v874_v3  ;;  %2186 = vmatpush3.msra.mxu0 %v893_v6  ;;  %v908_v3 = vld [vmem:[%s4475_s3 + $0x1c8] sm:$0xff]  ;;  %v871_v6 = vld [vmem:[%s4475_s3 + $0xa0] sm:$0xff] }
  0xa5   :  { %2154 = vmatpush3.msra.mxu1 %v858_v7  ;;  %2187 = vmatprep.subr.mxu0 %v908_v3  ;;  %v892_v7 = vld [vmem:[%s4475_s3 + $0x148] sm:$0xff]  ;;  %v855_v3 = vld [vmem:[%s4475_s3 + $0x20] sm:$0xff] }
  0xa6   :  { %2155 = vmatprep.subr.mxu1 %v873_v0  ;;  %2188 = vmatpush3.msra.mxu0 %v892_v7  ;;  %v907_v0 = vld [vmem:[%s4475_s3 + $0x1c0] sm:$0xff]  ;;  %v870_v7 = vld [vmem:[%s4475_s3 + $0x98] sm:$0xff] }
  0xa7   :  { %2156 = vmatpush3.msra.mxu1 %v857_v2  ;;  %2189 = vmatprep.subr.mxu0 %v907_v0  ;;  %v891_v2 = vld [vmem:[%s4475_s3 + $0x140] sm:$0xff]  ;;  %v854_v0 = vld [vmem:[%s4475_s3 + $0x18] sm:$0xff] }
  0xa8   :  { %2157 = vmatprep.subr.mxu1 %v872_v1  ;;  %2190 = vmatpush3.msra.mxu0 %v891_v2  ;;  %v906_v1 = vld [vmem:[%s4475_s3 + $0x1b8] sm:$0xff]  ;;  %v869_v2 = vld [vmem:[%s4475_s3 + $0x90] sm:$0xff] }
  0xa9   :  { %2158 = vmatpush3.msra.mxu1 %v856_v4  ;;  %2191 = vmatprep.subr.mxu0 %v906_v1  ;;  %v890_v4 = vld [vmem:[%s4475_s3 + $0x138] sm:$0xff]  ;;  %v853_v1 = vld [vmem:[%s4475_s3 + $0x10] sm:$0xff] }
  0xaa   :  { %2159 = vmatprep.subr.mxu1 %v871_v6  ;;  %2192 = vmatpush3.msra.mxu0 %v890_v4  ;;  %v905_v6 = vld [vmem:[%s4475_s3 + $0x1b0] sm:$0xff]  ;;  %v868_v4 = vld [vmem:[%s4475_s3 + $0x88] sm:$0xff] }
  0xab   :  { %2160 = vmatpush3.msra.mxu1 %v855_v3  ;;  %v889_v3 = vld [vmem:[%s4475_s3 + $0x130] sm:$0xff]  ;;  %2193 = vmatprep.subr.mxu0 %v905_v6  ;;  %v852_v6 = vld [vmem:[%s4475_s3 + $0x8] sm:$0xff] }
  0xac   :  { %2161 = vmatprep.subr.mxu1 %v870_v7  ;;  %v904_v7 = vld [vmem:[%s4475_s3 + $0x1a8] sm:$0xff]  ;;  %2194 = vmatpush3.msra.mxu0 %v889_v3  ;;  %v887_v3 = vld [vmem:[%s4475_s3 + $0x120] sm:$0xff] }
  0xad   :  { %2162 = vmatpush3.msra.mxu1 %v854_v0  ;;  %v888_v0 = vld [vmem:[%s4475_s3 + $0x128] sm:$0xff]  ;;  %2195 = vmatprep.subr.mxu0 %v904_v7  ;;  %v902_v7 = vld [vmem:[%s4475_s3 + $0x198] sm:$0xff] }
  0xae   :  { %2163 = vmatprep.subr.mxu1 %v869_v2  ;;  %v903_v2 = vld [vmem:[%s4475_s3 + $0x1a0] sm:$0xff]  ;;  %2196 = vmatpush3.msra.mxu0 %v888_v0  ;;  %v900_v0 = vld [vmem:[%s4475_s3 + $0x188] sm:$0xff] }
  0xaf   :  { %2164 = vmatpush3.msra.mxu1 %v853_v1  ;;  %v851_v1 = vld [vmem:[%s4475_s3] sm:$0xff]  ;;  %2197 = vmatprep.subr.mxu0 %v903_v2 }
  0xb0   :  { %2165 = vmatprep.subr.mxu1 %v868_v4  ;;  %2198 = vmatpush3.msra.mxu0 %v887_v3  ;;  %v886_v4 = vld [vmem:[%s4475_s3 + $0x118] sm:$0xff]  ;;  %v899_v2 = vld [vmem:[%s4475_s3 + $0x180] sm:$0xff] }
  0xb1   :  { %2166 = vmatpush3.msra.mxu1 %v852_v6  ;;  %2199 = vmatprep.subr.mxu0 %v902_v7  ;;  %v884_v6 = vld [vmem:[%s4475_s3 + $0x108] sm:$0xff]  ;;  %v883_v3 = vld [vmem:[%s4475_s3 + $0x100] sm:$0xff] }
  0xb2   :  { %2167 = vmatprep.subr.mxu1 %v867_v5  ;;  %2200 = vmatpush3.msra.mxu0 %v886_v4  ;;  %v885_v5 = vld [vmem:[%s4475_s3 + $0x110] sm:$0xff] }
  0xb3   :  { %2168 = vmatpush3.msra.mxu1 %v851_v1  ;;  %2201 = vmatprep.subr.mxu0 %v901_v10  ;;  %v3786_v10 = vld [vmem:[%s4474_s2] ss:$0 sm:$0xff] }
  0xb4   :  { %2202 = vmatpush3.msra.mxu0 %v885_v5 }
  0xb5   :  { %2203 = vmatprep.subr.mxu0 %v900_v0 }
  0xb6   :  { %2204 = vmatpush3.msra.mxu0 %v884_v6 }
  0xb7   :  { %2205 = vmatprep.subr.mxu0 %v899_v2 }
  0xb8   :  { %2206 = vmatpush3.msra.mxu0 %v883_v3  ;;  %v3791_v3 = vand.u32 127, %v4486_v9 }
  0xba   :  { %vm687_vm0 = vcmp.lt.s32.totalorder %v3791_v3, 96  ;;  %vm686_vm1 = vcmp.lt.s32.totalorder %v3791_v3, 64  ;;  %vm685_vm2 = vcmp.lt.s32.totalorder %v3791_v3, 32 }
 0x13d   :  { %v2113_v1 = vpop.f32.mrf.mxu0 }
 0x13f   :  { %v2114_v7 = vpop.f32.mrf.mxu0 }
 0x140   :  { %v2115_v4 = vadd.f32 %v2114_v7, %v2113_v1 }
 0x141   :  { %v2116_v5 = vpop.f32.mrf.mxu0 }
 0x142   :  { %v629_v0 = vadd.f32 %v2115_v4, %v3786_v10 }
 0x143   :  { %v2117_v8 = vpop.f32.mrf.mxu0 }
 0x144   :  { %v667_v11 = vmax.f32 %v629_v0, 0.0  ;;  %v2118_v14 = vadd.f32 %v2117_v8, %v2116_v5 }
 0x145   :  { %v2119_v12 = vpop.f32.mrf.mxu0 }
 0x146   :  { %675 = vst [vmem:[#allocation2] sm:$0xff] %v667_v11  ;;  %v634_v6 = vadd.f32 %v2118_v14, %v3786_v10 }
 0x147   :  { %v2120_v2 = vpop.f32.mrf.mxu0 }
 0x148   :  { %v668_v15 = vmax.f32 %v634_v6, 0.0  ;;  %v2121_v13 = vadd.f32 %v2120_v2, %v2119_v12 }
 0x149   :  { %v2122_v18 = vpop.f32.mrf.mxu0 }
 0x14a   :  { %676 = vst [vmem:[#allocation2 + $0x8] sm:$0xff] %v668_v15  ;;  %v639_v1 = vadd.f32 %v2121_v13, %v3786_v10 }
 0x14b   :  { %v2123_v7 = vpop.f32.mrf.mxu0 }
 0x14c   :  { %v669_v4 = vmax.f32 %v639_v1, 0.0  ;;  %v2124_v0 = vadd.f32 %v2123_v7, %v2122_v18 }
 0x14d   :  { %v690_v8 = vld [vmem:[#allocation2 + $0x1] ss:$2 sm:$0x7]  ;;  %v2125_v11 = vpop.f32.mrf.mxu0  ;;  %v692_v14 = vld [vmem:[#allocation2 + $0x2] ss:$2 sm:$0x7] }
 0x14e   :  { %v694_v5 = vld [vmem:[#allocation2 + $0x3] ss:$2 sm:$0x7]  ;;  %677 = vst [vmem:[#allocation2 + $0x10] sm:$0xff] %v669_v4  ;;  %v644_v12 = vadd.f32 %v2124_v0, %v3786_v10 }
 0x14f   :  { %v695_v15 = vsel %vm687_vm0, %v692_v14, %v694_v5  ;;  %v2126_v13 = vpop.f32.mrf.mxu0  ;;  %v688_v6 = vld [vmem:[#allocation2] ss:$2 sm:$0x7] }
 0x150   :  { %v670_v2 = vmax.f32 %v644_v12, 0.0  ;;  %v2127_v9 = vadd.f32 %v2126_v13, %v2125_v11  ;;  %v696_v18 = vsel %vm686_vm1, %v690_v8, %v695_v15 }
 0x151   :  { %v702_v1 = vld [vmem:[#allocation2 + $0x9] ss:$2 sm:$0x7]  ;;  %v704_v7 = vld [vmem:[#allocation2 + $0xa] ss:$2 sm:$0x7]  ;;  %v2128_v16 = vpop.f32.mrf.mxu0  ;;  %v697_v19 = vsel %vm685_vm2, %v688_v6, %v696_v18 }
 0x152   :  { %v706_v17 = vld [vmem:[#allocation2 + $0xb] ss:$2 sm:$0x7]  ;;  %678 = vst [vmem:[#allocation2 + $0x18] sm:$0xff] %v670_v2  ;;  %v649_v4 = vadd.f32 %v2127_v9, %v3786_v10  ;;  %698 = vst [vmem:[#allocation3 + $0x30] sm:$0x7] %v697_v19 }
 0x153   :  { %v2129_v0 = vpop.f32.mrf.mxu0  ;;  %v707_v14 = vsel %vm687_vm0, %v704_v7, %v706_v17  ;;  %v700_v12 = vld [vmem:[#allocation2 + $0x8] ss:$2 sm:$0x7] }
 0x154   :  { %v671_v5 = vmax.f32 %v649_v4, 0.0  ;;  %v2130_v11 = vadd.f32 %v2129_v0, %v2128_v16  ;;  %v708_v8 = vsel %vm686_vm1, %v702_v1, %v707_v14 }
 0x155   :  { %v714_v15 = vld [vmem:[#allocation2 + $0x11] ss:$2 sm:$0x7]  ;;  %v2131_v13 = vpop.f32.mrf.mxu0  ;;  %v709_v6 = vsel %vm685_vm2, %v700_v12, %v708_v8  ;;  %v716_v18 = vld [vmem:[#allocation2 + $0x12] ss:$2 sm:$0x7] }
 0x156   :  { %v718_v2 = vld [vmem:[#allocation2 + $0x13] ss:$2 sm:$0x7]  ;;  %679 = vst [vmem:[#allocation2 + $0x20] sm:$0xff] %v671_v5  ;;  %710 = vst [vmem:[#allocation3] sm:$0x7] %v709_v6  ;;  %v654_v0 = vadd.f32 %v2130_v11, %v3786_v10 }
 0x157   :  { %v712_v9 = vld [vmem:[#allocation2 + $0x10] ss:$2 sm:$0x7]  ;;  %v719_v19 = vsel %vm687_vm0, %v716_v18, %v718_v2  ;;  %v736_v17 = vld [vmem:[#allocation2 + $0x11] ss:$2 sm:$0x7]  ;;  %v2132_v7 = vpop.f32.mrf.mxu0 }
 0x158   :  { %v720_v16 = vsel %vm686_vm1, %v714_v15, %v719_v19  ;;  %v737_v4 = vld [vmem:[#allocation2 + $0x12] ss:$2 sm:$0x7]  ;;  %v738_v1 = vld [vmem:[#allocation2 + $0x13] ss:$2 sm:$0x7]  ;;  %v2133_v14 = vadd.f32 %v2132_v7, %v2131_v13 }
 0x159   :  { %v721_v12 = vsel %vm685_vm2, %v712_v9, %v720_v16  ;;  %v735_v8 = vld [vmem:[#allocation2 + $0x10] ss:$2 sm:$0x7]  ;;  %v739_v5 = vsel %vm687_vm0, %v737_v4, %v738_v1  ;;  %v726_v6 = vld [vmem:[#allocation2 + $0x19] ss:$2 sm:$0x7]  ;;  %v2134_v22 = vpop.f32.mrf.mxu0 }
 0x15a   :  { %722 = vst [vmem:[#allocation3 + $0x18] sm:$0x7] %v721_v12  ;;  %v728_v18 = vld [vmem:[#allocation2 + $0x1a] ss:$2 sm:$0x7]  ;;  %v659_v20 = vadd.f32 %v2133_v14, %v3786_v10  ;;  %v740_v15 = vsel %vm686_vm1, %v736_v17, %v739_v5  ;;  %v672_v4 = vmax.f32 %v654_v0, 0.0 }
 0x15b   :  { %v730_v2 = vld [vmem:[#allocation2 + $0x1b] ss:$2 sm:$0x7]  ;;  %v748_v19 = vld [vmem:[#allocation2 + $0x1a] ss:$2 sm:$0x7]  ;;  %v2135_v9 = vpop.f32.mrf.mxu0  ;;  %v741_v7 = vsel %vm685_vm2, %v735_v8, %v740_v15 }
 0x15c   :  { %v731_v11 = vsel %vm687_vm0, %v728_v18, %v730_v2  ;;  %v747_v13 = vld [vmem:[#allocation2 + $0x19] ss:$2 sm:$0x7]  ;;  %v673_v1 = vmax.f32 %v659_v20, 0.0  ;;  %v2136_v12 = vadd.f32 %v2135_v9, %v2134_v22  ;;  %v743_v23 = vrot.slane %v741_v7, 5  ;;  %680 = vst [vmem:[#allocation2 + $0x28] sm:$0xff] %v672_v4 }
 0x15d   :  { %v749_v16 = vld [vmem:[#allocation2 + $0x1b] ss:$2 sm:$0x7]  ;;  %v724_v21 = vld [vmem:[#allocation2 + $0x18] ss:$2 sm:$0x7]  ;;  %v732_v17 = vsel %vm686_vm1, %v726_v6, %v731_v11 }
 0x15e   :  { %v760_v26 = vld [vmem:[#allocation2 + $0x21] ss:$2 sm:$0x7]  ;;  %v750_v14 = vsel %vm687_vm0, %v748_v19, %v749_v16  ;;  %v762_v5 = vld [vmem:[#allocation2 + $0x22] ss:$2 sm:$0x7]  ;;  %v664_v2 = vadd.f32 %v2136_v12, %v3786_v10  ;;  %v733_v20 = vsel %vm685_vm2, %v724_v21, %v732_v17 }
 0x15f   :  { %v764_v18 = vld [vmem:[#allocation2 + $0x23] ss:$2 sm:$0x7]  ;;  %681 = vst [vmem:[#allocation2 + $0x30] sm:$0xff] %v673_v1  ;;  %745 = vst [vmem:[#allocation3 + $0x30] sm:$0x38] %v743_v23  ;;  %v751_v15 = vsel %vm686_vm1, %v747_v13, %v750_v14 }
 0x160   :  { %v758_v22 = vld [vmem:[#allocation2 + $0x20] ss:$2 sm:$0x7]  ;;  %v765_v0 = vsel %vm687_vm0, %v762_v5, %v764_v18  ;;  %v788_v8 = vld [vmem:[#allocation2 + $0x21] ss:$2 sm:$0x7] }
 0x161   :  { %734 = vst [vmem:[#allocation3 + $0x10] sm:$0x7] %v733_v20  ;;  %v766_v6 = vsel %vm686_vm1, %v760_v26, %v765_v0  ;;  %v789_v11 = vld [vmem:[#allocation2 + $0x22] ss:$2 sm:$0x7]  ;;  %v674_v10 = vmax.f32 %v664_v2, 0.0 }
 0x162   :  { %v790_v19 = vld [vmem:[#allocation2 + $0x23] ss:$2 sm:$0x7]  ;;  %v767_v23 = vsel %vm685_vm2, %v758_v22, %v766_v6  ;;  %v746_v9 = vld [vmem:[#allocation2 + $0x18] ss:$2 sm:$0x7] }
 0x163   :  { %v791_v21 = vsel %vm687_vm0, %v789_v11, %v790_v19  ;;  %v769_v7 = vrot.slane %v767_v23, 5  ;;  %v787_v16 = vld [vmem:[#allocation2 + $0x20] ss:$2 sm:$0x7]  ;;  %v752_v13 = vsel %vm685_vm2, %v746_v9, %v751_v15  ;;  %682 = vst [vmem:[#allocation2 + $0x38] sm:$0xff] %v674_v10 }
 0x164   :  { %v792_v4 = vsel %vm686_vm1, %v788_v8, %v791_v21  ;;  %v754_v26 = vrot.slane %v752_v13, 5  ;;  %v775_v14 = vld [vmem:[#allocation2 + $0x29] ss:$2 sm:$0x7] }
 0x165   :  { %v793_v1 = vsel %vm685_vm2, %v787_v16, %v792_v4  ;;  %771 = vst [vmem:[#allocation3 + $0x18] sm:$0x38] %v769_v7  ;;  %v777_v17 = vld [vmem:[#allocation2 + $0x2a] ss:$2 sm:$0x7] }
 0x166   :  { %v795_v12 = vrot.slane %v793_v1, 2  ;;  %756 = vst [vmem:[#allocation3] sm:$0x38] %v754_v26  ;;  %v779_v5 = vld [vmem:[#allocation2 + $0x2b] ss:$2 sm:$0x7] }
 0x167   :  { %v773_v18 = vld [vmem:[#allocation2 + $0x28] ss:$2 sm:$0x7]  ;;  %v780_v2 = vsel %vm687_vm0, %v777_v17, %v779_v5  ;;  %v800_v20 = vld [vmem:[#allocation2 + $0x29] ss:$2 sm:$0x7] }
 0x168   :  { %797 = vst [vmem:[#allocation3 + $0x8] ss:$44 sps:$4 sm:$0xc1] %v795_v12   ;;  %v801_v22 = vld [vmem:[#allocation2 + $0x2a] ss:$2 sm:$0x7]  ;;  %v781_v8 = vsel %vm686_vm1, %v775_v14, %v780_v2 }
 0x169   :  { %v802_v0 = vld [vmem:[#allocation2 + $0x2b] ss:$2 sm:$0x7]  ;;  %v799_v15 = vld [vmem:[#allocation2 + $0x28] ss:$2 sm:$0x7]  ;;  %v782_v10 = vsel %vm685_vm2, %v773_v18, %v781_v8 }
 0x16a   :  { %v803_v6 = vsel %vm687_vm0, %v801_v22, %v802_v0  ;;  %v814_v11 = vld [vmem:[#allocation2 + $0x31] ss:$2 sm:$0x7]  ;;  %v816_v19 = vld [vmem:[#allocation2 + $0x32] ss:$2 sm:$0x7] }
 0x16b   :  { %v818_v23 = vld [vmem:[#allocation2 + $0x33] ss:$2 sm:$0x7]  ;;  %v804_v21 = vsel %vm686_vm1, %v800_v20, %v803_v6  ;;  %v812_v9 = vld [vmem:[#allocation2 + $0x30] ss:$2 sm:$0x7] }
 0x16c   :  { %v819_v7 = vsel %vm687_vm0, %v816_v19, %v818_v23  ;;  %v830_v16 = vld [vmem:[#allocation2 + $0x39] ss:$2 sm:$0x7]  ;;  %v805_v4 = vsel %vm685_vm2, %v799_v15, %v804_v21  ;;  %v832_v26 = vld [vmem:[#allocation2 + $0x3a] ss:$2 sm:$0x7] }
 0x16d   :  { %v820_v13 = vsel %vm686_vm1, %v814_v11, %v819_v7  ;;  %v834_v1 = vld [vmem:[#allocation2 + $0x3b] ss:$2 sm:$0x7]  ;;  %v807_v17 = vrot.slane %v805_v4, 2  ;;  %v784_v5 = vrot.slane %v782_v10, 5  ;;  %v1129_v4 = vld [vmem:[%s4477_s5 + $0xf0] sm:$0xff] }
 0x16e   :  { %v821_v12 = vsel %vm685_vm2, %v812_v9, %v820_v13  ;;  %v835_v14 = vsel %vm687_vm0, %v832_v26, %v834_v1  ;;  %v828_v2 = vld [vmem:[#allocation2 + $0x38] ss:$2 sm:$0x7]  ;;  %v1113_v26 = vld [vmem:[%s4477_s5 + $0x70] sm:$0xff] }
 0x16f   :  { %v823_v18 = vrot.slane %v821_v12, 2  ;;  %v836_v20 = vsel %vm686_vm1, %v830_v16, %v835_v14  ;;  %809 = vst [vmem:[#allocation3 + $0x20] ss:$-28 sps:$4 sm:$0xc1] %v807_v17   ;;  %786 = vst [vmem:[#allocation3 + $0x10] sm:$0x38] %v784_v5 }
 0x170   :  { %v837_v22 = vsel %vm685_vm2, %v828_v2, %v836_v20  ;;  %v843_v15 = vld [vmem:[#allocation3 + $0x30] sm:$0xff]  ;;  %v847_v23 = vld [vmem:[#allocation3 + $0x8] sm:$0x1]  ;;  %v1130_v9 = vld [vmem:[%s4477_s5 + $0xf8] sm:$0xff] }
 0x171   :  { %825 = vst [vmem:[#allocation3 + $0x28] ss:$-12 sps:$4 sm:$0xc1] %v823_v18   ;;  %v839_v0 = vrot.slane %v837_v22, 2  ;;  %2213 = vmatprep.subr.mxu1 %v1130_v9  ;;  %v1114_v7 = vld [vmem:[%s4477_s5 + $0x78] sm:$0xff]  ;;  %v1161_v1 = vld [vmem:[%s4477_s5 + $0x1f0] sm:$0xff] }
 0x172   :  { %v1162_v16 = vld [vmem:[%s4477_s5 + $0x1f8] sm:$0xff]  ;;  %v1128_v12 = vld [vmem:[%s4477_s5 + $0xe8] sm:$0xff]  ;;  %v1145_v14 = vld [vmem:[%s4477_s5 + $0x170] sm:$0xff] }
 0x173   :  { %841 = vst [vmem:[#allocation3 + $0x38] ss:$-36 sps:$4 sm:$0xc1] %v839_v0   ;;  %2248 = vmatprep.subr.mxu0 %v1162_v16  ;;  %v1146_v13 = vld [vmem:[%s4477_s5 + $0x178] sm:$0xff]  ;;  %v1112_v17 = vld [vmem:[%s4477_s5 + $0x68] sm:$0xff]  ;;  %v1127_v18 = vld [vmem:[%s4477_s5 + $0xe0] sm:$0xff] }
 0x174   :  { %v1160_v5 = vld [vmem:[%s4477_s5 + $0x1e8] sm:$0xff]  ;;  %v1111_v20 = vld [vmem:[%s4477_s5 + $0x60] sm:$0xff]  ;;  %v1126_v0 = vld [vmem:[%s4477_s5 + $0xd8] sm:$0xff] }
 0x175   :  { %v1144_v2 = vld [vmem:[%s4477_s5 + $0x168] sm:$0xff]  ;;  %v1159_v22 = vld [vmem:[%s4477_s5 + $0x1e0] sm:$0xff]  ;;  %v1141_v9 = vld [vmem:[%s4477_s5 + $0x150] sm:$0xff] }
 0x176   :  { %v844_v8 = vld [vmem:[#allocation3] sm:$0xff]  ;;  %v1156_v16 = vld [vmem:[%s4477_s5 + $0x1c8] sm:$0xff] }
 0x177   :  { %986 = vmatprep.mubr.f32.mxu1 %v844_v8  ;;  %v848_v6 = vld [vmem:[#allocation3 + $0x20] sm:$0x1] }
 0x178   :  { %987 = vmatmul.mubr.f32.vlgmr.msra.gmra.mxu1 %v843_v15  ;;  %v845_v19 = vld [vmem:[#allocation3 + $0x18] sm:$0xff]  ;;  %v849_v10 = vld [vmem:[#allocation3 + $0x28] sm:$0x1]  ;;  %v1143_v8 = vld [vmem:[%s4477_s5 + $0x160] sm:$0xff] }
 0x179   :  { %991 = vmatprep.mubr.f32.mxu1 %v848_v6  ;;  %2214 = vmatpush3.msra.mxu1 %v1114_v7  ;;  %v1110_v15 = vld [vmem:[%s4477_s5 + $0x58] sm:$0xff]  ;;  %v1108_v7 = vld [vmem:[%s4477_s5 + $0x48] sm:$0xff] }
 0x17a   :  { %v846_v11 = vld [vmem:[#allocation3 + $0x10] sm:$0xff]  ;;  %v850_v21 = vld [vmem:[#allocation3 + $0x38] sm:$0x1]  ;;  %2215 = vmatprep.subr.mxu1 %v1129_v4  ;;  %v1123_v4 = vld [vmem:[%s4477_s5 + $0xc0] sm:$0xff] }
 0x17b   :  { %1061 = vmatprep.mubr.f32.mxu0 %v846_v11  ;;  %2216 = vmatpush3.msra.mxu1 %v1113_v26  ;;  %v1158_v6 = vld [vmem:[%s4477_s5 + $0x1d8] sm:$0xff]  ;;  %v1125_v11 = vld [vmem:[%s4477_s5 + $0xd0] sm:$0xff]  ;;  %v1107_v26 = vld [vmem:[%s4477_s5 + $0x40] sm:$0xff] }
 0x17c   :  { %1062 = vmatmul.mubr.f32.vlgmr.msra.gmra.mxu0 %v845_v19  ;;  %992 = vmatmul.mubr.f32.gmra.mxu1 %v847_v23  ;;  %v1142_v19 = vld [vmem:[%s4477_s5 + $0x158] sm:$0xff]  ;;  %v1109_v23 = vld [vmem:[%s4477_s5 + $0x50] sm:$0xff] }
 0x17d   :  { %1066 = vmatprep.mubr.f32.mxu0 %v850_v21  ;;  %2249 = vmatpush3.msra.mxu0 %v1146_v13  ;;  %v1157_v21 = vld [vmem:[%s4477_s5 + $0x1d0] sm:$0xff]  ;;  %v1140_v13 = vld [vmem:[%s4477_s5 + $0x148] sm:$0xff] }
 0x17e   :  { %2250 = vmatprep.subr.mxu0 %v1161_v1  ;;  %2217 = vmatprep.subr.mxu1 %v1128_v12  ;;  %v1155_v1 = vld [vmem:[%s4477_s5 + $0x1c0] sm:$0xff]  ;;  %v1122_v12 = vld [vmem:[%s4477_s5 + $0xb8] sm:$0xff] }
 0x17f   :  { %2251 = vmatpush3.msra.mxu0 %v1145_v14  ;;  %2218 = vmatpush3.msra.mxu1 %v1112_v17  ;;  %v1139_v14 = vld [vmem:[%s4477_s5 + $0x140] sm:$0xff]  ;;  %v1106_v17 = vld [vmem:[%s4477_s5 + $0x38] sm:$0xff] }
 0x180   :  { %1067 = vmatmul.mubr.f32.gmra.mxu0 %v849_v10  ;;  %2252 = vmatprep.subr.mxu0 %v1160_v5  ;;  %v1124_v10 = vld [vmem:[%s4477_s5 + $0xc8] sm:$0xff]  ;;  %v1154_v5 = vld [vmem:[%s4477_s5 + $0x1b8] sm:$0xff] }
 0x181   :  { %2219 = vmatprep.subr.mxu1 %v1127_v18  ;;  %2253 = vmatpush3.msra.mxu0 %v1144_v2  ;;  %v1121_v18 = vld [vmem:[%s4477_s5 + $0xb0] sm:$0xff]  ;;  %v1138_v2 = vld [vmem:[%s4477_s5 + $0x138] sm:$0xff] }
 0x182   :  { %2220 = vmatpush3.msra.mxu1 %v1111_v20  ;;  %2254 = vmatprep.subr.mxu0 %v1159_v22  ;;  %v1105_v20 = vld [vmem:[%s4477_s5 + $0x30] sm:$0xff] }
 0x183   :  { %2221 = vmatprep.subr.mxu1 %v1126_v0  ;;  %2255 = vmatpush3.msra.mxu0 %v1143_v8  ;;  %v1153_v22 = vld [vmem:[%s4477_s5 + $0x1b0] sm:$0xff]  ;;  %v1120_v0 = vld [vmem:[%s4477_s5 + $0xa8] sm:$0xff] }
 0x184   :  { %2222 = vmatpush3.msra.mxu1 %v1110_v15  ;;  %2256 = vmatprep.subr.mxu0 %v1158_v6  ;;  %v1137_v8 = vld [vmem:[%s4477_s5 + $0x130] sm:$0xff]  ;;  %v1104_v15 = vld [vmem:[%s4477_s5 + $0x28] sm:$0xff] }
 0x185   :  { %2223 = vmatprep.subr.mxu1 %v1125_v11  ;;  %2257 = vmatpush3.msra.mxu0 %v1142_v19  ;;  %v1152_v6 = vld [vmem:[%s4477_s5 + $0x1a8] sm:$0xff]  ;;  %v1119_v11 = vld [vmem:[%s4477_s5 + $0xa0] sm:$0xff] }
 0x186   :  { %2224 = vmatpush3.msra.mxu1 %v1109_v23  ;;  %2258 = vmatprep.subr.mxu0 %v1157_v21  ;;  %v1136_v19 = vld [vmem:[%s4477_s5 + $0x128] sm:$0xff]  ;;  %v1103_v23 = vld [vmem:[%s4477_s5 + $0x20] sm:$0xff] }
 0x187   :  { %2225 = vmatprep.subr.mxu1 %v1124_v10  ;;  %2259 = vmatpush3.msra.mxu0 %v1141_v9  ;;  %v1151_v21 = vld [vmem:[%s4477_s5 + $0x1a0] sm:$0xff]  ;;  %v1118_v10 = vld [vmem:[%s4477_s5 + $0x98] sm:$0xff] }
 0x188   :  { %2226 = vmatpush3.msra.mxu1 %v1108_v7  ;;  %2260 = vmatprep.subr.mxu0 %v1156_v16  ;;  %v1135_v9 = vld [vmem:[%s4477_s5 + $0x120] sm:$0xff]  ;;  %v1102_v7 = vld [vmem:[%s4477_s5 + $0x18] sm:$0xff] }
 0x189   :  { %2227 = vmatprep.subr.mxu1 %v1123_v4  ;;  %2261 = vmatpush3.msra.mxu0 %v1140_v13  ;;  %v1150_v16 = vld [vmem:[%s4477_s5 + $0x198] sm:$0xff]  ;;  %v1117_v4 = vld [vmem:[%s4477_s5 + $0x90] sm:$0xff] }
 0x18a   :  { %2228 = vmatpush3.msra.mxu1 %v1107_v26  ;;  %2262 = vmatprep.subr.mxu0 %v1155_v1  ;;  %v1134_v13 = vld [vmem:[%s4477_s5 + $0x118] sm:$0xff]  ;;  %v1101_v26 = vld [vmem:[%s4477_s5 + $0x10] sm:$0xff] }
 0x18b   :  { %2229 = vmatprep.subr.mxu1 %v1122_v12  ;;  %2263 = vmatpush3.msra.mxu0 %v1139_v14  ;;  %v1149_v1 = vld [vmem:[%s4477_s5 + $0x190] sm:$0xff]  ;;  %v1116_v12 = vld [vmem:[%s4477_s5 + $0x88] sm:$0xff] }
 0x18c   :  { %2230 = vmatpush3.msra.mxu1 %v1106_v17  ;;  %2264 = vmatprep.subr.mxu0 %v1154_v5  ;;  %v1133_v14 = vld [vmem:[%s4477_s5 + $0x110] sm:$0xff]  ;;  %v1100_v17 = vld [vmem:[%s4477_s5 + $0x8] sm:$0xff] }
 0x18d   :  { %2231 = vmatprep.subr.mxu1 %v1121_v18  ;;  %2265 = vmatpush3.msra.mxu0 %v1138_v2  ;;  %v1148_v5 = vld [vmem:[%s4477_s5 + $0x188] sm:$0xff]  ;;  %v1115_v18 = vld [vmem:[%s4477_s5 + $0x80] sm:$0xff] }
 0x18e   :  { %2232 = vmatpush3.msra.mxu1 %v1105_v20  ;;  %2266 = vmatprep.subr.mxu0 %v1153_v22  ;;  %v1132_v2 = vld [vmem:[%s4477_s5 + $0x108] sm:$0xff]  ;;  %v1099_v20 = vld [vmem:[%s4477_s5] sm:$0xff] }
 0x18f   :  { %2233 = vmatprep.subr.mxu1 %v1120_v0  ;;  %2267 = vmatpush3.msra.mxu0 %v1137_v8  ;;  %v1147_v22 = vld [vmem:[%s4477_s5 + $0x180] sm:$0xff]  ;;  %v2415_v8 = vmov 0.0  }
 0x190   :  { %2234 = vmatpush3.msra.mxu1 %v1104_v15  ;;  %2268 = vmatprep.subr.mxu0 %v1152_v6  ;;  %v1131_v0 = vld [vmem:[%s4477_s5 + $0x100] sm:$0xff] }
 0x191   :  { %2235 = vmatprep.subr.mxu1 %v1119_v11  ;;  %2269 = vmatpush3.msra.mxu0 %v1136_v19  ;;  %v2077_v11 = vld [vmem:[%s4476_s4] ss:$0 sm:$0xff] }
 0x192   :  { %2236 = vmatpush3.msra.mxu1 %v1103_v23  ;;  %2270 = vmatprep.subr.mxu0 %v1151_v21 }
 0x193   :  { %2237 = vmatprep.subr.mxu1 %v1118_v10  ;;  %2271 = vmatpush3.msra.mxu0 %v1135_v9 }
 0x194   :  { %2238 = vmatpush3.msra.mxu1 %v1102_v7  ;;  %2272 = vmatprep.subr.mxu0 %v1150_v16 }
 0x195   :  { %2239 = vmatprep.subr.mxu1 %v1117_v4  ;;  %2273 = vmatpush3.msra.mxu0 %v1134_v13 }
 0x196   :  { %2240 = vmatpush3.msra.mxu1 %v1101_v26  ;;  %2274 = vmatprep.subr.mxu0 %v1149_v1 }
 0x197   :  { %2241 = vmatprep.subr.mxu1 %v1116_v12  ;;  %2275 = vmatpush3.msra.mxu0 %v1133_v14 }
 0x198   :  { %2242 = vmatpush3.msra.mxu1 %v1100_v17  ;;  %2276 = vmatprep.subr.mxu0 %v1148_v5 }
 0x199   :  { %2243 = vmatprep.subr.mxu1 %v1115_v18  ;;  %2277 = vmatpush3.msra.mxu0 %v1132_v2  ;;  %v4641_v2 = vlaneseq }
 0x19a   :  { %2244 = vmatpush3.msra.mxu1 %v1099_v20  ;;  %2278 = vmatprep.subr.mxu0 %v1147_v22 }
 0x19b   :  { %2279 = vmatpush3.msra.mxu0 %v1131_v0  ;;  %2370 = vmatprep.subr.mxu1 %v2415_v8  ;;  %vm4071_vm3 = vcmp.lt.s32.totalorder %v4641_v2, 128 }
 0x238   :  { %v2169_v15 = vpop.f32.mrf.mxu1 }
 0x23a   :  { %v2170_v6 = vpop.f32.mrf.mxu1 }
 0x23b   :  { %v2171_v19 = vadd.f32 %v2170_v6, %v2169_v15 }
 0x23c   :  { %v2207_v23 = vpop.f32.mrf.mxu0  ;;  %v2172_v21 = vpop.f32.mrf.mxu1 }
 0x23d   :  { %v989_v9 = vadd.f32 %v2171_v19, %v2077_v11 }
 0x23e   :  { %v2208_v10 = vpop.f32.mrf.mxu0  ;;  %v2173_v7 = vpop.f32.mrf.mxu1 }
 0x23f   :  { %v2209_v16 = vadd.f32 %v2208_v10, %v2207_v23  ;;  %v2174_v4 = vadd.f32 %v2173_v7, %v2172_v21 }
 0x240   :  { %v2210_v13 = vpop.f32.mrf.mxu0 }
 0x241   :  { %v1064_v26 = vadd.f32 %v2209_v16, %v989_v9  ;;  %v994_v12 = vadd.f32 %v2174_v4, %v2077_v11 }
 0x242   :  { %v2211_v1 = vpop.f32.mrf.mxu0 }
 0x243   :  { %v1072_v14 = vmax.f32 %v1064_v26, 0.0  ;;  %v2212_v17 = vadd.f32 %v2211_v1, %v2210_v13  ;;  %v4094_v13 = vshrl.u32 %v4641_v2, 7 }
 0x245   :  { %1074 = vst [vmem:[#allocation4] sm:$0xff] %v1072_v14  ;;  %v1069_v5 = vadd.f32 %v2212_v17, %v994_v12  ;;  %v4097_v26 = vsub.s32 1, %v4094_v13  ;;  %v1195_v1 = vsub.s32 3, %v4094_v13  ;;  %v4101_v12 = vsub.s32 0, %v4094_v13 }
 0x246   :  { %v1191_v14 = vsub.s32 2, %v4094_v13 }
 0x247   :  { %v1073_v18 = vmax.f32 %v1069_v5, 0.0 }
 0x249   :  { %1075 = vst [vmem:[#allocation4 + $0x8] sm:$0x1] %v1073_v18 }
 0x24c   :  { %v1076_v22 = vld [vmem:[#allocation4] sm:$0x1]  ;;  %v1077_v0 = vld [vmem:[#allocation4 + $0x1] sm:$0x1]  ;;  %v1084_v15 = vld [vmem:[#allocation4 + $0x2] sm:$0x1] }
 0x24d   :  { %v1078_v6 = vsel %vm686_vm1, %v1076_v22, %v1077_v0  ;;  %v1085_v19 = vld [vmem:[#allocation4 + $0x3] sm:$0x1]  ;;  %v1088_v23 = vld [vmem:[#allocation4 + $0x4] sm:$0x1]  ;;  %v1089_v11 = vld [vmem:[#allocation4 + $0x5] sm:$0x1] }
 0x24e   :  { %1083 = vst.msk [vmem:[#allocation5] sm:$0x1] %vm4071_vm3, %v1078_v6  ;;  %v1086_v21 = vsel %vm686_vm1, %v1084_v15, %v1085_v19  ;;  %v1090_v10 = vsel %vm686_vm1, %v1088_v23, %v1089_v11  ;;  %v1092_v9 = vld [vmem:[#allocation4 + $0x6] sm:$0x1]  ;;  %v1093_v7 = vld [vmem:[#allocation4 + $0x7] sm:$0x1] }
 0x24f   :  { %1087 = vst.msk [vmem:[#allocation5 + $0x1] sm:$0x1] %vm4071_vm3, %v1086_v21  ;;  %1091 = vst.msk [vmem:[#allocation5 + $0x2] sm:$0x1] %vm4071_vm3, %v1090_v10  ;;  %v1094_v16 = vsel %vm686_vm1, %v1092_v9, %v1093_v7  ;;  %v1178_v22 = vld [vmem:[%s4477_s5 + $0x278] sm:$0xff]  ;;  %v1177_v0 = vld [vmem:[%s4477_s5 + $0x270] sm:$0xff] }
 0x250   :  { %1095 = vst.msk [vmem:[#allocation5 + $0x3] sm:$0x1] %vm4071_vm3, %v1094_v16  ;;  %v1096_v4 = vld [vmem:[#allocation4 + $0x8] sm:$0x1]  ;;  %v1175_v6 = vld [vmem:[%s4477_s5 + $0x260] sm:$0xff]  ;;  %v1174_v19 = vld [vmem:[%s4477_s5 + $0x258] sm:$0xff] }
 0x251   :  { %1097 = vst.msk [vmem:[#allocation5 + $0x4] sm:$0x1] %vm4071_vm3, %v1096_v4  ;;  %v1176_v15 = vld [vmem:[%s4477_s5 + $0x268] sm:$0xff]  ;;  %v1173_v23 = vld [vmem:[%s4477_s5 + $0x250] sm:$0xff]  ;;  %v1171_v21 = vld [vmem:[%s4477_s5 + $0x240] sm:$0xff] }
 0x252   :  { %v1172_v11 = vld [vmem:[%s4477_s5 + $0x248] sm:$0xff]  ;;  %v1170_v10 = vld [vmem:[%s4477_s5 + $0x238] sm:$0xff]  ;;  %v1169_v9 = vld [vmem:[%s4477_s5 + $0x230] sm:$0xff] }
 0x253   :  { %v1168_v7 = vld [vmem:[%s4477_s5 + $0x228] sm:$0xff]  ;;  %v1167_v16 = vld [vmem:[%s4477_s5 + $0x220] sm:$0xff]  ;;  %v1166_v4 = vld [vmem:[%s4477_s5 + $0x218] sm:$0xff] }
 0x258   :  { %v1098_v17 = vld [vmem:[#allocation5] sm:$0x1f] }
 0x259   :  { %v1188_v5 = vrot.slane %v1098_v17, %v4097_v26  ;;  %v1196_v18 = vrot.slane %v1098_v17, %v1195_v1  ;;  %v1184_v20 = vrot.slane %v1098_v17, %v4101_v12  ;;  %v1192_v2 = vrot.slane %v1098_v17, %v1191_v14 }
 0x25b   :  { %1270 = vmatprep.mubr.f32.mxu1 %v1188_v5  ;;  %1340 = vmatprep.mubr.f32.mxu0 %v1196_v18  ;;  %v1165_v5 = vld [vmem:[%s4477_s5 + $0x210] sm:$0xff]  ;;  %v1164_v18 = vld [vmem:[%s4477_s5 + $0x208] sm:$0xff] }
 0x25c   :  { %1271 = vmatmul.mubr.f32.vlgmr.msra.gmra.mxu1 %v1184_v20  ;;  %1341 = vmatmul.mubr.f32.vlgmr.msra.gmra.mxu0 %v1192_v2  ;;  %v1199_v20 = vsub.s32 4, %v4094_v13  ;;  %v1163_v2 = vld [vmem:[%s4477_s5 + $0x200] sm:$0xff] }
 0x25d   :  { %2371 = vmatpush3.msra.mxu1 %v1178_v22  ;;  %2402 = vmatprep.mubr.msk.f32.mxu1 %vm2416_vm4, %v2415_v8 }
 0x25e   :  { %2372 = vmatprep.subr.mxu1 %v2415_v8  ;;  %1513 = vmatprep.mubr.f32.mxu0 %v2415_v8  ;;  %v1200_v22 = vrot.slane %v1098_v17, %v1199_v20  ;;  %v1428_v17 = vld [vmem:[%s4479_s7 + $0x58] sm:$0xff] }
 0x25f   :  { %2373 = vmatpush3.msra.mxu1 %v1177_v0  ;;  %v1432_v0 = vld [vmem:[%s4479_s7 + $0x78] sm:$0xff] }
 0x260   :  { %2374 = vmatprep.subr.mxu1 %v2415_v8  ;;  %1465 = vmatprep.subr.mxu0 %v1432_v0 }
 0x261   :  { %2375 = vmatpush3.msra.mxu1 %v1176_v15  ;;  %v1431_v15 = vld [vmem:[%s4479_s7 + $0x70] sm:$0xff] }
 0x262   :  { %2376 = vmatprep.subr.mxu1 %v2415_v8  ;;  %1466 = vmatpush1.msra.mxu0 %v1431_v15  ;;  %v1179_v15 = vld [vmem:[%s4478_s6] sm:$0x1] }
 0x263   :  { %2377 = vmatpush3.msra.mxu1 %v1175_v6  ;;  %v1430_v6 = vld [vmem:[%s4479_s7 + $0x68] sm:$0xff] }
 0x264   :  { %2378 = vmatprep.subr.mxu1 %v2415_v8  ;;  %1467 = vmatprep.subr.mxu0 %v1430_v6 }
 0x265   :  { %2379 = vmatpush3.msra.mxu1 %v1174_v19  ;;  %v1427_v19 = vld [vmem:[%s4479_s7 + $0x50] sm:$0xff] }
 0x266   :  { %2380 = vmatprep.subr.mxu1 %v2415_v8 }
 0x267   :  { %2381 = vmatpush3.msra.mxu1 %v1173_v23  ;;  %v1426_v23 = vld [vmem:[%s4479_s7 + $0x48] sm:$0xff] }
 0x268   :  { %2382 = vmatprep.subr.mxu1 %v2415_v8 }
 0x269   :  { %2383 = vmatpush3.msra.mxu1 %v1172_v11  ;;  %v1425_v11 = vld [vmem:[%s4479_s7 + $0x40] sm:$0xff] }
 0x26a   :  { %2384 = vmatprep.subr.mxu1 %v2415_v8 }
 0x26b   :  { %2385 = vmatpush3.msra.mxu1 %v1171_v21  ;;  %v1424_v21 = vld [vmem:[%s4479_s7 + $0x38] sm:$0xff] }
 0x26c   :  { %2386 = vmatprep.subr.mxu1 %v2415_v8 }
 0x26d   :  { %2387 = vmatpush3.msra.mxu1 %v1170_v10  ;;  %v1423_v10 = vld [vmem:[%s4479_s7 + $0x30] sm:$0xff] }
 0x26e   :  { %2388 = vmatprep.subr.mxu1 %v2415_v8 }
 0x26f   :  { %2389 = vmatpush3.msra.mxu1 %v1169_v9  ;;  %v1422_v9 = vld [vmem:[%s4479_s7 + $0x28] sm:$0xff] }
 0x270   :  { %2390 = vmatprep.subr.mxu1 %v2415_v8 }
 0x271   :  { %2391 = vmatpush3.msra.mxu1 %v1168_v7  ;;  %v1421_v7 = vld [vmem:[%s4479_s7 + $0x20] sm:$0xff] }
 0x272   :  { %2392 = vmatprep.subr.mxu1 %v2415_v8 }
 0x273   :  { %2393 = vmatpush3.msra.mxu1 %v1167_v16  ;;  %v1420_v16 = vld [vmem:[%s4479_s7 + $0x18] sm:$0xff] }
 0x274   :  { %2394 = vmatprep.subr.mxu1 %v2415_v8 }
 0x275   :  { %2395 = vmatpush3.msra.mxu1 %v1166_v4  ;;  %v1419_v4 = vld [vmem:[%s4479_s7 + $0x10] sm:$0xff] }
 0x276   :  { %2396 = vmatprep.subr.mxu1 %v2415_v8 }
 0x277   :  { %2397 = vmatpush3.msra.mxu1 %v1165_v5  ;;  %v1418_v5 = vld [vmem:[%s4479_s7 + $0x8] sm:$0xff] }
 0x278   :  { %2398 = vmatprep.subr.mxu1 %v2415_v8 }
 0x279   :  { %2399 = vmatpush3.msra.mxu1 %v1164_v18  ;;  %v1417_v18 = vld [vmem:[%s4479_s7] sm:$0xff] }
 0x27a   :  { %2400 = vmatprep.subr.mxu1 %v2415_v8  ;;  %v1429_v8 = vld [vmem:[%s4479_s7 + $0x60] sm:$0xff] }
 0x27b   :  { %2401 = vmatpush3.msra.mxu1 %v1163_v2  ;;  %1468 = vmatpush1.msra.mxu0 %v1429_v8 }
 0x27c   :  { %2403 = vmatmul.mubr.f32.vlgmr.msra.gmra.mxu1 %v1200_v22  ;;  %1469 = vmatprep.subr.mxu0 %v1428_v17 }
 0x27d   :  { %1470 = vmatpush1.msra.mxu0 %v1427_v19  ;;  %1676 = vmatprep.subr.mxu1 %v2795_v61 }
 0x27e   :  { %1471 = vmatprep.subr.mxu0 %v1426_v23 }
 0x27f   :  { %1472 = vmatpush1.msra.mxu0 %v1425_v11 }
 0x280   :  { %1473 = vmatprep.subr.mxu0 %v1424_v21 }
 0x281   :  { %1474 = vmatpush1.msra.mxu0 %v1423_v10 }
 0x282   :  { %1475 = vmatprep.subr.mxu0 %v1422_v9  ;;  %v1433_v9 = vld [vmem:[%s4480_s8] sm:$0x3] }
 0x283   :  { %1476 = vmatpush1.msra.mxu0 %v1421_v7  ;;  %v1438_v7 = vrot.slane %v1433_v9, %v4101_v12 }
 0x284   :  { %1477 = vmatprep.subr.mxu0 %v1420_v16  ;;  %v1442_v16 = vrot.slane %v1433_v9, %v4097_v26 }
 0x285   :  { %1478 = vmatpush1.msra.mxu0 %v1419_v4 }
 0x286   :  { %1479 = vmatprep.subr.mxu0 %v1418_v5 }
 0x287   :  { %1480 = vmatpush1.msra.mxu0 %v1417_v18 }
 0x288   :  { %1747 = vmatprep.subr.mxu0 %v2805_v63 }
 0x31c   :  { %v2245_v20 = vpop.f32.mrf.mxu1  ;;  %v2280_v22 = vpop.f32.mrf.mxu0 }
 0x31e   :  { %v2246_v2 = vpop.f32.mrf.mxu1  ;;  %v2281_v6 = vpop.f32.mrf.mxu0 }
 0x31f   :  { %v2247_v0 = vadd.f32 %v2246_v2, %v2245_v20  ;;  %v2282_v17 = vadd.f32 %v2281_v6, %v2280_v22 }
 0x321   :  { %v1273_v8 = vadd.f32 %v2247_v0, %v1179_v15 }
 0x323   :  { %v1343_v19 = vadd.f32 %v2282_v17, %v1273_v8 }
 0x33c   :  { %v1412_v23 = vpop.f32.mrf.mxu1 }
 0x33d   :  { %v1413_v11 = vadd.f32 %v1412_v23, %v1343_v19 }
 0x33e   :  { %v2404_v21 = vpop.f32.mrf.mxu1 }
 0x33f   :  { %v1416_v10 = vmax.f32 %v1413_v11, 0.0 }
 0x341   :  { %2078 = vmatmul.mubr.msk.f32.vlgmr.msra.gmra.mxu0 %vm1445_vm5, %v1416_v10 }
 0x401   :  { %v1515_v4 = vpop.f32.mrf.mxu0 }
 0x402   :  { %v4232_v5 = vadd.f32 %v1515_v4, %v1438_v7 }
 0x403   :  { %v1517_v18 = vpop.f32.mrf.mxu0 }
 0x404   :  { %v1520_v20 = vmax.f32 %v4232_v5, 0.0  ;;  %v4235_v2 = vadd.f32 %v1517_v18, %v1442_v16 }
 0x406   :  { %v1521_v22 = vmax.f32 %v4235_v2, 0.0 }
 0x407   :  { %2411 = dma.done.wait [#allocation8], 16384 }
 0x408   :  { %2412 = vsyncadd [#allocation8], 4294950912  ;;  %1677 = vmatpush1.msra.mxu1 %v2790_v60  ;;  %1748 = vmatpush1.msra.mxu0 %v2800_v62  ;;  %v4679_v60 = vld [vmem:[#allocation90_spill] sm:$0xff]  ;;  %v4680_v61 = vld [vmem:[#allocation92_spill] sm:$0xff] }
 0x409   :  { %1678 = vmatprep.subr.mxu1 %v2775_v57  ;;  %1749 = vmatprep.subr.mxu0 %v2785_v59  ;;  %v4676_v57 = vld [vmem:[#allocation96_spill] sm:$0xff]  ;;  %v4678_v59 = vld [vmem:[#allocation93_spill] sm:$0xff]  ;;  %v4681_v62 = vld [vmem:[#allocation87_spill] sm:$0xff] }
 0x40a   :  { %1679 = vmatpush1.msra.mxu1 %v2770_v56  ;;  %1750 = vmatpush1.msra.mxu0 %v2780_v58  ;;  %v4675_v56 = vld [vmem:[#allocation94_spill] sm:$0xff]  ;;  %v4677_v58 = vld [vmem:[#allocation91_spill] sm:$0xff]  ;;  %v4682_v63 = vld [vmem:[#allocation89_spill] sm:$0xff] }
 0x40b   :  { %1680 = vmatprep.subr.mxu1 %v2755_v53  ;;  %1751 = vmatprep.subr.mxu0 %v2765_v55  ;;  %v4672_v53 = vld [vmem:[#allocation100_spill] sm:$0xff]  ;;  %v4674_v55 = vld [vmem:[#allocation97_spill] sm:$0xff]  ;;  %v4683_v0 = vld [vmem:[#allocation86_spill] sm:$0xff] }
 0x40c   :  { %1681 = vmatpush1.msra.mxu1 %v2750_v52  ;;  %1752 = vmatpush1.msra.mxu0 %v2760_v54  ;;  %v4671_v52 = vld [vmem:[#allocation98_spill] sm:$0xff]  ;;  %v4673_v54 = vld [vmem:[#allocation95_spill] sm:$0xff]  ;;  %v4684_v15 = vld [vmem:[#allocation88_spill] sm:$0xff] }
 0x40d   :  { %1682 = vmatprep.subr.mxu1 %v2735_v49  ;;  %1753 = vmatprep.subr.mxu0 %v2745_v51  ;;  %v4668_v49 = vld [vmem:[#allocation15_spill] sm:$0xff]  ;;  %v4670_v51 = vld [vmem:[#allocation101_spill] sm:$0xff]  ;;  %v4687_v17 = vld [vmem:[#allocation82_spill] sm:$0xff] }
 0x40e   :  { %1683 = vmatpush1.msra.mxu1 %v2730_v48  ;;  %1754 = vmatpush1.msra.mxu0 %v2740_v50  ;;  %v4667_v48 = vld [vmem:[#allocation13_spill] sm:$0xff]  ;;  %v4669_v50 = vld [vmem:[#allocation99_spill] sm:$0xff]  ;;  %v4688_v19 = vld [vmem:[#allocation84_spill] sm:$0xff] }
 0x40f   :  { %1684 = vmatprep.subr.mxu1 %v2715_v45  ;;  %1755 = vmatprep.subr.mxu0 %v2725_v47  ;;  %v4664_v45 = vld [vmem:[#allocation19_spill] sm:$0xff]  ;;  %v4666_v47 = vld [vmem:[#allocation16_spill] sm:$0xff]  ;;  %v4686_v8 = vld [vmem:[#allocation85_spill] sm:$0xff] }
 0x410   :  { %1685 = vmatpush1.msra.mxu1 %v2710_v44  ;;  %1756 = vmatpush1.msra.mxu0 %v2720_v46  ;;  %v4663_v44 = vld [vmem:[#allocation17_spill] sm:$0xff]  ;;  %v4665_v46 = vld [vmem:[#allocation14_spill] sm:$0xff]  ;;  %v4685_v6 = vld [vmem:[#allocation83_spill] sm:$0xff] }
 0x411   :  { %1686 = vmatprep.subr.mxu1 %v2695_v41  ;;  %1757 = vmatprep.subr.mxu0 %v2705_v43  ;;  %v4660_v41 = vld [vmem:[#allocation23_spill] sm:$0xff]  ;;  %v4662_v43 = vld [vmem:[#allocation20_spill] sm:$0xff]  ;;  %v4690_v11 = vld [vmem:[#allocation81_spill] sm:$0xff] }
 0x412   :  { %1687 = vmatpush1.msra.mxu1 %v2690_v40  ;;  %1758 = vmatpush1.msra.mxu0 %v2700_v42  ;;  %v4659_v40 = vld [vmem:[#allocation21_spill] sm:$0xff]  ;;  %v4661_v42 = vld [vmem:[#allocation18_spill] sm:$0xff]  ;;  %v4689_v23 = vld [vmem:[#allocation79_spill] sm:$0xff] }
 0x413   :  { %1688 = vmatprep.subr.mxu1 %v2675_v37  ;;  %1759 = vmatprep.subr.mxu0 %v2685_v39  ;;  %v4656_v37 = vld [vmem:[#allocation27_spill] sm:$0xff]  ;;  %v4658_v39 = vld [vmem:[#allocation24_spill] sm:$0xff]  ;;  %v4691_v21 = vld [vmem:[#allocation78_spill] sm:$0xff] }
 0x414   :  { %1689 = vmatpush1.msra.mxu1 %v2670_v36  ;;  %1760 = vmatpush1.msra.mxu0 %v2680_v38  ;;  %v4655_v36 = vld [vmem:[#allocation25_spill] sm:$0xff]  ;;  %v4657_v38 = vld [vmem:[#allocation22_spill] sm:$0xff]  ;;  %v4692_v10 = vld [vmem:[#allocation80_spill] sm:$0xff] }
 0x415   :  { %1690 = vmatprep.subr.mxu1 %v2655_v33  ;;  %1761 = vmatprep.subr.mxu0 %v2665_v35  ;;  %v4644_v33 = vld [vmem:[#allocation37_spill] sm:$0xff]  ;;  %v4645_v35 = vld [vmem:[#allocation34_spill] sm:$0xff]  ;;  %v4693_v9 = vld [vmem:[#allocation75_spill] sm:$0xff] }
 0x416   :  { %1691 = vmatpush1.msra.mxu1 %v2650_v32  ;;  %1762 = vmatpush1.msra.mxu0 %v2660_v34  ;;  %v4646_v32 = vld [vmem:[#allocation36_spill] sm:$0xff]  ;;  %v4647_v34 = vld [vmem:[#allocation33_spill] sm:$0xff]  ;;  %v4695_v16 = vld [vmem:[#allocation74_spill] sm:$0xff] }
 0x417   :  { %1692 = vmatprep.subr.mxu1 %v2635_v29  ;;  %1763 = vmatprep.subr.mxu0 %v2645_v31  ;;  %v4648_v29 = vld [vmem:[#allocation35_spill] sm:$0xff]  ;;  %v4649_v31 = vld [vmem:[#allocation30_spill] sm:$0xff]  ;;  %v4694_v7 = vld [vmem:[#allocation77_spill] sm:$0xff] }
 0x418   :  { %1693 = vmatpush1.msra.mxu1 %v2630_v28  ;;  %1764 = vmatpush1.msra.mxu0 %v2640_v30  ;;  %v4650_v28 = vld [vmem:[#allocation32_spill] sm:$0xff]  ;;  %v4651_v30 = vld [vmem:[#allocation29_spill] sm:$0xff]  ;;  %v4697_v18 = vld [vmem:[#allocation71_spill] sm:$0xff] }
 0x419   :  { %1694 = vmatprep.subr.mxu1 %v2615_v25  ;;  %1765 = vmatprep.subr.mxu0 %v2625_v27  ;;  %v4652_v25 = vld [vmem:[#allocation31_spill] sm:$0xff]  ;;  %v4653_v27 = vld [vmem:[#allocation26_spill] sm:$0xff]  ;;  %v4696_v4 = vld [vmem:[#allocation76_spill] sm:$0xff] }
 0x41a   :  { %1695 = vmatpush1.msra.mxu1 %v2610_v24  ;;  %1766 = vmatpush1.msra.mxu0 %v4644_v33  ;;  %v4654_v24 = vld [vmem:[#allocation28_spill] sm:$0xff]  ;;  %v4698_v33 = vld [vmem:[#allocation73_spill] sm:$0xff] }
 0x41b   :  { %1696 = vmatprep.subr.mxu1 %v4645_v35  ;;  %1767 = vmatprep.subr.mxu0 %v4646_v32  ;;  %v4699_v35 = vld [vmem:[#allocation70_spill] sm:$0xff]  ;;  %v4700_v32 = vld [vmem:[#allocation72_spill] sm:$0xff] }
 0x41c   :  { %1697 = vmatpush1.msra.mxu1 %v4647_v34  ;;  %1768 = vmatpush1.msra.mxu0 %v4648_v29  ;;  %v4701_v34 = vld [vmem:[#allocation67_spill] sm:$0xff]  ;;  %v4702_v29 = vld [vmem:[#allocation69_spill] sm:$0xff] }
 0x41d   :  { %1698 = vmatprep.subr.mxu1 %v4649_v31  ;;  %1769 = vmatprep.subr.mxu0 %v4650_v28  ;;  %v4703_v31 = vld [vmem:[#allocation66_spill] sm:$0xff]  ;;  %v4704_v28 = vld [vmem:[#allocation68_spill] sm:$0xff] }
 0x41e   :  { %1699 = vmatpush1.msra.mxu1 %v4651_v30  ;;  %1770 = vmatpush1.msra.mxu0 %v4652_v25  ;;  %v4705_v30 = vld [vmem:[#allocation63_spill] sm:$0xff]  ;;  %v4706_v25 = vld [vmem:[#allocation65_spill] sm:$0xff] }
 0x41f   :  { %1700 = vmatprep.subr.mxu1 %v4653_v27  ;;  %1771 = vmatprep.subr.mxu0 %v4654_v24  ;;  %v4707_v27 = vld [vmem:[#allocation62_spill] sm:$0xff]  ;;  %v4708_v24 = vld [vmem:[#allocation64_spill] sm:$0xff] }
 0x420   :  { %1701 = vmatpush1.msra.mxu1 %v4655_v36  ;;  %1772 = vmatpush1.msra.mxu0 %v4656_v37  ;;  %v4709_v36 = vld [vmem:[#allocation59_spill] sm:$0xff]  ;;  %v4710_v37 = vld [vmem:[#allocation61_spill] sm:$0xff] }
 0x421   :  { %1702 = vmatprep.subr.mxu1 %v4657_v38  ;;  %1773 = vmatprep.subr.mxu0 %v4658_v39  ;;  %v4711_v38 = vld [vmem:[#allocation58_spill] sm:$0xff]  ;;  %v4712_v39 = vld [vmem:[#allocation60_spill] sm:$0xff] }
 0x422   :  { %1703 = vmatpush1.msra.mxu1 %v4659_v40  ;;  %1774 = vmatpush1.msra.mxu0 %v4660_v41  ;;  %v4713_v40 = vld [vmem:[#allocation55_spill] sm:$0xff]  ;;  %v4714_v41 = vld [vmem:[#allocation57_spill] sm:$0xff] }
 0x423   :  { %1704 = vmatprep.subr.mxu1 %v4661_v42  ;;  %1775 = vmatprep.subr.mxu0 %v4662_v43  ;;  %v4715_v42 = vld [vmem:[#allocation54_spill] sm:$0xff]  ;;  %v4716_v43 = vld [vmem:[#allocation56_spill] sm:$0xff] }
 0x424   :  { %1705 = vmatpush1.msra.mxu1 %v4663_v44  ;;  %1776 = vmatpush1.msra.mxu0 %v4664_v45  ;;  %v4717_v44 = vld [vmem:[#allocation51_spill] sm:$0xff]  ;;  %v4718_v45 = vld [vmem:[#allocation53_spill] sm:$0xff] }
 0x425   :  { %1706 = vmatprep.subr.mxu1 %v4665_v46  ;;  %1777 = vmatprep.subr.mxu0 %v4666_v47  ;;  %v4719_v46 = vld [vmem:[#allocation50_spill] sm:$0xff]  ;;  %v4720_v47 = vld [vmem:[#allocation52_spill] sm:$0xff] }
 0x426   :  { %1707 = vmatpush1.msra.mxu1 %v4667_v48  ;;  %1778 = vmatpush1.msra.mxu0 %v4668_v49  ;;  %v4721_v48 = vld [vmem:[#allocation47_spill] sm:$0xff]  ;;  %v4722_v49 = vld [vmem:[#allocation49_spill] sm:$0xff] }
 0x427   :  { %1708 = vmatprep.subr.mxu1 %v4669_v50  ;;  %1779 = vmatprep.subr.mxu0 %v4670_v51  ;;  %v4723_v50 = vld [vmem:[#allocation46_spill] sm:$0xff]  ;;  %v4724_v51 = vld [vmem:[#allocation48_spill] sm:$0xff] }
 0x428   :  { %1709 = vmatpush2.msra.mxu1 %v4671_v52  ;;  %1780 = vmatpush2.msra.mxu0 %v4672_v53  ;;  %v4725_v52 = vld [vmem:[#allocation43_spill] sm:$0xff]  ;;  %v4726_v53 = vld [vmem:[#allocation45_spill] sm:$0xff] }
 0x429   :  { %1710 = vmatprep.subr.mxu1 %v4673_v54  ;;  %1781 = vmatprep.subr.mxu0 %v4674_v55  ;;  %v4727_v54 = vld [vmem:[#allocation42_spill] sm:$0xff]  ;;  %v4728_v55 = vld [vmem:[#allocation44_spill] sm:$0xff] }
 0x42a   :  { %1711 = vmatpush2.msra.mxu1 %v4675_v56  ;;  %1782 = vmatpush2.msra.mxu0 %v4676_v57  ;;  %v4729_v56 = vld [vmem:[#allocation39_spill] sm:$0xff]  ;;  %v4730_v57 = vld [vmem:[#allocation41_spill] sm:$0xff] }
 0x42b   :  { %1712 = vmatprep.subr.mxu1 %v4677_v58  ;;  %1783 = vmatprep.subr.mxu0 %v4678_v59  ;;  %v4731_v58 = vld [vmem:[#allocation38_spill] sm:$0xff]  ;;  %v4732_v59 = vld [vmem:[#allocation40_spill] sm:$0xff] }
 0x42c   :  { %1713 = vmatpush2.msra.mxu1 %v4679_v60  ;;  %1784 = vmatpush2.msra.mxu0 %v4680_v61  ;;  %v1654_v60 = vld [vmem:[%s4481_s9] sm:$0xf] }
 0x42d   :  { %1714 = vmatprep.subr.mxu1 %v4681_v62  ;;  %1785 = vmatprep.subr.mxu0 %v4682_v63  ;;  %v1659_v61 = vrot.slane %v1654_v60, %v4101_v12  ;;  %v1667_v62 = vrot.slane %v1654_v60, %v1191_v14  ;;  %v1663_v63 = vrot.slane %v1654_v60, %v4097_v26  ;;  %v4733_v12 = vld [vmem:[#allocation133_spill] sm:$0xff] }
 0x42e   :  { %1715 = vmatpush2.msra.mxu1 %v4683_v0  ;;  %1786 = vmatpush2.msra.mxu0 %v4684_v15  ;;  %v1671_v2 = vrot.slane %v1654_v60, %v1195_v1  ;;  %v4734_v14 = vld [vmem:[#allocation165_spill] sm:$0xff] }
 0x42f   :  { %1716 = vmatprep.subr.mxu1 %v4685_v6  ;;  %1787 = vmatprep.subr.mxu0 %v4686_v8 }
 0x430   :  { %1717 = vmatpush2.msra.mxu1 %v4687_v17  ;;  %1788 = vmatpush2.msra.mxu0 %v4688_v19 }
 0x431   :  { %1718 = vmatprep.subr.mxu1 %v4689_v23  ;;  %1789 = vmatprep.subr.mxu0 %v4690_v11 }
 0x432   :  { %1719 = vmatpush2.msra.mxu1 %v4691_v21  ;;  %1790 = vmatpush2.msra.mxu0 %v4692_v10 }
 0x433   :  { %1720 = vmatprep.subr.mxu1 %v4693_v9  ;;  %1791 = vmatprep.subr.mxu0 %v4694_v7 }
 0x434   :  { %1721 = vmatpush2.msra.mxu1 %v4695_v16  ;;  %1792 = vmatpush2.msra.mxu0 %v4696_v4 }
 0x435   :  { %1722 = vmatprep.subr.mxu1 %v4697_v18  ;;  %1793 = vmatprep.subr.mxu0 %v4698_v33 }
 0x436   :  { %1723 = vmatpush2.msra.mxu1 %v4699_v35  ;;  %1794 = vmatpush2.msra.mxu0 %v4700_v32 }
 0x437   :  { %1724 = vmatprep.subr.mxu1 %v4701_v34  ;;  %1795 = vmatprep.subr.mxu0 %v4702_v29 }
 0x438   :  { %1725 = vmatpush2.msra.mxu1 %v4703_v31  ;;  %1796 = vmatpush2.msra.mxu0 %v4704_v28 }
 0x439   :  { %1726 = vmatprep.subr.mxu1 %v4705_v30  ;;  %1797 = vmatprep.subr.mxu0 %v4706_v25 }
 0x43a   :  { %1727 = vmatpush2.msra.mxu1 %v4707_v27  ;;  %1798 = vmatpush2.msra.mxu0 %v4708_v24 }
 0x43b   :  { %1728 = vmatprep.subr.mxu1 %v4709_v36  ;;  %1799 = vmatprep.subr.mxu0 %v4710_v37 }
 0x43c   :  { %1729 = vmatpush2.msra.mxu1 %v4711_v38  ;;  %1800 = vmatpush2.msra.mxu0 %v4712_v39 }
 0x43d   :  { %1730 = vmatprep.subr.mxu1 %v4713_v40  ;;  %1801 = vmatprep.subr.mxu0 %v4714_v41 }
 0x43e   :  { %1731 = vmatpush2.msra.mxu1 %v4715_v42  ;;  %1802 = vmatpush2.msra.mxu0 %v4716_v43 }
 0x43f   :  { %1732 = vmatprep.subr.mxu1 %v4717_v44  ;;  %1803 = vmatprep.subr.mxu0 %v4718_v45 }
 0x440   :  { %1733 = vmatpush2.msra.mxu1 %v4719_v46  ;;  %1804 = vmatpush2.msra.mxu0 %v4720_v47 }
 0x441   :  { %1734 = vmatprep.subr.mxu1 %v4721_v48  ;;  %1805 = vmatprep.subr.mxu0 %v4722_v49 }
 0x442   :  { %1735 = vmatpush2.msra.mxu1 %v4723_v50  ;;  %1806 = vmatpush2.msra.mxu0 %v4724_v51 }
 0x443   :  { %1736 = vmatprep.subr.mxu1 %v4725_v52  ;;  %1807 = vmatprep.subr.mxu0 %v4726_v53 }
 0x444   :  { %1737 = vmatpush2.msra.mxu1 %v4727_v54  ;;  %1808 = vmatpush2.msra.mxu0 %v4728_v55 }
 0x445   :  { %1738 = vmatprep.subr.mxu1 %v4729_v56  ;;  %1809 = vmatprep.subr.mxu0 %v4730_v57 }
 0x446   :  { %1739 = vmatpush2.msra.mxu1 %v4731_v58  ;;  %1740 = vmatprep.mubr.f32.mxu1 %v1521_v22 }
 0x447   :  { %1810 = vmatpush2.msra.mxu0 %v4732_v59  ;;  %1811 = vmatprep.mubr.f32.mxu0 %v1521_v22 }
 0x448   :  { %1741 = vmatmul.mubr.f32.vlgmr.msra.gmra.mxu1 %v1520_v20  ;;  %1812 = vmatmul.mubr.f32.vlgmr.msra.gmra.mxu0 %v1520_v20 }
 0x449   :  { %2300 = vmatprep.subr.mxu1 %v4733_v12  ;;  %2335 = vmatprep.subr.mxu0 %v4734_v14 }
 0x508   :  { %v1742_v22 = vpop.f32.mrf.mxu1  ;;  %v1813_v0 = vpop.f32.mrf.mxu0 }
 0x509   :  { %v4383_v15 = vadd.f32 %v1742_v22, %v1659_v61  ;;  %v4385_v5 = vadd.f32 %v1813_v0, %v1667_v62 }
 0x50a   :  { %v1744_v20 = vpop.f32.mrf.mxu1  ;;  %v1815_v6 = vpop.f32.mrf.mxu0 }
 0x50b   :  { %v4387_v8 = vadd.f32 %v1744_v20, %v1663_v63  ;;  %v4389_v17 = vadd.f32 %v1815_v6, %v1671_v2 }
 0x50c   :  { %2413 = dma.done.wait [#allocation8 + $0x1], 8192 }
 0x50d   :  { %2414 = vsyncadd [#allocation8 + $0x1], 4294959104  ;;  %v4735_v13 = vld [vmem:[#allocation117_spill] sm:$0xff]  ;;  %v4737_v1 = vld [vmem:[#allocation132_spill] sm:$0xff]  ;;  %1950 = vmatprep.mubr.f32.mxu1 %v4387_v8  ;;  %2020 = vmatprep.mubr.f32.mxu0 %v4389_v17  ;;  %vm2026_vm6 = vcmp.lt.s32.totalorder %v3791_v3, 6  ;;  %vm2028_vm7 = vcmask 1040384  }
 0x50e   :  { %2301 = vmatpush3.msra.mxu1 %v4735_v13  ;;  %v4736_v26 = vld [vmem:[#allocation149_spill] sm:$0xff]  ;;  %v4738_v19 = vld [vmem:[#allocation164_spill] sm:$0xff]  ;;  %v4741_v21 = vld [vmem:[#allocation131_spill] sm:$0xff] }
 0x50f   :  { %2336 = vmatpush3.msra.mxu0 %v4736_v26  ;;  %2302 = vmatprep.subr.mxu1 %v4737_v1  ;;  %v4739_v23 = vld [vmem:[#allocation116_spill] sm:$0xff]  ;;  %v4742_v10 = vld [vmem:[#allocation163_spill] sm:$0xff]  ;;  %v4745_v16 = vld [vmem:[#allocation130_spill] sm:$0xff] }
 0x510   :  { %2337 = vmatprep.subr.mxu0 %v4738_v19  ;;  %2303 = vmatpush3.msra.mxu1 %v4739_v23  ;;  %v4740_v11 = vld [vmem:[#allocation148_spill] sm:$0xff]  ;;  %v4743_v9 = vld [vmem:[#allocation115_spill] sm:$0xff]  ;;  %v4746_v4 = vld [vmem:[#allocation162_spill] sm:$0xff] }
 0x511   :  { %2338 = vmatpush3.msra.mxu0 %v4740_v11  ;;  %2304 = vmatprep.subr.mxu1 %v4741_v21  ;;  %v4744_v7 = vld [vmem:[#allocation147_spill] sm:$0xff]  ;;  %v4747_v18 = vld [vmem:[#allocation114_spill] sm:$0xff]  ;;  %v4749_v35 = vld [vmem:[#allocation129_spill] sm:$0xff] }
 0x512   :  { %2339 = vmatprep.subr.mxu0 %v4742_v10  ;;  %2305 = vmatpush3.msra.mxu1 %v4743_v9  ;;  %v4748_v33 = vld [vmem:[#allocation146_spill] sm:$0xff]  ;;  %v4750_v32 = vld [vmem:[#allocation161_spill] sm:$0xff]  ;;  %v4753_v31 = vld [vmem:[#allocation128_spill] sm:$0xff] }
 0x513   :  { %2340 = vmatpush3.msra.mxu0 %v4744_v7  ;;  %2306 = vmatprep.subr.mxu1 %v4745_v16  ;;  %v4751_v34 = vld [vmem:[#allocation113_spill] sm:$0xff]  ;;  %v4754_v28 = vld [vmem:[#allocation160_spill] sm:$0xff]  ;;  %v4757_v27 = vld [vmem:[#allocation127_spill] sm:$0xff] }
 0x514   :  { %2341 = vmatprep.subr.mxu0 %v4746_v4  ;;  %2307 = vmatpush3.msra.mxu1 %v4747_v18  ;;  %v4752_v29 = vld [vmem:[#allocation145_spill] sm:$0xff]  ;;  %v4755_v30 = vld [vmem:[#allocation112_spill] sm:$0xff]  ;;  %v4758_v24 = vld [vmem:[#allocation159_spill] sm:$0xff] }
 0x515   :  { %2342 = vmatpush3.msra.mxu0 %v4748_v33  ;;  %2308 = vmatprep.subr.mxu1 %v4749_v35  ;;  %v4756_v25 = vld [vmem:[#allocation144_spill] sm:$0xff]  ;;  %v4759_v36 = vld [vmem:[#allocation111_spill] sm:$0xff]  ;;  %v4761_v38 = vld [vmem:[#allocation126_spill] sm:$0xff] }
 0x516   :  { %2343 = vmatprep.subr.mxu0 %v4750_v32  ;;  %2309 = vmatpush3.msra.mxu1 %v4751_v34  ;;  %v4760_v37 = vld [vmem:[#allocation143_spill] sm:$0xff]  ;;  %v4762_v39 = vld [vmem:[#allocation158_spill] sm:$0xff]  ;;  %v4765_v42 = vld [vmem:[#allocation125_spill] sm:$0xff] }
 0x517   :  { %2344 = vmatpush3.msra.mxu0 %v4752_v29  ;;  %2310 = vmatprep.subr.mxu1 %v4753_v31  ;;  %v4763_v40 = vld [vmem:[#allocation110_spill] sm:$0xff]  ;;  %v4766_v43 = vld [vmem:[#allocation157_spill] sm:$0xff]  ;;  %v4769_v46 = vld [vmem:[#allocation124_spill] sm:$0xff] }
 0x518   :  { %2345 = vmatprep.subr.mxu0 %v4754_v28  ;;  %2311 = vmatpush3.msra.mxu1 %v4755_v30  ;;  %v4764_v41 = vld [vmem:[#allocation142_spill] sm:$0xff]  ;;  %v4767_v44 = vld [vmem:[#allocation109_spill] sm:$0xff]  ;;  %v4770_v47 = vld [vmem:[#allocation156_spill] sm:$0xff] }
 0x519   :  { %2346 = vmatpush3.msra.mxu0 %v4756_v25  ;;  %2312 = vmatprep.subr.mxu1 %v4757_v27  ;;  %v4768_v45 = vld [vmem:[#allocation141_spill] sm:$0xff]  ;;  %v4771_v48 = vld [vmem:[#allocation108_spill] sm:$0xff]  ;;  %v4773_v50 = vld [vmem:[#allocation123_spill] sm:$0xff] }
 0x51a   :  { %2347 = vmatprep.subr.mxu0 %v4758_v24  ;;  %2313 = vmatpush3.msra.mxu1 %v4759_v36  ;;  %v4772_v49 = vld [vmem:[#allocation140_spill] sm:$0xff]  ;;  %v4774_v51 = vld [vmem:[#allocation155_spill] sm:$0xff]  ;;  %v4777_v54 = vld [vmem:[#allocation122_spill] sm:$0xff] }
 0x51b   :  { %2348 = vmatpush3.msra.mxu0 %v4760_v37  ;;  %2314 = vmatprep.subr.mxu1 %v4761_v38  ;;  %v4775_v52 = vld [vmem:[#allocation107_spill] sm:$0xff]  ;;  %v4778_v55 = vld [vmem:[#allocation154_spill] sm:$0xff]  ;;  %v4781_v58 = vld [vmem:[#allocation121_spill] sm:$0xff] }
 0x51c   :  { %2349 = vmatprep.subr.mxu0 %v4762_v39  ;;  %2315 = vmatpush3.msra.mxu1 %v4763_v40  ;;  %v4776_v53 = vld [vmem:[#allocation139_spill] sm:$0xff]  ;;  %v4779_v56 = vld [vmem:[#allocation106_spill] sm:$0xff]  ;;  %v4782_v59 = vld [vmem:[#allocation153_spill] sm:$0xff] }
 0x51d   :  { %2350 = vmatpush3.msra.mxu0 %v4764_v41  ;;  %2316 = vmatprep.subr.mxu1 %v4765_v42  ;;  %v4780_v57 = vld [vmem:[#allocation138_spill] sm:$0xff]  ;;  %v4783_v60 = vld [vmem:[#allocation105_spill] sm:$0xff]  ;;  %v4785_v62 = vld [vmem:[#allocation120_spill] sm:$0xff] }
 0x51e   :  { %2351 = vmatprep.subr.mxu0 %v4766_v43  ;;  %2317 = vmatpush3.msra.mxu1 %v4767_v44  ;;  %v4784_v61 = vld [vmem:[#allocation137_spill] sm:$0xff]  ;;  %v4786_v63 = vld [vmem:[#allocation152_spill] sm:$0xff]  ;;  %v4789_v0 = vld [vmem:[#allocation119_spill] sm:$0xff] }
 0x51f   :  { %2352 = vmatpush3.msra.mxu0 %v4768_v45  ;;  %2318 = vmatprep.subr.mxu1 %v4769_v46  ;;  %v4787_v2 = vld [vmem:[#allocation104_spill] sm:$0xff]  ;;  %v4790_v20 = vld [vmem:[#allocation151_spill] sm:$0xff]  ;;  %v4793_v14 = vld [vmem:[#allocation118_spill] sm:$0xff] }
 0x520   :  { %2353 = vmatprep.subr.mxu0 %v4770_v47  ;;  %2319 = vmatpush3.msra.mxu1 %v4771_v48  ;;  %v4788_v22 = vld [vmem:[#allocation136_spill] sm:$0xff]  ;;  %v4791_v6 = vld [vmem:[#allocation103_spill] sm:$0xff]  ;;  %v4794_v13 = vld [vmem:[#allocation150_spill] sm:$0xff] }
 0x521   :  { %2354 = vmatpush3.msra.mxu0 %v4772_v49  ;;  %2320 = vmatprep.subr.mxu1 %v4773_v50  ;;  %v4792_v12 = vld [vmem:[#allocation135_spill] sm:$0xff]  ;;  %v4795_v26 = vld [vmem:[#allocation102_spill] sm:$0xff] }
 0x522   :  { %2355 = vmatprep.subr.mxu0 %v4774_v51  ;;  %2321 = vmatpush3.msra.mxu1 %v4775_v52  ;;  %v4796_v1 = vld [vmem:[#allocation134_spill] sm:$0xff] }
 0x523   :  { %2356 = vmatpush3.msra.mxu0 %v4776_v53  ;;  %2322 = vmatprep.subr.mxu1 %v4777_v54  ;;  %v1885_v11 = vld [vmem:[%s4482_s10] sm:$0x1] }
 0x524   :  { %2357 = vmatprep.subr.mxu0 %v4778_v55  ;;  %2323 = vmatpush3.msra.mxu1 %v4779_v56 }
 0x525   :  { %2358 = vmatpush3.msra.mxu0 %v4780_v57  ;;  %2324 = vmatprep.subr.mxu1 %v4781_v58 }
 0x526   :  { %2359 = vmatprep.subr.mxu0 %v4782_v59  ;;  %2325 = vmatpush3.msra.mxu1 %v4783_v60 }
 0x527   :  { %2360 = vmatpush3.msra.mxu0 %v4784_v61  ;;  %2326 = vmatprep.subr.mxu1 %v4785_v62 }
 0x528   :  { %2361 = vmatprep.subr.mxu0 %v4786_v63  ;;  %2327 = vmatpush3.msra.mxu1 %v4787_v2 }
 0x529   :  { %2362 = vmatpush3.msra.mxu0 %v4788_v22  ;;  %2328 = vmatprep.subr.mxu1 %v4789_v0 }
 0x52a   :  { %2363 = vmatprep.subr.mxu0 %v4790_v20  ;;  %2329 = vmatpush3.msra.mxu1 %v4791_v6 }
 0x52b   :  { %2364 = vmatpush3.msra.mxu0 %v4792_v12  ;;  %2330 = vmatprep.subr.mxu1 %v4793_v14 }
 0x52c   :  { %2365 = vmatprep.subr.mxu0 %v4794_v13  ;;  %2331 = vmatpush3.msra.mxu1 %v4795_v26 }
 0x52d   :  { %2366 = vmatpush3.msra.mxu0 %v4796_v1  ;;  %1951 = vmatmul.mubr.f32.vlgmr.msra.gmra.mxu1 %v4383_v15 }
 0x52e   :  { %2021 = vmatmul.mubr.f32.vlgmr.msra.gmra.mxu0 %v4385_v5 }
 0x5ed   :  { %v2332_v19 = vpop.f32.mrf.mxu1 }
 0x5ee   :  { %v2367_v23 = vpop.f32.mrf.mxu0 }
 0x5ef   :  { %v2333_v21 = vpop.f32.mrf.mxu1 }
 0x5f0   :  { %v2368_v10 = vpop.f32.mrf.mxu0  ;;  %v2334_v9 = vadd.f32 %v2333_v21, %v2332_v19 }
 0x5f1   :  { %v2369_v16 = vadd.f32 %v2368_v10, %v2367_v23 }
 0x5f2   :  { %v1953_v7 = vadd.f32 %v2334_v9, %v1885_v11 }
 0x5f4   :  { %v2023_v8 = vadd.f32 %v2369_v16, %v1953_v7 }
 0x5f6   :  { %v2027_v15 = vsel %vm2026_vm6, %v2023_v8, -1e+30 }
 0x5f7   :  { %v2029_v17 = vsel %vm2028_vm7, %v2027_v15, -inf }
 0x5f8   :  { %2030 = vmax.xlane.f32.xlu0 %v2029_v17 }
 0x681   :  { %v2031_v5 = vpop.xlane.xlu0 %2030 }
 0x682   :  { %v2032_v4 = vsub.f32 %v2027_v15, %v2031_v5 }
 0x684   :  { %v2033_v18 = vmul.f32 1.442695, %v2032_v4 }
 0x686   :  { %2407 = vpow2.f32 %v2033_v18 }
 0x693   :  { %v2408_v33 = vpop.eup %2407 }
 0x694   :  { %v2035_v35 = vsel %vm2026_vm6, %v2408_v33, 0.0 }
 0x695   :  { %v2036_v32 = vsel %vm2028_vm7, %v2035_v35, 0.0 }
 0x696   :  { %2037 = vadd.xlane.f32.xlu0 %v2036_v32 }
 0x71f   :  { %v2038_v34 = vpop.xlane.xlu0 %2037 }
 0x720   :  { %2409 = vrcp.f32 %v2038_v34 }
 0x72d   :  { %v2410_v29 = vpop.eup %2409 }
 0x72e   :  { %v2040_v31 = vmul.f32 %v2410_v29, %v2035_v35 }
 0x730   :  { %v2041_v28 = vsel %vm2026_vm6, %v2040_v31, %v2023_v8 }
 0x731   :  { %2042 = vst [vmem:[%s4485_s13] sm:$0x1] %v2041_v28 }
 0x732   :  { %2047 = vsyncmov [#allocation8] }
 0x735   :  { %s2048_s19 = vpop.sfrf %2047 }
 0x736   :  { %p2079_p0 = scmp.ne.s32.totalorder %s2048_s19, 0 }
 0x738   :  { %2052 = shalt.err (%p2079_p0)  }
 0x739   :  { %2054 = vsyncmov [#allocation8 + $0x1] }
 0x73c   :  { %s2055_s20 = vpop.sfrf %2054 }
 0x73d   :  { %p2080_p1 = scmp.ne.s32.totalorder %s2055_s20, 0 }
 0x73f   :  { %2059 = shalt.err (%p2080_p1)  }

</bundles_post_ra>
